<compile_context>
chip_gen: v7x
topology: tpu7x:2x2x1
jax: 0.10.0
libtpu: 0.0.40
codegen_flags: <defaults>
</compile_context>

<pallas_src>
import math

import jax
import jax.numpy as jnp
from jax.experimental import pallas as pl
from jax.experimental.pallas import tpu as pltpu

BN_EPS = 1e-5
_OFF = 8  # interior W offset in the padded scratch (sublane-aligned f32 stores)
_TAPS = [(dy, dx) for dy in range(3) for dx in range(3)]


# ---------------------------------------------------------------------------
# Fused kernel: grid = (n_residual_blocks,), block weights streamed per step.
# ---------------------------------------------------------------------------
def _make_kernel(B, H, W, Cin, F, P, n_blocks):
    BHW = B * H * W
    # cols [0.._OFF-2] unused, _OFF-1 = left halo, [_OFF, _OFF+W) interior,
    # _OFF+W = right halo  ->  PW = W + _OFF + 1
    PW = W + _OFF + 1

    def conv_bn_relu(x, tap_w, gamma, beta, pad_ref, C, residual=None):
        """3x3 'same' conv (no bias) + training-mode BatchNorm2d (+res) + ReLU."""
        # Write activation into the zero-haloed interior (halo stays zero).
        pad_ref[:, 1:H + 1, _OFF:_OFF + W, :C] = x
        # 9 shifted matmuls accumulated in f32 -- no materialized im2col buffer.
        acc = None
        for t, (dy, dx) in enumerate(_TAPS):
            patch = pad_ref[:, dy:dy + H, _OFF - 1 + dx:_OFF - 1 + dx + W, :C]
            lhs = patch.reshape(BHW, C).astype(jnp.bfloat16)
            prod = jnp.dot(lhs, tap_w(t), preferred_element_type=jnp.float32)
            acc = prod if acc is None else acc + prod           # (BHW, F) f32
        # BatchNorm2d batch statistics over (N,H,W), biased variance, single pass.
        inv_n = 1.0 / BHW
        s = jnp.sum(acc, axis=0, keepdims=True)
        ss = jnp.sum(acc * acc, axis=0, keepdims=True)
        mean = s * inv_n
        var = jnp.maximum(ss * inv_n - mean * mean, 0.0)
        scale = gamma * jax.lax.rsqrt(var + BN_EPS)             # (1, F)
        shift = beta - mean * scale
        # Folded scale/shift (+ residual) + ReLU in one elementwise pass.
        y = acc.reshape(B, H, W, F) * scale + shift
        if residual is not None:
            y = y + residual
        return jnp.maximum(y, 0.0)

    def kernel(x_ref, w0_ref, g0_ref, b0_ref, wb_ref, gb_ref, bb_ref,
               hw_ref, hb_ref, pol_ref, val_ref, pad_ref, act_ref):
        blk = pl.program_id(0)

        # First step: zero only the halo strips (once), then conv0 + BN + ReLU.
        @pl.when(blk == 0)
        def _():
            f32 = jnp.float32
            pad_ref[:, 0:1, _OFF - 1:_OFF + W + 1, :] = jnp.zeros((B, 1, W + 2, F), f32)
            pad_ref[:, H + 1:H + 2, _OFF - 1:_OFF + W + 1, :] = jnp.zeros((B, 1, W + 2, F), f32)
            pad_ref[:, :, _OFF - 1:_OFF, :] = jnp.zeros((B, H + 2, 1, F), f32)
            pad_ref[:, :, _OFF + W:_OFF + W + 1, :] = jnp.zeros((B, H + 2, 1, F), f32)
            x0 = x_ref[...].astype(jnp.float32)
            act_ref[...] = conv_bn_relu(
                x0, lambda t: w0_ref[t], g0_ref[...], b0_ref[...], pad_ref, Cin)

        # Residual block `blk`: weights for this block are the streamed slab.
        res = act_ref[...]
        h1 = conv_bn_relu(res, lambda t: wb_ref[0, t], gb_ref[0], bb_ref[0],
                          pad_ref, F)
        h2 = conv_bn_relu(h1, lambda t: wb_ref[1, t], gb_ref[1], bb_ref[1],
                          pad_ref, F, residual=res)
        act_ref[...] = h2

        # Last step: global average pool + both heads (small -> VPU, exact f32).
        @pl.when(blk == n_blocks - 1)
        def _():
            pooled = jnp.mean(h2, axis=(1, 2))                      # (B, F)
            out = jnp.sum(pooled[:, None, :] * hw_ref[...][None, :, :],
                          axis=-1) + hb_ref[...]                    # (B, P+1)
            logits = out[:, :P]
            m = jnp.max(logits, axis=1, keepdims=True)
            e = jnp.exp(logits - m)
            pol = e / jnp.sum(e, axis=1, keepdims=True)             # exact softmax
            pol_ref[...] = pol.astype(pol_ref.dtype)
            val_ref[...] = jnp.tanh(out[:, P:P + 1]).astype(val_ref.dtype)

    return kernel, PW


# ---------------------------------------------------------------------------
# Wrapper: one pallas_call for the whole forward pass (input is NCHW like PyTorch)
# ---------------------------------------------------------------------------
def dual_network_forward(params, x_nchw):
    x = jnp.transpose(x_nchw, (0, 2, 3, 1)).astype(jnp.float32)     # NCHW -> NHWC
    B, H, W, Cin = x.shape
    Fm = params["conv0_w"].shape[-1]
    P = params["policy_w"].shape[-1]
    n_blocks = len(params["blocks"])
    assert n_blocks >= 1, "kernel expects at least one residual block"

    def conv_w(w):   # (3,3,cin,cout) -> tap-major (9,cin,cout), bf16 for the MXU
        return w.reshape(9, w.shape[2], w.shape[3]).astype(jnp.bfloat16)

    w0 = conv_w(params["conv0_w"])
    g0 = params["bn0"][0].reshape(1, Fm)
    b0 = params["bn0"][1].reshape(1, Fm)

    wb, gb, bb = [], [], []
    for (w1, (g1, be1), w2, (g2, be2)) in params["blocks"]:
        wb += [conv_w(w1), conv_w(w2)]
        gb += [g1.reshape(1, Fm), g2.reshape(1, Fm)]
        bb += [be1.reshape(1, Fm), be2.reshape(1, Fm)]
    wblk = jnp.stack(wb)            # (2*nb, 9, Fm, Fm) bf16  (streamed per block)
    gblk = jnp.stack(gb)            # (2*nb, 1, Fm) f32
    bblk = jnp.stack(bb)            # (2*nb, 1, Fm) f32

    heads_w = jnp.concatenate([params["policy_w"].T, params["value_w"].T],
                              axis=0)                               # (P+1, Fm)
    heads_b = jnp.concatenate(
        [params["policy_b"], params["value_b"]]).reshape(1, P + 1)

    kernel, PW = _make_kernel(B, H, W, Cin, Fm, P, n_blocks)

    def full(shape):
        return pl.BlockSpec(shape, lambda b: (0,) * len(shape))

    def blocked(shape):
        return pl.BlockSpec(shape, lambda b: (b,) + (0,) * (len(shape) - 1))

    def nbytes(arr_or_shape, dtype=None):
        if dtype is None:
            return arr_or_shape.size * arr_or_shape.dtype.itemsize
        return math.prod(arr_or_shape) * jnp.dtype(dtype).itemsize

    scratch_b = (nbytes((B, H + 2, PW, Fm), jnp.float32)
                 + nbytes((B, H, W, Fm), jnp.float32))
    resident = sum(nbytes(a) for a in (x, w0, g0, b0, heads_w, heads_b))
    streamed = (nbytes((2, 9, Fm, Fm), jnp.bfloat16)
                + 2 * nbytes((2, 1, Fm), jnp.float32))
    outs = B * P * 4 + B * 4
    vmem_limit = int(min(max(2 * (2 * (resident + streamed) + outs) + scratch_b,
                             32 * 1024 * 1024), 96 * 1024 * 1024))

    # TODO(synk): for v7x, add a parallel batch-tile grid axis (or pl.core_map over
    # the 2-core mesh) with a cross-core BatchNorm partial-sum reduction so the
    # second TensorCore is used.
    return pl.pallas_call(
        kernel,
        grid=(n_blocks,),
        out_shape=(jax.ShapeDtypeStruct((B, P), x.dtype),
                   jax.ShapeDtypeStruct((B, 1), x.dtype)),
        in_specs=[
            full((B, H, W, Cin)),          # x (resident; read only at block 0)
            full((9, Cin, Fm)),            # conv0 weights (tap-major)
            full((1, Fm)),                 # bn0 gamma
            full((1, Fm)),                 # bn0 beta
            blocked((2, 9, Fm, Fm)),       # per-block conv weights (streamed)
            blocked((2, 1, Fm)),           # per-block bn gammas (streamed)
            blocked((2, 1, Fm)),           # per-block bn betas  (streamed)
            full((P + 1, Fm)),             # fused policy+value head weights
            full((1, P + 1)),              # fused head biases
        ],
        out_specs=(full((B, P)), full((B, 1))),
        scratch_shapes=[
            pltpu.VMEM((B, H + 2, PW, Fm), jnp.float32),   # zero-haloed activation
            pltpu.VMEM((B, H, W, Fm), jnp.float32),        # activation carried across blocks
        ],
        compiler_params=pltpu.CompilerParams(
            dimension_semantics=("arbitrary",),
            vmem_limit_bytes=vmem_limit),
    )(x, w0, g0, b0, wblk, gblk, bblk, heads_w, heads_b)


# ---------------------------------------------------------------------------
# Parameter init (deterministic, shapes from DualNetwork.__init__)
# ---------------------------------------------------------------------------
def init_params(key, num_channels, num_filters, num_residual_blocks,
                policy_output_size):
    def conv_w(k, cin, cout):
        std = (2.0 / (9 * cin)) ** 0.5
        return std * jax.random.normal(k, (3, 3, cin, cout), jnp.float32)

    def bn(k, c):
        k1, k2 = jax.random.split(k)
        gamma = 1.0 + 0.1 * jax.random.normal(k1, (c,), jnp.float32)
        beta = 0.1 * jax.random.normal(k2, (c,), jnp.float32)
        return gamma, beta

    keys = jax.random.split(key, 4 + 4 * num_residual_blocks)
    ki = iter(keys)

    params = {}
    params["conv0_w"] = conv_w(next(ki), num_channels, num_filters)
    params["bn0"] = bn(next(ki), num_filters)

    blocks = []
    for _ in range(num_residual_blocks):
        w1 = conv_w(next(ki), num_filters, num_filters)
        bn1 = bn(next(ki), num_filters)
        w2 = conv_w(next(ki), num_filters, num_filters)
        bn2 = bn(next(ki), num_filters)
        blocks.append((w1, bn1, w2, bn2))
    params["blocks"] = blocks

    kp, kv = jax.random.split(next(ki))
    std_p = (1.0 / num_filters) ** 0.5
    params["policy_w"] = std_p * jax.random.normal(
        kp, (num_filters, policy_output_size), jnp.float32)   # stored as (in, out)
    params["policy_b"] = 0.01 * jnp.arange(policy_output_size, dtype=jnp.float32)
    params["value_w"] = std_p * jax.random.normal(
        kv, (num_filters, 1), jnp.float32)
    params["value_b"] = jnp.zeros((1,), jnp.float32)
    return params


# ---------------------------------------------------------------------------
if __name__ == "__main__":
    key = jax.random.PRNGKey(0)
    k_params, k_input = jax.random.split(key)

    B, C, H, W = 2, 4, 8, 8
    num_filters = 32
    num_residual_blocks = 2
    policy_output_size = 16

    params = init_params(k_params, C, num_filters, num_residual_blocks,
                         policy_output_size)
    x = jax.random.normal(k_input, (B, C, H, W), jnp.float32)

    forward = jax.jit(dual_network_forward)
    policy, value = forward(params, x)
    jax.block_until_ready((policy, value))

    assert policy.shape == (B, policy_output_size)
    assert value.shape == (B, 1)
    assert bool(jnp.all(jnp.isfinite(policy))) and bool(jnp.all(jnp.isfinite(value)))
    # softmax rows must sum to 1, tanh output must lie in [-1, 1]
    assert bool(jnp.allclose(jnp.sum(policy, axis=1), 1.0, atol=1e-3))
    assert bool(jnp.all(jnp.abs(value) <= 1.0))

    print("KERNEL_OK")
</pallas_src>

<mosaic_0001>
module attributes {stable_mosaic.version = 11 : i64} {
  func.func @kernel(%arg0: i32, %arg1: memref<2x8x8x4xf32, #tpu.memory_space<vmem>>, %arg2: memref<9x4x32xbf16, #tpu.memory_space<vmem>>, %arg3: memref<1x32xf32, #tpu.memory_space<vmem>>, %arg4: memref<1x32xf32, #tpu.memory_space<vmem>>, %arg5: memref<2x9x32x32xbf16, #tpu.memory_space<vmem>>, %arg6: memref<2x1x32xf32, #tpu.memory_space<vmem>>, %arg7: memref<2x1x32xf32, #tpu.memory_space<vmem>>, %arg8: memref<17x32xf32, #tpu.memory_space<vmem>>, %arg9: memref<1x17xf32, #tpu.memory_space<vmem>>, %arg10: memref<2x16xf32, #tpu.memory_space<vmem>>, %arg11: memref<2x1xf32, #tpu.memory_space<vmem>>, %arg12: memref<2x10x17x32xf32, #tpu.memory_space<vmem>>, %arg13: memref<2x8x8x32xf32, #tpu.memory_space<vmem>>) attributes {dimension_semantics = [#tpu.dimension_semantics<arbitrary>], iteration_bounds = array<i64: 2>, scalar_prefetch = 0 : i64, scratch_operands = 2 : i64, tpu.core_type = #tpu.core_type<tc>, window_params = [{pipeline_mode = #tpu.pipeline_mode<synchronous>, transform_indices = @transform_0, window_bounds = array<i64: 2, 8, 8, 4>}, {pipeline_mode = #tpu.pipeline_mode<synchronous>, transform_indices = @transform_1, window_bounds = array<i64: 9, 4, 32>}, {pipeline_mode = #tpu.pipeline_mode<synchronous>, transform_indices = @transform_2, window_bounds = array<i64: 1, 32>}, {pipeline_mode = #tpu.pipeline_mode<synchronous>, transform_indices = @transform_3, window_bounds = array<i64: 1, 32>}, {transform_indices = @transform_4, window_bounds = array<i64: 2, 9, 32, 32>}, {transform_indices = @transform_5, window_bounds = array<i64: 2, 1, 32>}, {transform_indices = @transform_6, window_bounds = array<i64: 2, 1, 32>}, {pipeline_mode = #tpu.pipeline_mode<synchronous>, transform_indices = @transform_7, window_bounds = array<i64: 17, 32>}, {pipeline_mode = #tpu.pipeline_mode<synchronous>, transform_indices = @transform_8, window_bounds = array<i64: 1, 17>}, {pipeline_mode = #tpu.pipeline_mode<synchronous>, transform_indices = @transform_9, window_bounds = array<i64: 2, 16>}, {pipeline_mode = #tpu.pipeline_mode<synchronous>, transform_indices = @transform_10, window_bounds = array<i64: 2, 1>}]} {
    %c0_i32 = arith.constant 0 : i32
    %0 = arith.cmpi eq, %arg0, %c0_i32 : i32
    %1 = arith.extui %0 : i1 to i32
    %c0_i32_0 = arith.constant 0 : i32
    %2 = arith.cmpi ne, %1, %c0_i32_0 : i32
    scf.if %2 {
      %cst_195 = arith.constant 0.000000e+00 : f32
      %199 = vector.broadcast %cst_195 : f32 to vector<2x1x10x32xf32>
      %c0_196 = arith.constant 0 : index
      %c0_197 = arith.constant 0 : index
      %c7_198 = arith.constant 7 : index
      %c0_199 = arith.constant 0 : index
      %200 = vector.load %arg12[%c0_196, %c0_197, %c7_198, %c0_199] : memref<2x10x17x32xf32, #tpu.memory_space<vmem>>, vector<2x1x10x32xf32>
      tpu.vector_store %arg12[%c0_196, %c0_197, %c7_198, %c0_199], %199 {strides = array<i32>} : memref<2x10x17x32xf32, #tpu.memory_space<vmem>>, vector<2x1x10x32xf32>,
      %cst_200 = arith.constant 0.000000e+00 : f32
      %201 = vector.broadcast %cst_200 : f32 to vector<2x1x10x32xf32>
      %c0_201 = arith.constant 0 : index
      %c9_202 = arith.constant 9 : index
      %c7_203 = arith.constant 7 : index
      %c0_204 = arith.constant 0 : index
      %202 = vector.load %arg12[%c0_201, %c9_202, %c7_203, %c0_204] : memref<2x10x17x32xf32, #tpu.memory_space<vmem>>, vector<2x1x10x32xf32>
      tpu.vector_store %arg12[%c0_201, %c9_202, %c7_203, %c0_204], %201 {strides = array<i32>} : memref<2x10x17x32xf32, #tpu.memory_space<vmem>>, vector<2x1x10x32xf32>,
      %cst_205 = arith.constant 0.000000e+00 : f32
      %203 = vector.broadcast %cst_205 : f32 to vector<2x10x1x32xf32>
      %c0_206 = arith.constant 0 : index
      %c0_207 = arith.constant 0 : index
      %c7_208 = arith.constant 7 : index
      %c0_209 = arith.constant 0 : index
      %204 = vector.load %arg12[%c0_206, %c0_207, %c7_208, %c0_209] : memref<2x10x17x32xf32, #tpu.memory_space<vmem>>, vector<2x10x1x32xf32>
      tpu.vector_store %arg12[%c0_206, %c0_207, %c7_208, %c0_209], %203 {strides = array<i32>} : memref<2x10x17x32xf32, #tpu.memory_space<vmem>>, vector<2x10x1x32xf32>,
      %cst_210 = arith.constant 0.000000e+00 : f32
      %205 = vector.broadcast %cst_210 : f32 to vector<2x10x1x32xf32>
      %c0_211 = arith.constant 0 : index
      %c0_212 = arith.constant 0 : index
      %c16 = arith.constant 16 : index
      %c0_213 = arith.constant 0 : index
      %206 = vector.load %arg12[%c0_211, %c0_212, %c16, %c0_213] : memref<2x10x17x32xf32, #tpu.memory_space<vmem>>, vector<2x10x1x32xf32>
      tpu.vector_store %arg12[%c0_211, %c0_212, %c16, %c0_213], %205 {strides = array<i32>} : memref<2x10x17x32xf32, #tpu.memory_space<vmem>>, vector<2x10x1x32xf32>,
      %c0_214 = arith.constant 0 : index
      %c0_215 = arith.constant 0 : index
      %c0_216 = arith.constant 0 : index
      %c0_217 = arith.constant 0 : index
      %207 = vector.load %arg1[%c0_214, %c0_215, %c0_216, %c0_217] : memref<2x8x8x4xf32, #tpu.memory_space<vmem>>, vector<2x8x8x4xf32>
      %c0_218 = arith.constant 0 : index
      %c0_219 = arith.constant 0 : index
      %208 = vector.load %arg3[%c0_218, %c0_219] : memref<1x32xf32, #tpu.memory_space<vmem>>, vector<1x32xf32>
      %c0_220 = arith.constant 0 : index
      %c0_221 = arith.constant 0 : index
      %209 = vector.load %arg4[%c0_220, %c0_221] : memref<1x32xf32, #tpu.memory_space<vmem>>, vector<1x32xf32>
      %c0_222 = arith.constant 0 : index
      %c1_223 = arith.constant 1 : index
      %c8_224 = arith.constant 8 : index
      %c0_225 = arith.constant 0 : index
      %210 = vector.load %arg12[%c0_222, %c1_223, %c8_224, %c0_225] : memref<2x10x17x32xf32, #tpu.memory_space<vmem>>, vector<2x8x8x4xf32>
      tpu.vector_store %arg12[%c0_222, %c1_223, %c8_224, %c0_225], %207 {strides = array<i32>} : memref<2x10x17x32xf32, #tpu.memory_space<vmem>>, vector<2x8x8x4xf32>,
      %c0_226 = arith.constant 0 : index
      %c0_227 = arith.constant 0 : index
      %c7_228 = arith.constant 7 : index
      %c0_229 = arith.constant 0 : index
      %211 = vector.load %arg12[%c0_226, %c0_227, %c7_228, %c0_229] : memref<2x10x17x32xf32, #tpu.memory_space<vmem>>, vector<2x8x8x4xf32>
      %212 = vector.shape_cast %211 : vector<2x8x8x4xf32> to vector<128x4xf32>
      %213 = arith.truncf %212 : vector<128x4xf32> to vector<128x4xbf16>
      %c0_230 = arith.constant 0 : index
      %c0_231 = arith.constant 0 : index
      %c0_232 = arith.constant 0 : index
      %214 = vector.load %arg2[%c0_230, %c0_231, %c0_232] : memref<9x4x32xbf16, #tpu.memory_space<vmem>>, vector<1x4x32xbf16>
      %215 = vector.shape_cast %214 : vector<1x4x32xbf16> to vector<4x32xbf16>
      %cst_233 = arith.constant dense<0.000000e+00> : vector<128x32xf32>
      %216 = tpu.matmul %213, %215, %cst_233 {dimension_numbers = #tpu.dot_dimension_numbers<[1], [0], [0], [1], [0, 0, 1, 1], [], []>} : vector<128x4xbf16>, vector<4x32xbf16>, vector<128x32xf32> -> vector<128x32xf32>
      %c0_234 = arith.constant 0 : index
      %c0_235 = arith.constant 0 : index
      %c8_236 = arith.constant 8 : index
      %c0_237 = arith.constant 0 : index
      %217 = vector.load %arg12[%c0_234, %c0_235, %c8_236, %c0_237] : memref<2x10x17x32xf32, #tpu.memory_space<vmem>>, vector<2x8x8x4xf32>
      %218 = vector.shape_cast %217 : vector<2x8x8x4xf32> to vector<128x4xf32>
      %219 = arith.truncf %218 : vector<128x4xf32> to vector<128x4xbf16>
      %c1_238 = arith.constant 1 : index
      %c0_239 = arith.constant 0 : index
      %c0_240 = arith.constant 0 : index
      %220 = vector.load %arg2[%c1_238, %c0_239, %c0_240] : memref<9x4x32xbf16, #tpu.memory_space<vmem>>, vector<1x4x32xbf16>
      %221 = vector.shape_cast %220 : vector<1x4x32xbf16> to vector<4x32xbf16>
      %cst_241 = arith.constant dense<0.000000e+00> : vector<128x32xf32>
      %222 = tpu.matmul %219, %221, %cst_241 {dimension_numbers = #tpu.dot_dimension_numbers<[1], [0], [0], [1], [0, 0, 1, 1], [], []>} : vector<128x4xbf16>, vector<4x32xbf16>, vector<128x32xf32> -> vector<128x32xf32>
      %223 = arith.addf %216, %222 : vector<128x32xf32>
      %c0_242 = arith.constant 0 : index
      %c0_243 = arith.constant 0 : index
      %c9_244 = arith.constant 9 : index
      %c0_245 = arith.constant 0 : index
      %224 = vector.load %arg12[%c0_242, %c0_243, %c9_244, %c0_245] : memref<2x10x17x32xf32, #tpu.memory_space<vmem>>, vector<2x8x8x4xf32>
      %225 = vector.shape_cast %224 : vector<2x8x8x4xf32> to vector<128x4xf32>
      %226 = arith.truncf %225 : vector<128x4xf32> to vector<128x4xbf16>
      %c2_246 = arith.constant 2 : index
      %c0_247 = arith.constant 0 : index
      %c0_248 = arith.constant 0 : index
      %227 = vector.load %arg2[%c2_246, %c0_247, %c0_248] : memref<9x4x32xbf16, #tpu.memory_space<vmem>>, vector<1x4x32xbf16>
      %228 = vector.shape_cast %227 : vector<1x4x32xbf16> to vector<4x32xbf16>
      %cst_249 = arith.constant dense<0.000000e+00> : vector<128x32xf32>
      %229 = tpu.matmul %226, %228, %cst_249 {dimension_numbers = #tpu.dot_dimension_numbers<[1], [0], [0], [1], [0, 0, 1, 1], [], []>} : vector<128x4xbf16>, vector<4x32xbf16>, vector<128x32xf32> -> vector<128x32xf32>
      %230 = arith.addf %223, %229 : vector<128x32xf32>
      %c0_250 = arith.constant 0 : index
      %c1_251 = arith.constant 1 : index
      %c7_252 = arith.constant 7 : index
      %c0_253 = arith.constant 0 : index
      %231 = vector.load %arg12[%c0_250, %c1_251, %c7_252, %c0_253] : memref<2x10x17x32xf32, #tpu.memory_space<vmem>>, vector<2x8x8x4xf32>
      %232 = vector.shape_cast %231 : vector<2x8x8x4xf32> to vector<128x4xf32>
      %233 = arith.truncf %232 : vector<128x4xf32> to vector<128x4xbf16>
      %c3_254 = arith.constant 3 : index
      %c0_255 = arith.constant 0 : index
      %c0_256 = arith.constant 0 : index
      %234 = vector.load %arg2[%c3_254, %c0_255, %c0_256] : memref<9x4x32xbf16, #tpu.memory_space<vmem>>, vector<1x4x32xbf16>
      %235 = vector.shape_cast %234 : vector<1x4x32xbf16> to vector<4x32xbf16>
      %cst_257 = arith.constant dense<0.000000e+00> : vector<128x32xf32>
      %236 = tpu.matmul %233, %235, %cst_257 {dimension_numbers = #tpu.dot_dimension_numbers<[1], [0], [0], [1], [0, 0, 1, 1], [], []>} : vector<128x4xbf16>, vector<4x32xbf16>, vector<128x32xf32> -> vector<128x32xf32>
      %237 = arith.addf %230, %236 : vector<128x32xf32>
      %c0_258 = arith.constant 0 : index
      %c1_259 = arith.constant 1 : index
      %c8_260 = arith.constant 8 : index
      %c0_261 = arith.constant 0 : index
      %238 = vector.load %arg12[%c0_258, %c1_259, %c8_260, %c0_261] : memref<2x10x17x32xf32, #tpu.memory_space<vmem>>, vector<2x8x8x4xf32>
      %239 = vector.shape_cast %238 : vector<2x8x8x4xf32> to vector<128x4xf32>
      %240 = arith.truncf %239 : vector<128x4xf32> to vector<128x4xbf16>
      %c4_262 = arith.constant 4 : index
      %c0_263 = arith.constant 0 : index
      %c0_264 = arith.constant 0 : index
      %241 = vector.load %arg2[%c4_262, %c0_263, %c0_264] : memref<9x4x32xbf16, #tpu.memory_space<vmem>>, vector<1x4x32xbf16>
      %242 = vector.shape_cast %241 : vector<1x4x32xbf16> to vector<4x32xbf16>
      %cst_265 = arith.constant dense<0.000000e+00> : vector<128x32xf32>
      %243 = tpu.matmul %240, %242, %cst_265 {dimension_numbers = #tpu.dot_dimension_numbers<[1], [0], [0], [1], [0, 0, 1, 1], [], []>} : vector<128x4xbf16>, vector<4x32xbf16>, vector<128x32xf32> -> vector<128x32xf32>
      %244 = arith.addf %237, %243 : vector<128x32xf32>
      %c0_266 = arith.constant 0 : index
      %c1_267 = arith.constant 1 : index
      %c9_268 = arith.constant 9 : index
      %c0_269 = arith.constant 0 : index
      %245 = vector.load %arg12[%c0_266, %c1_267, %c9_268, %c0_269] : memref<2x10x17x32xf32, #tpu.memory_space<vmem>>, vector<2x8x8x4xf32>
      %246 = vector.shape_cast %245 : vector<2x8x8x4xf32> to vector<128x4xf32>
      %247 = arith.truncf %246 : vector<128x4xf32> to vector<128x4xbf16>
      %c5_270 = arith.constant 5 : index
      %c0_271 = arith.constant 0 : index
      %c0_272 = arith.constant 0 : index
      %248 = vector.load %arg2[%c5_270, %c0_271, %c0_272] : memref<9x4x32xbf16, #tpu.memory_space<vmem>>, vector<1x4x32xbf16>
      %249 = vector.shape_cast %248 : vector<1x4x32xbf16> to vector<4x32xbf16>
      %cst_273 = arith.constant dense<0.000000e+00> : vector<128x32xf32>
      %250 = tpu.matmul %247, %249, %cst_273 {dimension_numbers = #tpu.dot_dimension_numbers<[1], [0], [0], [1], [0, 0, 1, 1], [], []>} : vector<128x4xbf16>, vector<4x32xbf16>, vector<128x32xf32> -> vector<128x32xf32>
      %251 = arith.addf %244, %250 : vector<128x32xf32>
      %c0_274 = arith.constant 0 : index
      %c2_275 = arith.constant 2 : index
      %c7_276 = arith.constant 7 : index
      %c0_277 = arith.constant 0 : index
      %252 = vector.load %arg12[%c0_274, %c2_275, %c7_276, %c0_277] : memref<2x10x17x32xf32, #tpu.memory_space<vmem>>, vector<2x8x8x4xf32>
      %253 = vector.shape_cast %252 : vector<2x8x8x4xf32> to vector<128x4xf32>
      %254 = arith.truncf %253 : vector<128x4xf32> to vector<128x4xbf16>
      %c6_278 = arith.constant 6 : index
      %c0_279 = arith.constant 0 : index
      %c0_280 = arith.constant 0 : index
      %255 = vector.load %arg2[%c6_278, %c0_279, %c0_280] : memref<9x4x32xbf16, #tpu.memory_space<vmem>>, vector<1x4x32xbf16>
      %256 = vector.shape_cast %255 : vector<1x4x32xbf16> to vector<4x32xbf16>
      %cst_281 = arith.constant dense<0.000000e+00> : vector<128x32xf32>
      %257 = tpu.matmul %254, %256, %cst_281 {dimension_numbers = #tpu.dot_dimension_numbers<[1], [0], [0], [1], [0, 0, 1, 1], [], []>} : vector<128x4xbf16>, vector<4x32xbf16>, vector<128x32xf32> -> vector<128x32xf32>
      %258 = arith.addf %251, %257 : vector<128x32xf32>
      %c0_282 = arith.constant 0 : index
      %c2_283 = arith.constant 2 : index
      %c8_284 = arith.constant 8 : index
      %c0_285 = arith.constant 0 : index
      %259 = vector.load %arg12[%c0_282, %c2_283, %c8_284, %c0_285] : memref<2x10x17x32xf32, #tpu.memory_space<vmem>>, vector<2x8x8x4xf32>
      %260 = vector.shape_cast %259 : vector<2x8x8x4xf32> to vector<128x4xf32>
      %261 = arith.truncf %260 : vector<128x4xf32> to vector<128x4xbf16>
      %c7_286 = arith.constant 7 : index
      %c0_287 = arith.constant 0 : index
      %c0_288 = arith.constant 0 : index
      %262 = vector.load %arg2[%c7_286, %c0_287, %c0_288] : memref<9x4x32xbf16, #tpu.memory_space<vmem>>, vector<1x4x32xbf16>
      %263 = vector.shape_cast %262 : vector<1x4x32xbf16> to vector<4x32xbf16>
      %cst_289 = arith.constant dense<0.000000e+00> : vector<128x32xf32>
      %264 = tpu.matmul %261, %263, %cst_289 {dimension_numbers = #tpu.dot_dimension_numbers<[1], [0], [0], [1], [0, 0, 1, 1], [], []>} : vector<128x4xbf16>, vector<4x32xbf16>, vector<128x32xf32> -> vector<128x32xf32>
      %265 = arith.addf %258, %264 : vector<128x32xf32>
      %c0_290 = arith.constant 0 : index
      %c2_291 = arith.constant 2 : index
      %c9_292 = arith.constant 9 : index
      %c0_293 = arith.constant 0 : index
      %266 = vector.load %arg12[%c0_290, %c2_291, %c9_292, %c0_293] : memref<2x10x17x32xf32, #tpu.memory_space<vmem>>, vector<2x8x8x4xf32>
      %267 = vector.shape_cast %266 : vector<2x8x8x4xf32> to vector<128x4xf32>
      %268 = arith.truncf %267 : vector<128x4xf32> to vector<128x4xbf16>
      %c8_294 = arith.constant 8 : index
      %c0_295 = arith.constant 0 : index
      %c0_296 = arith.constant 0 : index
      %269 = vector.load %arg2[%c8_294, %c0_295, %c0_296] : memref<9x4x32xbf16, #tpu.memory_space<vmem>>, vector<1x4x32xbf16>
      %270 = vector.shape_cast %269 : vector<1x4x32xbf16> to vector<4x32xbf16>
      %cst_297 = arith.constant dense<0.000000e+00> : vector<128x32xf32>
      %271 = tpu.matmul %268, %270, %cst_297 {dimension_numbers = #tpu.dot_dimension_numbers<[1], [0], [0], [1], [0, 0, 1, 1], [], []>} : vector<128x4xbf16>, vector<4x32xbf16>, vector<128x32xf32> -> vector<128x32xf32>
      %272 = arith.addf %265, %271 : vector<128x32xf32>
      %cst_298 = arith.constant dense<0.000000e+00> : vector<32xf32>
      %273 = vector.multi_reduction <add>, %272, %cst_298 [0] : vector<128x32xf32> to vector<32xf32>
      %274 = vector.shape_cast %273 : vector<32xf32> to vector<1x32xf32>
      %275 = arith.mulf %272, %272 : vector<128x32xf32>
      %cst_299 = arith.constant dense<0.000000e+00> : vector<32xf32>
      %276 = vector.multi_reduction <add>, %275, %cst_299 [0] : vector<128x32xf32> to vector<32xf32>
      %277 = vector.shape_cast %276 : vector<32xf32> to vector<1x32xf32>
      %cst_300 = arith.constant 7.812500e-03 : f32
      %278 = vector.broadcast %cst_300 : f32 to vector<1x32xf32>
      %279 = arith.mulf %274, %278 : vector<1x32xf32>
      %cst_301 = arith.constant 7.812500e-03 : f32
      %280 = vector.broadcast %cst_301 : f32 to vector<1x32xf32>
      %281 = arith.mulf %277, %280 : vector<1x32xf32>
      %282 = arith.mulf %279, %279 : vector<1x32xf32>
      %283 = arith.subf %281, %282 : vector<1x32xf32>
      %cst_302 = arith.constant 0.000000e+00 : f32
      %284 = vector.broadcast %cst_302 : f32 to vector<1x32xf32>
      %285 = arith.maximumf %283, %284 : vector<1x32xf32>
      %cst_303 = arith.constant 9.99999974E-6 : f32
      %286 = vector.broadcast %cst_303 : f32 to vector<1x32xf32>
      %287 = arith.addf %285, %286 : vector<1x32xf32>
      %288 = math.rsqrt %287 : vector<1x32xf32>
      %289 = arith.mulf %208, %288 : vector<1x32xf32>
      %290 = arith.mulf %279, %289 : vector<1x32xf32>
      %291 = arith.subf %209, %290 : vector<1x32xf32>
      %292 = vector.shape_cast %272 : vector<128x32xf32> to vector<2x8x8x32xf32>
      %293 = vector.shape_cast %289 : vector<1x32xf32> to vector<1x1x1x32xf32>
      %294 = vector.broadcast %293 : vector<1x1x1x32xf32> to vector<2x8x8x32xf32>
      %295 = arith.mulf %292, %294 : vector<2x8x8x32xf32>
      %296 = vector.shape_cast %291 : vector<1x32xf32> to vector<1x1x1x32xf32>
      %297 = vector.broadcast %296 : vector<1x1x1x32xf32> to vector<2x8x8x32xf32>
      %298 = arith.addf %295, %297 : vector<2x8x8x32xf32>
      %cst_304 = arith.constant 0.000000e+00 : f32
      %299 = vector.broadcast %cst_304 : f32 to vector<2x8x8x32xf32>
      %300 = arith.maximumf %298, %299 : vector<2x8x8x32xf32>
      %c0_305 = arith.constant 0 : index
      %c0_306 = arith.constant 0 : index
      %c0_307 = arith.constant 0 : index
      %c0_308 = arith.constant 0 : index
      %301 = vector.load %arg13[%c0_305, %c0_306, %c0_307, %c0_308] : memref<2x8x8x32xf32, #tpu.memory_space<vmem>>, vector<2x8x8x32xf32>
      tpu.vector_store %arg13[%c0_305, %c0_306, %c0_307, %c0_308], %300 {strides = array<i32>} : memref<2x8x8x32xf32, #tpu.memory_space<vmem>>, vector<2x8x8x32xf32>,
    } else {
    }
    %c0 = arith.constant 0 : index
    %c0_1 = arith.constant 0 : index
    %c0_2 = arith.constant 0 : index
    %c0_3 = arith.constant 0 : index
    %3 = vector.load %arg13[%c0, %c0_1, %c0_2, %c0_3] : memref<2x8x8x32xf32, #tpu.memory_space<vmem>>, vector<2x8x8x32xf32>
    %c0_4 = arith.constant 0 : index
    %c0_5 = arith.constant 0 : index
    %c0_6 = arith.constant 0 : index
    %4 = vector.load %arg6[%c0_4, %c0_5, %c0_6] : memref<2x1x32xf32, #tpu.memory_space<vmem>>, vector<1x1x32xf32>
    %5 = vector.shape_cast %4 : vector<1x1x32xf32> to vector<1x32xf32>
    %c0_7 = arith.constant 0 : index
    %c0_8 = arith.constant 0 : index
    %c0_9 = arith.constant 0 : index
    %6 = vector.load %arg7[%c0_7, %c0_8, %c0_9] : memref<2x1x32xf32, #tpu.memory_space<vmem>>, vector<1x1x32xf32>
    %7 = vector.shape_cast %6 : vector<1x1x32xf32> to vector<1x32xf32>
    %c0_10 = arith.constant 0 : index
    %c1 = arith.constant 1 : index
    %c8 = arith.constant 8 : index
    %c0_11 = arith.constant 0 : index
    %8 = vector.load %arg12[%c0_10, %c1, %c8, %c0_11] : memref<2x10x17x32xf32, #tpu.memory_space<vmem>>, vector<2x8x8x32xf32>
    tpu.vector_store %arg12[%c0_10, %c1, %c8, %c0_11], %3 {strides = array<i32>} : memref<2x10x17x32xf32, #tpu.memory_space<vmem>>, vector<2x8x8x32xf32>,
    %c0_12 = arith.constant 0 : index
    %c0_13 = arith.constant 0 : index
    %c7 = arith.constant 7 : index
    %c0_14 = arith.constant 0 : index
    %9 = vector.load %arg12[%c0_12, %c0_13, %c7, %c0_14] : memref<2x10x17x32xf32, #tpu.memory_space<vmem>>, vector<2x8x8x32xf32>
    %10 = vector.shape_cast %9 : vector<2x8x8x32xf32> to vector<128x32xf32>
    %11 = arith.truncf %10 : vector<128x32xf32> to vector<128x32xbf16>
    %c0_15 = arith.constant 0 : index
    %c0_16 = arith.constant 0 : index
    %c0_17 = arith.constant 0 : index
    %c0_18 = arith.constant 0 : index
    %12 = vector.load %arg5[%c0_15, %c0_16, %c0_17, %c0_18] : memref<2x9x32x32xbf16, #tpu.memory_space<vmem>>, vector<1x1x32x32xbf16>
    %13 = vector.shape_cast %12 : vector<1x1x32x32xbf16> to vector<32x32xbf16>
    %cst = arith.constant dense<0.000000e+00> : vector<128x32xf32>
    %14 = tpu.matmul %11, %13, %cst {dimension_numbers = #tpu.dot_dimension_numbers<[1], [0], [0], [1], [0, 0, 1, 1], [], []>} : vector<128x32xbf16>, vector<32x32xbf16>, vector<128x32xf32> -> vector<128x32xf32>
    %c0_19 = arith.constant 0 : index
    %c0_20 = arith.constant 0 : index
    %c8_21 = arith.constant 8 : index
    %c0_22 = arith.constant 0 : index
    %15 = vector.load %arg12[%c0_19, %c0_20, %c8_21, %c0_22] : memref<2x10x17x32xf32, #tpu.memory_space<vmem>>, vector<2x8x8x32xf32>
    %16 = vector.shape_cast %15 : vector<2x8x8x32xf32> to vector<128x32xf32>
    %17 = arith.truncf %16 : vector<128x32xf32> to vector<128x32xbf16>
    %c0_23 = arith.constant 0 : index
    %c1_24 = arith.constant 1 : index
    %c0_25 = arith.constant 0 : index
    %c0_26 = arith.constant 0 : index
    %18 = vector.load %arg5[%c0_23, %c1_24, %c0_25, %c0_26] : memref<2x9x32x32xbf16, #tpu.memory_space<vmem>>, vector<1x1x32x32xbf16>
    %19 = vector.shape_cast %18 : vector<1x1x32x32xbf16> to vector<32x32xbf16>
    %cst_27 = arith.constant dense<0.000000e+00> : vector<128x32xf32>
    %20 = tpu.matmul %17, %19, %cst_27 {dimension_numbers = #tpu.dot_dimension_numbers<[1], [0], [0], [1], [0, 0, 1, 1], [], []>} : vector<128x32xbf16>, vector<32x32xbf16>, vector<128x32xf32> -> vector<128x32xf32>
    %21 = arith.addf %14, %20 : vector<128x32xf32>
    %c0_28 = arith.constant 0 : index
    %c0_29 = arith.constant 0 : index
    %c9 = arith.constant 9 : index
    %c0_30 = arith.constant 0 : index
    %22 = vector.load %arg12[%c0_28, %c0_29, %c9, %c0_30] : memref<2x10x17x32xf32, #tpu.memory_space<vmem>>, vector<2x8x8x32xf32>
    %23 = vector.shape_cast %22 : vector<2x8x8x32xf32> to vector<128x32xf32>
    %24 = arith.truncf %23 : vector<128x32xf32> to vector<128x32xbf16>
    %c0_31 = arith.constant 0 : index
    %c2 = arith.constant 2 : index
    %c0_32 = arith.constant 0 : index
    %c0_33 = arith.constant 0 : index
    %25 = vector.load %arg5[%c0_31, %c2, %c0_32, %c0_33] : memref<2x9x32x32xbf16, #tpu.memory_space<vmem>>, vector<1x1x32x32xbf16>
    %26 = vector.shape_cast %25 : vector<1x1x32x32xbf16> to vector<32x32xbf16>
    %cst_34 = arith.constant dense<0.000000e+00> : vector<128x32xf32>
    %27 = tpu.matmul %24, %26, %cst_34 {dimension_numbers = #tpu.dot_dimension_numbers<[1], [0], [0], [1], [0, 0, 1, 1], [], []>} : vector<128x32xbf16>, vector<32x32xbf16>, vector<128x32xf32> -> vector<128x32xf32>
    %28 = arith.addf %21, %27 : vector<128x32xf32>
    %c0_35 = arith.constant 0 : index
    %c1_36 = arith.constant 1 : index
    %c7_37 = arith.constant 7 : index
    %c0_38 = arith.constant 0 : index
    %29 = vector.load %arg12[%c0_35, %c1_36, %c7_37, %c0_38] : memref<2x10x17x32xf32, #tpu.memory_space<vmem>>, vector<2x8x8x32xf32>
    %30 = vector.shape_cast %29 : vector<2x8x8x32xf32> to vector<128x32xf32>
    %31 = arith.truncf %30 : vector<128x32xf32> to vector<128x32xbf16>
    %c0_39 = arith.constant 0 : index
    %c3 = arith.constant 3 : index
    %c0_40 = arith.constant 0 : index
    %c0_41 = arith.constant 0 : index
    %32 = vector.load %arg5[%c0_39, %c3, %c0_40, %c0_41] : memref<2x9x32x32xbf16, #tpu.memory_space<vmem>>, vector<1x1x32x32xbf16>
    %33 = vector.shape_cast %32 : vector<1x1x32x32xbf16> to vector<32x32xbf16>
    %cst_42 = arith.constant dense<0.000000e+00> : vector<128x32xf32>
    %34 = tpu.matmul %31, %33, %cst_42 {dimension_numbers = #tpu.dot_dimension_numbers<[1], [0], [0], [1], [0, 0, 1, 1], [], []>} : vector<128x32xbf16>, vector<32x32xbf16>, vector<128x32xf32> -> vector<128x32xf32>
    %35 = arith.addf %28, %34 : vector<128x32xf32>
    %c0_43 = arith.constant 0 : index
    %c1_44 = arith.constant 1 : index
    %c8_45 = arith.constant 8 : index
    %c0_46 = arith.constant 0 : index
    %36 = vector.load %arg12[%c0_43, %c1_44, %c8_45, %c0_46] : memref<2x10x17x32xf32, #tpu.memory_space<vmem>>, vector<2x8x8x32xf32>
    %37 = vector.shape_cast %36 : vector<2x8x8x32xf32> to vector<128x32xf32>
    %38 = arith.truncf %37 : vector<128x32xf32> to vector<128x32xbf16>
    %c0_47 = arith.constant 0 : index
    %c4 = arith.constant 4 : index
    %c0_48 = arith.constant 0 : index
    %c0_49 = arith.constant 0 : index
    %39 = vector.load %arg5[%c0_47, %c4, %c0_48, %c0_49] : memref<2x9x32x32xbf16, #tpu.memory_space<vmem>>, vector<1x1x32x32xbf16>
    %40 = vector.shape_cast %39 : vector<1x1x32x32xbf16> to vector<32x32xbf16>
    %cst_50 = arith.constant dense<0.000000e+00> : vector<128x32xf32>
    %41 = tpu.matmul %38, %40, %cst_50 {dimension_numbers = #tpu.dot_dimension_numbers<[1], [0], [0], [1], [0, 0, 1, 1], [], []>} : vector<128x32xbf16>, vector<32x32xbf16>, vector<128x32xf32> -> vector<128x32xf32>
    %42 = arith.addf %35, %41 : vector<128x32xf32>
    %c0_51 = arith.constant 0 : index
    %c1_52 = arith.constant 1 : index
    %c9_53 = arith.constant 9 : index
    %c0_54 = arith.constant 0 : index
    %43 = vector.load %arg12[%c0_51, %c1_52, %c9_53, %c0_54] : memref<2x10x17x32xf32, #tpu.memory_space<vmem>>, vector<2x8x8x32xf32>
    %44 = vector.shape_cast %43 : vector<2x8x8x32xf32> to vector<128x32xf32>
    %45 = arith.truncf %44 : vector<128x32xf32> to vector<128x32xbf16>
    %c0_55 = arith.constant 0 : index
    %c5 = arith.constant 5 : index
    %c0_56 = arith.constant 0 : index
    %c0_57 = arith.constant 0 : index
    %46 = vector.load %arg5[%c0_55, %c5, %c0_56, %c0_57] : memref<2x9x32x32xbf16, #tpu.memory_space<vmem>>, vector<1x1x32x32xbf16>
    %47 = vector.shape_cast %46 : vector<1x1x32x32xbf16> to vector<32x32xbf16>
    %cst_58 = arith.constant dense<0.000000e+00> : vector<128x32xf32>
    %48 = tpu.matmul %45, %47, %cst_58 {dimension_numbers = #tpu.dot_dimension_numbers<[1], [0], [0], [1], [0, 0, 1, 1], [], []>} : vector<128x32xbf16>, vector<32x32xbf16>, vector<128x32xf32> -> vector<128x32xf32>
    %49 = arith.addf %42, %48 : vector<128x32xf32>
    %c0_59 = arith.constant 0 : index
    %c2_60 = arith.constant 2 : index
    %c7_61 = arith.constant 7 : index
    %c0_62 = arith.constant 0 : index
    %50 = vector.load %arg12[%c0_59, %c2_60, %c7_61, %c0_62] : memref<2x10x17x32xf32, #tpu.memory_space<vmem>>, vector<2x8x8x32xf32>
    %51 = vector.shape_cast %50 : vector<2x8x8x32xf32> to vector<128x32xf32>
    %52 = arith.truncf %51 : vector<128x32xf32> to vector<128x32xbf16>
    %c0_63 = arith.constant 0 : index
    %c6 = arith.constant 6 : index
    %c0_64 = arith.constant 0 : index
    %c0_65 = arith.constant 0 : index
    %53 = vector.load %arg5[%c0_63, %c6, %c0_64, %c0_65] : memref<2x9x32x32xbf16, #tpu.memory_space<vmem>>, vector<1x1x32x32xbf16>
    %54 = vector.shape_cast %53 : vector<1x1x32x32xbf16> to vector<32x32xbf16>
    %cst_66 = arith.constant dense<0.000000e+00> : vector<128x32xf32>
    %55 = tpu.matmul %52, %54, %cst_66 {dimension_numbers = #tpu.dot_dimension_numbers<[1], [0], [0], [1], [0, 0, 1, 1], [], []>} : vector<128x32xbf16>, vector<32x32xbf16>, vector<128x32xf32> -> vector<128x32xf32>
    %56 = arith.addf %49, %55 : vector<128x32xf32>
    %c0_67 = arith.constant 0 : index
    %c2_68 = arith.constant 2 : index
    %c8_69 = arith.constant 8 : index
    %c0_70 = arith.constant 0 : index
    %57 = vector.load %arg12[%c0_67, %c2_68, %c8_69, %c0_70] : memref<2x10x17x32xf32, #tpu.memory_space<vmem>>, vector<2x8x8x32xf32>
    %58 = vector.shape_cast %57 : vector<2x8x8x32xf32> to vector<128x32xf32>
    %59 = arith.truncf %58 : vector<128x32xf32> to vector<128x32xbf16>
    %c0_71 = arith.constant 0 : index
    %c7_72 = arith.constant 7 : index
    %c0_73 = arith.constant 0 : index
    %c0_74 = arith.constant 0 : index
    %60 = vector.load %arg5[%c0_71, %c7_72, %c0_73, %c0_74] : memref<2x9x32x32xbf16, #tpu.memory_space<vmem>>, vector<1x1x32x32xbf16>
    %61 = vector.shape_cast %60 : vector<1x1x32x32xbf16> to vector<32x32xbf16>
    %cst_75 = arith.constant dense<0.000000e+00> : vector<128x32xf32>
    %62 = tpu.matmul %59, %61, %cst_75 {dimension_numbers = #tpu.dot_dimension_numbers<[1], [0], [0], [1], [0, 0, 1, 1], [], []>} : vector<128x32xbf16>, vector<32x32xbf16>, vector<128x32xf32> -> vector<128x32xf32>
    %63 = arith.addf %56, %62 : vector<128x32xf32>
    %c0_76 = arith.constant 0 : index
    %c2_77 = arith.constant 2 : index
    %c9_78 = arith.constant 9 : index
    %c0_79 = arith.constant 0 : index
    %64 = vector.load %arg12[%c0_76, %c2_77, %c9_78, %c0_79] : memref<2x10x17x32xf32, #tpu.memory_space<vmem>>, vector<2x8x8x32xf32>
    %65 = vector.shape_cast %64 : vector<2x8x8x32xf32> to vector<128x32xf32>
    %66 = arith.truncf %65 : vector<128x32xf32> to vector<128x32xbf16>
    %c0_80 = arith.constant 0 : index
    %c8_81 = arith.constant 8 : index
    %c0_82 = arith.constant 0 : index
    %c0_83 = arith.constant 0 : index
    %67 = vector.load %arg5[%c0_80, %c8_81, %c0_82, %c0_83] : memref<2x9x32x32xbf16, #tpu.memory_space<vmem>>, vector<1x1x32x32xbf16>
    %68 = vector.shape_cast %67 : vector<1x1x32x32xbf16> to vector<32x32xbf16>
    %cst_84 = arith.constant dense<0.000000e+00> : vector<128x32xf32>
    %69 = tpu.matmul %66, %68, %cst_84 {dimension_numbers = #tpu.dot_dimension_numbers<[1], [0], [0], [1], [0, 0, 1, 1], [], []>} : vector<128x32xbf16>, vector<32x32xbf16>, vector<128x32xf32> -> vector<128x32xf32>
    %70 = arith.addf %63, %69 : vector<128x32xf32>
    %cst_85 = arith.constant dense<0.000000e+00> : vector<32xf32>
    %71 = vector.multi_reduction <add>, %70, %cst_85 [0] : vector<128x32xf32> to vector<32xf32>
    %72 = vector.shape_cast %71 : vector<32xf32> to vector<1x32xf32>
    %73 = arith.mulf %70, %70 : vector<128x32xf32>
    %cst_86 = arith.constant dense<0.000000e+00> : vector<32xf32>
    %74 = vector.multi_reduction <add>, %73, %cst_86 [0] : vector<128x32xf32> to vector<32xf32>
    %75 = vector.shape_cast %74 : vector<32xf32> to vector<1x32xf32>
    %cst_87 = arith.constant 7.812500e-03 : f32
    %76 = vector.broadcast %cst_87 : f32 to vector<1x32xf32>
    %77 = arith.mulf %72, %76 : vector<1x32xf32>
    %cst_88 = arith.constant 7.812500e-03 : f32
    %78 = vector.broadcast %cst_88 : f32 to vector<1x32xf32>
    %79 = arith.mulf %75, %78 : vector<1x32xf32>
    %80 = arith.mulf %77, %77 : vector<1x32xf32>
    %81 = arith.subf %79, %80 : vector<1x32xf32>
    %cst_89 = arith.constant 0.000000e+00 : f32
    %82 = vector.broadcast %cst_89 : f32 to vector<1x32xf32>
    %83 = arith.maximumf %81, %82 : vector<1x32xf32>
    %cst_90 = arith.constant 9.99999974E-6 : f32
    %84 = vector.broadcast %cst_90 : f32 to vector<1x32xf32>
    %85 = arith.addf %83, %84 : vector<1x32xf32>
    %86 = math.rsqrt %85 : vector<1x32xf32>
    %87 = arith.mulf %5, %86 : vector<1x32xf32>
    %88 = arith.mulf %77, %87 : vector<1x32xf32>
    %89 = arith.subf %7, %88 : vector<1x32xf32>
    %90 = vector.shape_cast %70 : vector<128x32xf32> to vector<2x8x8x32xf32>
    %91 = vector.shape_cast %87 : vector<1x32xf32> to vector<1x1x1x32xf32>
    %92 = vector.broadcast %91 : vector<1x1x1x32xf32> to vector<2x8x8x32xf32>
    %93 = arith.mulf %90, %92 : vector<2x8x8x32xf32>
    %94 = vector.shape_cast %89 : vector<1x32xf32> to vector<1x1x1x32xf32>
    %95 = vector.broadcast %94 : vector<1x1x1x32xf32> to vector<2x8x8x32xf32>
    %96 = arith.addf %93, %95 : vector<2x8x8x32xf32>
    %cst_91 = arith.constant 0.000000e+00 : f32
    %97 = vector.broadcast %cst_91 : f32 to vector<2x8x8x32xf32>
    %98 = arith.maximumf %96, %97 : vector<2x8x8x32xf32>
    %c1_92 = arith.constant 1 : index
    %c0_93 = arith.constant 0 : index
    %c0_94 = arith.constant 0 : index
    %99 = vector.load %arg6[%c1_92, %c0_93, %c0_94] : memref<2x1x32xf32, #tpu.memory_space<vmem>>, vector<1x1x32xf32>
    %100 = vector.shape_cast %99 : vector<1x1x32xf32> to vector<1x32xf32>
    %c1_95 = arith.constant 1 : index
    %c0_96 = arith.constant 0 : index
    %c0_97 = arith.constant 0 : index
    %101 = vector.load %arg7[%c1_95, %c0_96, %c0_97] : memref<2x1x32xf32, #tpu.memory_space<vmem>>, vector<1x1x32xf32>
    %102 = vector.shape_cast %101 : vector<1x1x32xf32> to vector<1x32xf32>
    %c0_98 = arith.constant 0 : index
    %c1_99 = arith.constant 1 : index
    %c8_100 = arith.constant 8 : index
    %c0_101 = arith.constant 0 : index
    %103 = vector.load %arg12[%c0_98, %c1_99, %c8_100, %c0_101] : memref<2x10x17x32xf32, #tpu.memory_space<vmem>>, vector<2x8x8x32xf32>
    tpu.vector_store %arg12[%c0_98, %c1_99, %c8_100, %c0_101], %98 {strides = array<i32>} : memref<2x10x17x32xf32, #tpu.memory_space<vmem>>, vector<2x8x8x32xf32>,
    %c0_102 = arith.constant 0 : index
    %c0_103 = arith.constant 0 : index
    %c7_104 = arith.constant 7 : index
    %c0_105 = arith.constant 0 : index
    %104 = vector.load %arg12[%c0_102, %c0_103, %c7_104, %c0_105] : memref<2x10x17x32xf32, #tpu.memory_space<vmem>>, vector<2x8x8x32xf32>
    %105 = vector.shape_cast %104 : vector<2x8x8x32xf32> to vector<128x32xf32>
    %106 = arith.truncf %105 : vector<128x32xf32> to vector<128x32xbf16>
    %c1_106 = arith.constant 1 : index
    %c0_107 = arith.constant 0 : index
    %c0_108 = arith.constant 0 : index
    %c0_109 = arith.constant 0 : index
    %107 = vector.load %arg5[%c1_106, %c0_107, %c0_108, %c0_109] : memref<2x9x32x32xbf16, #tpu.memory_space<vmem>>, vector<1x1x32x32xbf16>
    %108 = vector.shape_cast %107 : vector<1x1x32x32xbf16> to vector<32x32xbf16>
    %cst_110 = arith.constant dense<0.000000e+00> : vector<128x32xf32>
    %109 = tpu.matmul %106, %108, %cst_110 {dimension_numbers = #tpu.dot_dimension_numbers<[1], [0], [0], [1], [0, 0, 1, 1], [], []>} : vector<128x32xbf16>, vector<32x32xbf16>, vector<128x32xf32> -> vector<128x32xf32>
    %c0_111 = arith.constant 0 : index
    %c0_112 = arith.constant 0 : index
    %c8_113 = arith.constant 8 : index
    %c0_114 = arith.constant 0 : index
    %110 = vector.load %arg12[%c0_111, %c0_112, %c8_113, %c0_114] : memref<2x10x17x32xf32, #tpu.memory_space<vmem>>, vector<2x8x8x32xf32>
    %111 = vector.shape_cast %110 : vector<2x8x8x32xf32> to vector<128x32xf32>
    %112 = arith.truncf %111 : vector<128x32xf32> to vector<128x32xbf16>
    %c1_115 = arith.constant 1 : index
    %c1_116 = arith.constant 1 : index
    %c0_117 = arith.constant 0 : index
    %c0_118 = arith.constant 0 : index
    %113 = vector.load %arg5[%c1_115, %c1_116, %c0_117, %c0_118] : memref<2x9x32x32xbf16, #tpu.memory_space<vmem>>, vector<1x1x32x32xbf16>
    %114 = vector.shape_cast %113 : vector<1x1x32x32xbf16> to vector<32x32xbf16>
    %cst_119 = arith.constant dense<0.000000e+00> : vector<128x32xf32>
    %115 = tpu.matmul %112, %114, %cst_119 {dimension_numbers = #tpu.dot_dimension_numbers<[1], [0], [0], [1], [0, 0, 1, 1], [], []>} : vector<128x32xbf16>, vector<32x32xbf16>, vector<128x32xf32> -> vector<128x32xf32>
    %116 = arith.addf %109, %115 : vector<128x32xf32>
    %c0_120 = arith.constant 0 : index
    %c0_121 = arith.constant 0 : index
    %c9_122 = arith.constant 9 : index
    %c0_123 = arith.constant 0 : index
    %117 = vector.load %arg12[%c0_120, %c0_121, %c9_122, %c0_123] : memref<2x10x17x32xf32, #tpu.memory_space<vmem>>, vector<2x8x8x32xf32>
    %118 = vector.shape_cast %117 : vector<2x8x8x32xf32> to vector<128x32xf32>
    %119 = arith.truncf %118 : vector<128x32xf32> to vector<128x32xbf16>
    %c1_124 = arith.constant 1 : index
    %c2_125 = arith.constant 2 : index
    %c0_126 = arith.constant 0 : index
    %c0_127 = arith.constant 0 : index
    %120 = vector.load %arg5[%c1_124, %c2_125, %c0_126, %c0_127] : memref<2x9x32x32xbf16, #tpu.memory_space<vmem>>, vector<1x1x32x32xbf16>
    %121 = vector.shape_cast %120 : vector<1x1x32x32xbf16> to vector<32x32xbf16>
    %cst_128 = arith.constant dense<0.000000e+00> : vector<128x32xf32>
    %122 = tpu.matmul %119, %121, %cst_128 {dimension_numbers = #tpu.dot_dimension_numbers<[1], [0], [0], [1], [0, 0, 1, 1], [], []>} : vector<128x32xbf16>, vector<32x32xbf16>, vector<128x32xf32> -> vector<128x32xf32>
    %123 = arith.addf %116, %122 : vector<128x32xf32>
    %c0_129 = arith.constant 0 : index
    %c1_130 = arith.constant 1 : index
    %c7_131 = arith.constant 7 : index
    %c0_132 = arith.constant 0 : index
    %124 = vector.load %arg12[%c0_129, %c1_130, %c7_131, %c0_132] : memref<2x10x17x32xf32, #tpu.memory_space<vmem>>, vector<2x8x8x32xf32>
    %125 = vector.shape_cast %124 : vector<2x8x8x32xf32> to vector<128x32xf32>
    %126 = arith.truncf %125 : vector<128x32xf32> to vector<128x32xbf16>
    %c1_133 = arith.constant 1 : index
    %c3_134 = arith.constant 3 : index
    %c0_135 = arith.constant 0 : index
    %c0_136 = arith.constant 0 : index
    %127 = vector.load %arg5[%c1_133, %c3_134, %c0_135, %c0_136] : memref<2x9x32x32xbf16, #tpu.memory_space<vmem>>, vector<1x1x32x32xbf16>
    %128 = vector.shape_cast %127 : vector<1x1x32x32xbf16> to vector<32x32xbf16>
    %cst_137 = arith.constant dense<0.000000e+00> : vector<128x32xf32>
    %129 = tpu.matmul %126, %128, %cst_137 {dimension_numbers = #tpu.dot_dimension_numbers<[1], [0], [0], [1], [0, 0, 1, 1], [], []>} : vector<128x32xbf16>, vector<32x32xbf16>, vector<128x32xf32> -> vector<128x32xf32>
    %130 = arith.addf %123, %129 : vector<128x32xf32>
    %c0_138 = arith.constant 0 : index
    %c1_139 = arith.constant 1 : index
    %c8_140 = arith.constant 8 : index
    %c0_141 = arith.constant 0 : index
    %131 = vector.load %arg12[%c0_138, %c1_139, %c8_140, %c0_141] : memref<2x10x17x32xf32, #tpu.memory_space<vmem>>, vector<2x8x8x32xf32>
    %132 = vector.shape_cast %131 : vector<2x8x8x32xf32> to vector<128x32xf32>
    %133 = arith.truncf %132 : vector<128x32xf32> to vector<128x32xbf16>
    %c1_142 = arith.constant 1 : index
    %c4_143 = arith.constant 4 : index
    %c0_144 = arith.constant 0 : index
    %c0_145 = arith.constant 0 : index
    %134 = vector.load %arg5[%c1_142, %c4_143, %c0_144, %c0_145] : memref<2x9x32x32xbf16, #tpu.memory_space<vmem>>, vector<1x1x32x32xbf16>
    %135 = vector.shape_cast %134 : vector<1x1x32x32xbf16> to vector<32x32xbf16>
    %cst_146 = arith.constant dense<0.000000e+00> : vector<128x32xf32>
    %136 = tpu.matmul %133, %135, %cst_146 {dimension_numbers = #tpu.dot_dimension_numbers<[1], [0], [0], [1], [0, 0, 1, 1], [], []>} : vector<128x32xbf16>, vector<32x32xbf16>, vector<128x32xf32> -> vector<128x32xf32>
    %137 = arith.addf %130, %136 : vector<128x32xf32>
    %c0_147 = arith.constant 0 : index
    %c1_148 = arith.constant 1 : index
    %c9_149 = arith.constant 9 : index
    %c0_150 = arith.constant 0 : index
    %138 = vector.load %arg12[%c0_147, %c1_148, %c9_149, %c0_150] : memref<2x10x17x32xf32, #tpu.memory_space<vmem>>, vector<2x8x8x32xf32>
    %139 = vector.shape_cast %138 : vector<2x8x8x32xf32> to vector<128x32xf32>
    %140 = arith.truncf %139 : vector<128x32xf32> to vector<128x32xbf16>
    %c1_151 = arith.constant 1 : index
    %c5_152 = arith.constant 5 : index
    %c0_153 = arith.constant 0 : index
    %c0_154 = arith.constant 0 : index
    %141 = vector.load %arg5[%c1_151, %c5_152, %c0_153, %c0_154] : memref<2x9x32x32xbf16, #tpu.memory_space<vmem>>, vector<1x1x32x32xbf16>
    %142 = vector.shape_cast %141 : vector<1x1x32x32xbf16> to vector<32x32xbf16>
    %cst_155 = arith.constant dense<0.000000e+00> : vector<128x32xf32>
    %143 = tpu.matmul %140, %142, %cst_155 {dimension_numbers = #tpu.dot_dimension_numbers<[1], [0], [0], [1], [0, 0, 1, 1], [], []>} : vector<128x32xbf16>, vector<32x32xbf16>, vector<128x32xf32> -> vector<128x32xf32>
    %144 = arith.addf %137, %143 : vector<128x32xf32>
    %c0_156 = arith.constant 0 : index
    %c2_157 = arith.constant 2 : index
    %c7_158 = arith.constant 7 : index
    %c0_159 = arith.constant 0 : index
    %145 = vector.load %arg12[%c0_156, %c2_157, %c7_158, %c0_159] : memref<2x10x17x32xf32, #tpu.memory_space<vmem>>, vector<2x8x8x32xf32>
    %146 = vector.shape_cast %145 : vector<2x8x8x32xf32> to vector<128x32xf32>
    %147 = arith.truncf %146 : vector<128x32xf32> to vector<128x32xbf16>
    %c1_160 = arith.constant 1 : index
    %c6_161 = arith.constant 6 : index
    %c0_162 = arith.constant 0 : index
    %c0_163 = arith.constant 0 : index
    %148 = vector.load %arg5[%c1_160, %c6_161, %c0_162, %c0_163] : memref<2x9x32x32xbf16, #tpu.memory_space<vmem>>, vector<1x1x32x32xbf16>
    %149 = vector.shape_cast %148 : vector<1x1x32x32xbf16> to vector<32x32xbf16>
    %cst_164 = arith.constant dense<0.000000e+00> : vector<128x32xf32>
    %150 = tpu.matmul %147, %149, %cst_164 {dimension_numbers = #tpu.dot_dimension_numbers<[1], [0], [0], [1], [0, 0, 1, 1], [], []>} : vector<128x32xbf16>, vector<32x32xbf16>, vector<128x32xf32> -> vector<128x32xf32>
    %151 = arith.addf %144, %150 : vector<128x32xf32>
    %c0_165 = arith.constant 0 : index
    %c2_166 = arith.constant 2 : index
    %c8_167 = arith.constant 8 : index
    %c0_168 = arith.constant 0 : index
    %152 = vector.load %arg12[%c0_165, %c2_166, %c8_167, %c0_168] : memref<2x10x17x32xf32, #tpu.memory_space<vmem>>, vector<2x8x8x32xf32>
    %153 = vector.shape_cast %152 : vector<2x8x8x32xf32> to vector<128x32xf32>
    %154 = arith.truncf %153 : vector<128x32xf32> to vector<128x32xbf16>
    %c1_169 = arith.constant 1 : index
    %c7_170 = arith.constant 7 : index
    %c0_171 = arith.constant 0 : index
    %c0_172 = arith.constant 0 : index
    %155 = vector.load %arg5[%c1_169, %c7_170, %c0_171, %c0_172] : memref<2x9x32x32xbf16, #tpu.memory_space<vmem>>, vector<1x1x32x32xbf16>
    %156 = vector.shape_cast %155 : vector<1x1x32x32xbf16> to vector<32x32xbf16>
    %cst_173 = arith.constant dense<0.000000e+00> : vector<128x32xf32>
    %157 = tpu.matmul %154, %156, %cst_173 {dimension_numbers = #tpu.dot_dimension_numbers<[1], [0], [0], [1], [0, 0, 1, 1], [], []>} : vector<128x32xbf16>, vector<32x32xbf16>, vector<128x32xf32> -> vector<128x32xf32>
    %158 = arith.addf %151, %157 : vector<128x32xf32>
    %c0_174 = arith.constant 0 : index
    %c2_175 = arith.constant 2 : index
    %c9_176 = arith.constant 9 : index
    %c0_177 = arith.constant 0 : index
    %159 = vector.load %arg12[%c0_174, %c2_175, %c9_176, %c0_177] : memref<2x10x17x32xf32, #tpu.memory_space<vmem>>, vector<2x8x8x32xf32>
    %160 = vector.shape_cast %159 : vector<2x8x8x32xf32> to vector<128x32xf32>
    %161 = arith.truncf %160 : vector<128x32xf32> to vector<128x32xbf16>
    %c1_178 = arith.constant 1 : index
    %c8_179 = arith.constant 8 : index
    %c0_180 = arith.constant 0 : index
    %c0_181 = arith.constant 0 : index
    %162 = vector.load %arg5[%c1_178, %c8_179, %c0_180, %c0_181] : memref<2x9x32x32xbf16, #tpu.memory_space<vmem>>, vector<1x1x32x32xbf16>
    %163 = vector.shape_cast %162 : vector<1x1x32x32xbf16> to vector<32x32xbf16>
    %cst_182 = arith.constant dense<0.000000e+00> : vector<128x32xf32>
    %164 = tpu.matmul %161, %163, %cst_182 {dimension_numbers = #tpu.dot_dimension_numbers<[1], [0], [0], [1], [0, 0, 1, 1], [], []>} : vector<128x32xbf16>, vector<32x32xbf16>, vector<128x32xf32> -> vector<128x32xf32>
    %165 = arith.addf %158, %164 : vector<128x32xf32>
    %cst_183 = arith.constant dense<0.000000e+00> : vector<32xf32>
    %166 = vector.multi_reduction <add>, %165, %cst_183 [0] : vector<128x32xf32> to vector<32xf32>
    %167 = vector.shape_cast %166 : vector<32xf32> to vector<1x32xf32>
    %168 = arith.mulf %165, %165 : vector<128x32xf32>
    %cst_184 = arith.constant dense<0.000000e+00> : vector<32xf32>
    %169 = vector.multi_reduction <add>, %168, %cst_184 [0] : vector<128x32xf32> to vector<32xf32>
    %170 = vector.shape_cast %169 : vector<32xf32> to vector<1x32xf32>
    %cst_185 = arith.constant 7.812500e-03 : f32
    %171 = vector.broadcast %cst_185 : f32 to vector<1x32xf32>
    %172 = arith.mulf %167, %171 : vector<1x32xf32>
    %cst_186 = arith.constant 7.812500e-03 : f32
    %173 = vector.broadcast %cst_186 : f32 to vector<1x32xf32>
    %174 = arith.mulf %170, %173 : vector<1x32xf32>
    %175 = arith.mulf %172, %172 : vector<1x32xf32>
    %176 = arith.subf %174, %175 : vector<1x32xf32>
    %cst_187 = arith.constant 0.000000e+00 : f32
    %177 = vector.broadcast %cst_187 : f32 to vector<1x32xf32>
    %178 = arith.maximumf %176, %177 : vector<1x32xf32>
    %cst_188 = arith.constant 9.99999974E-6 : f32
    %179 = vector.broadcast %cst_188 : f32 to vector<1x32xf32>
    %180 = arith.addf %178, %179 : vector<1x32xf32>
    %181 = math.rsqrt %180 : vector<1x32xf32>
    %182 = arith.mulf %100, %181 : vector<1x32xf32>
    %183 = arith.mulf %172, %182 : vector<1x32xf32>
    %184 = arith.subf %102, %183 : vector<1x32xf32>
    %185 = vector.shape_cast %165 : vector<128x32xf32> to vector<2x8x8x32xf32>
    %186 = vector.shape_cast %182 : vector<1x32xf32> to vector<1x1x1x32xf32>
    %187 = vector.broadcast %186 : vector<1x1x1x32xf32> to vector<2x8x8x32xf32>
    %188 = arith.mulf %185, %187 : vector<2x8x8x32xf32>
    %189 = vector.shape_cast %184 : vector<1x32xf32> to vector<1x1x1x32xf32>
    %190 = vector.broadcast %189 : vector<1x1x1x32xf32> to vector<2x8x8x32xf32>
    %191 = arith.addf %188, %190 : vector<2x8x8x32xf32>
    %192 = arith.addf %191, %3 : vector<2x8x8x32xf32>
    %cst_189 = arith.constant 0.000000e+00 : f32
    %193 = vector.broadcast %cst_189 : f32 to vector<2x8x8x32xf32>
    %194 = arith.maximumf %192, %193 : vector<2x8x8x32xf32>
    %c0_190 = arith.constant 0 : index
    %c0_191 = arith.constant 0 : index
    %c0_192 = arith.constant 0 : index
    %c0_193 = arith.constant 0 : index
    %195 = vector.load %arg13[%c0_190, %c0_191, %c0_192, %c0_193] : memref<2x8x8x32xf32, #tpu.memory_space<vmem>>, vector<2x8x8x32xf32>
    tpu.vector_store %arg13[%c0_190, %c0_191, %c0_192, %c0_193], %194 {strides = array<i32>} : memref<2x8x8x32xf32, #tpu.memory_space<vmem>>, vector<2x8x8x32xf32>,
    %c1_i32 = arith.constant 1 : i32
    %196 = arith.cmpi eq, %arg0, %c1_i32 : i32
    %197 = arith.extui %196 : i1 to i32
    %c0_i32_194 = arith.constant 0 : i32
    %198 = arith.cmpi ne, %197, %c0_i32_194 : i32
    scf.if %198 {
      %cst_195 = arith.constant dense<0.000000e+00> : vector<2x32xf32>
      %199 = vector.multi_reduction <add>, %194, %cst_195 [1, 2] : vector<2x8x8x32xf32> to vector<2x32xf32>
      %cst_196 = arith.constant 6.400000e+01 : f32
      %200 = vector.broadcast %cst_196 : f32 to vector<2x32xf32>
      %201 = arith.divf %199, %200 : vector<2x32xf32>
      %202 = vector.shape_cast %201 : vector<2x32xf32> to vector<2x1x32xf32>
      %c0_197 = arith.constant 0 : index
      %c0_198 = arith.constant 0 : index
      %203 = vector.load %arg8[%c0_197, %c0_198] : memref<17x32xf32, #tpu.memory_space<vmem>>, vector<17x32xf32>
      %204 = vector.shape_cast %203 : vector<17x32xf32> to vector<1x17x32xf32>
      %205 = vector.broadcast %202 : vector<2x1x32xf32> to vector<2x17x32xf32>
      %206 = vector.broadcast %204 : vector<1x17x32xf32> to vector<2x17x32xf32>
      %207 = arith.mulf %205, %206 : vector<2x17x32xf32>
      %cst_199 = arith.constant dense<0.000000e+00> : vector<2x17xf32>
      %208 = vector.multi_reduction <add>, %207, %cst_199 [2] : vector<2x17x32xf32> to vector<2x17xf32>
      %c0_200 = arith.constant 0 : index
      %c0_201 = arith.constant 0 : index
      %209 = vector.load %arg9[%c0_200, %c0_201] : memref<1x17xf32, #tpu.memory_space<vmem>>, vector<1x17xf32>
      %210 = vector.broadcast %209 : vector<1x17xf32> to vector<2x17xf32>
      %211 = arith.addf %208, %210 : vector<2x17xf32>
      %212 = vector.extract_strided_slice %211 {offsets = [0, 0], sizes = [2, 16], strides = [1, 1]} : vector<2x17xf32> to vector<2x16xf32>
      %cst_202 = arith.constant dense<0xFF800000> : vector<2xf32>
      %213 = vector.multi_reduction <maximumf>, %212, %cst_202 [1] : vector<2x16xf32> to vector<2xf32>
      %214 = vector.shape_cast %213 : vector<2xf32> to vector<2x1xf32>
      %215 = vector.broadcast %214 : vector<2x1xf32> to vector<2x16xf32>
      %216 = arith.subf %212, %215 : vector<2x16xf32>
      %217 = math.exp %216 : vector<2x16xf32>
      %cst_203 = arith.constant dense<0.000000e+00> : vector<2xf32>
      %218 = vector.multi_reduction <add>, %217, %cst_203 [1] : vector<2x16xf32> to vector<2xf32>
      %219 = vector.shape_cast %218 : vector<2xf32> to vector<2x1xf32>
      %220 = vector.broadcast %219 : vector<2x1xf32> to vector<2x16xf32>
      %221 = arith.divf %217, %220 : vector<2x16xf32>
      %c0_204 = arith.constant 0 : index
      %c0_205 = arith.constant 0 : index
      %222 = vector.load %arg10[%c0_204, %c0_205] : memref<2x16xf32, #tpu.memory_space<vmem>>, vector<2x16xf32>
      tpu.vector_store %arg10[%c0_204, %c0_205], %221 {strides = array<i32>} : memref<2x16xf32, #tpu.memory_space<vmem>>, vector<2x16xf32>,
      %223 = vector.extract_strided_slice %211 {offsets = [0, 16], sizes = [2, 1], strides = [1, 1]} : vector<2x17xf32> to vector<2x1xf32>
      %224 = math.tanh %223 : vector<2x1xf32>
      %c0_206 = arith.constant 0 : index
      %c0_207 = arith.constant 0 : index
      %225 = vector.load %arg11[%c0_206, %c0_207] : memref<2x1xf32, #tpu.memory_space<vmem>>, vector<2x1xf32>
      tpu.vector_store %arg11[%c0_206, %c0_207], %224 {strides = array<i32>} : memref<2x1xf32, #tpu.memory_space<vmem>>, vector<2x1xf32>,
    } else {
    }
    return
  }
  func.func @transform_0(%arg0: i32) -> (i32, i32, i32, i32) {
    %c0_i32 = arith.constant 0 : i32
    %c0_i32_0 = arith.constant 0 : i32
    %c0_i32_1 = arith.constant 0 : i32
    %c0_i32_2 = arith.constant 0 : i32
    %c0_i32_3 = arith.constant 0 : i32
    return %c0_i32, %c0_i32_0, %c0_i32_1, %c0_i32_2 : i32, i32, i32, i32
  }
  func.func @transform_1(%arg0: i32) -> (i32, i32, i32) {
    %c0_i32 = arith.constant 0 : i32
    %c0_i32_0 = arith.constant 0 : i32
    %c0_i32_1 = arith.constant 0 : i32
    %c0_i32_2 = arith.constant 0 : i32
    return %c0_i32, %c0_i32_0, %c0_i32_1 : i32, i32, i32
  }
  func.func @transform_2(%arg0: i32) -> (i32, i32) {
    %c0_i32 = arith.constant 0 : i32
    %c0_i32_0 = arith.constant 0 : i32
    %c0_i32_1 = arith.constant 0 : i32
    return %c0_i32, %c0_i32_0 : i32, i32
  }
  func.func @transform_3(%arg0: i32) -> (i32, i32) {
    %c0_i32 = arith.constant 0 : i32
    %c0_i32_0 = arith.constant 0 : i32
    %c0_i32_1 = arith.constant 0 : i32
    return %c0_i32, %c0_i32_0 : i32, i32
  }
  func.func @transform_4(%arg0: i32) -> (i32, i32, i32, i32) {
    %c0_i32 = arith.constant 0 : i32
    %c0_i32_0 = arith.constant 0 : i32
    %c0_i32_1 = arith.constant 0 : i32
    %c0_i32_2 = arith.constant 0 : i32
    return %arg0, %c0_i32, %c0_i32_0, %c0_i32_1 : i32, i32, i32, i32
  }
  func.func @transform_5(%arg0: i32) -> (i32, i32, i32) {
    %c0_i32 = arith.constant 0 : i32
    %c0_i32_0 = arith.constant 0 : i32
    %c0_i32_1 = arith.constant 0 : i32
    return %arg0, %c0_i32, %c0_i32_0 : i32, i32, i32
  }
  func.func @transform_6(%arg0: i32) -> (i32, i32, i32) {
    %c0_i32 = arith.constant 0 : i32
    %c0_i32_0 = arith.constant 0 : i32
    %c0_i32_1 = arith.constant 0 : i32
    return %arg0, %c0_i32, %c0_i32_0 : i32, i32, i32
  }
  func.func @transform_7(%arg0: i32) -> (i32, i32) {
    %c0_i32 = arith.constant 0 : i32
    %c0_i32_0 = arith.constant 0 : i32
    %c0_i32_1 = arith.constant 0 : i32
    return %c0_i32, %c0_i32_0 : i32, i32
  }
  func.func @transform_8(%arg0: i32) -> (i32, i32) {
    %c0_i32 = arith.constant 0 : i32
    %c0_i32_0 = arith.constant 0 : i32
    %c0_i32_1 = arith.constant 0 : i32
    return %c0_i32, %c0_i32_0 : i32, i32
  }
  func.func @transform_9(%arg0: i32) -> (i32, i32) {
    %c0_i32 = arith.constant 0 : i32
    %c0_i32_0 = arith.constant 0 : i32
    %c0_i32_1 = arith.constant 0 : i32
    return %c0_i32, %c0_i32_0 : i32, i32
  }
  func.func @transform_10(%arg0: i32) -> (i32, i32) {
    %c0_i32 = arith.constant 0 : i32
    %c0_i32_0 = arith.constant 0 : i32
    %c0_i32_1 = arith.constant 0 : i32
    return %c0_i32, %c0_i32_0 : i32, i32
  }
}

</mosaic_0001>

<bundles_post_ra>
// kernel: dual_network_forward.1
= control target key start
LH: loop header
LB: loop body
LE: loop exit
PB: predicated region body
PF: predicated region fallthrough
CT: control target
= control target key end

     0   :  { %16 = vsyncpa [#allocation5], 0  ;;  %s7708_s13 = smov 0   ;;  %s9472_s0 = inlined_call_operand.vmem [shape: f32[2,8,8,4], index: 0, kind: input, shape index: {}]   ;;  %s9473_s1 = inlined_call_operand.vmem [shape: bf16[9,4,32], index: 1, kind: input, shape index: {}]   ;;  %s9474_s2 = inlined_call_operand.vmem [shape: f32[1,32], index: 2, kind: input, shape index: {}]   ;;  %s9475_s3 = inlined_call_operand.vmem [shape: f32[1,32], index: 3, kind: input, shape index: {}]   ;;  %s9476_s4 = inlined_call_operand.vmem [shape: bf16[4,9,32,32], index: 4, kind: input, shape index: {}]   ;;  %s9477_s5 = inlined_call_operand.vmem [shape: f32[4,1,32], index: 5, kind: input, shape index: {}]   ;;  %s9478_s6 = inlined_call_operand.vmem [shape: f32[4,1,32], index: 6, kind: input, shape index: {}]   ;;  %s9479_s7 = inlined_call_operand.vmem [shape: f32[17,32], index: 7, kind: input, shape index: {}]   ;;  %s9480_s8 = inlined_call_operand.vmem [shape: f32[1,17], index: 8, kind: input, shape index: {}]   ;;  %s9481_s9 = inlined_call_operand.hbm [shape: f32[2,16], index: 9, kind: output, shape index: {0}]   ;;  %s9482_s10 = inlined_call_operand.vmem [shape: f32[2,1], index: 10, kind: output, shape index: {1}]  }
   0x1 LB: > { %s7714_s14 = sadd.s32 4294967295, %s7648_s13   ;;  %p6013_p0 = scmp.ge.s32.totalorder %s7648_s13, 1  ;;  %s7648_s13 = sphi %s7708_s13, %s22_s13  }
   0x2   : > { %p328_p1 = scmp.lt.s32.totalorder %s7648_s13, 3 }
   0x4   : > { %p329_p2 = pnand %p6013_p0, %p328_p1 }
   0x6   : > { %332 = sbr.rel (%p329_p2) target bundleno = 2551 (0x9f7), region = 56 }
   0xd   : > { %s6014_s15 = sshll.u32 %s7714_s14, 1  ;;  %p6018_p4 = scmp.ne.s32.totalorder %s7714_s14, 0 }
   0xe   : > { %p371_p3 = scmp.lt.s32.totalorder %s6014_s15, 3  ;;  %v6019_v0 = vld [vmem:[%s9473_s1 + $0x2] sm:$0x3] (!%p6018_p4)  ;;  %vm555_vm0 = vcmask (!%p6018_p4), 1041408   ;;  %v7741_v1 = vld [vmem:[%s9473_s1 + $0x8] sm:$0x3] (!%p6018_p4) }
   0xf   : > { %391 = sbr.rel (%p6018_p4) target bundleno = 469 (0x1d5), region = 60  ;;  %vm392_vm1 = vcmask (!%p6018_p4), 261120   ;;  %7524 = vmatprep.subr.msk.bf16.mxu1 (!%p6018_p4), %vm555_vm0, %v6019_v0  ;;  %7528 = vmatprep.subr.msk.bf16.mxu0 (!%p6018_p4), %vm555_vm0, %v7741_v1  ;;  %v557_v2 = vsel (!%p6018_p4), %vm555_vm0, %v6019_v0, 0  ;;  %v7749_v3 = vsel (!%p6018_p4), %vm555_vm0, %v7741_v1, 0  ;;  %vm394_vm2 = vcmask (!%p6018_p4), 254976   ;;  %v444_v4 = vld [vmem:[%s9472_s0] sm:$0xff] (!%p6018_p4) }
  0x10   : > { %s9568_s15 = smov (!%p371_p3, %s6014_s15), 3  ;;  %v445_v5 = vld [vmem:[%s9472_s0 + $0x8] sm:$0xff] (!%p6018_p4)  ;;  %6617 = vmatpush3.bf16.msra.mxu1 (!%p6018_p4), %v557_v2  ;;  %6689 = vmatpush3.bf16.msra.mxu0 (!%p6018_p4), %v7749_v3  ;;  %v7650_v6 = vmov (!%p6018_p4), 0.0   ;;  %vm403_vm3 = vcmask (!%p6018_p4), 253952   ;;  %vm463_vm4 = vcmask (!%p6018_p4), 31744   ;;  %v446_v9 = vld [vmem:[%s9472_s0 + $0x10] sm:$0xff] (!%p6018_p4) }
  0x11   : > { %s7534_s16 = smul.u32 144, %s9568_s15  ;;  %s7722_s19 = scalar_lea.vmem %s9477_s5, %s9568_s15  ;;  %393 = vst.msk [vmem:[#allocation2 + $0x7] sm:$0xff] (!%p6018_p4), %vm392_vm1, %v7650_v6  ;;  %396 = vst.msk [vmem:[#allocation2 + $0xf7] sm:$0xff] (!%p6018_p4), %vm392_vm1, %v7650_v6  ;;  %v7765_v7 = vld [vmem:[%s9473_s1] sm:$0x3] (!%p6018_p4)  ;;  %v447_v10 = vld [vmem:[%s9472_s0 + $0x18] sm:$0xff] (!%p6018_p4) }
  0x12   : > { %s7727_s22 = scalar_lea.vmem %s9478_s6, %s9568_s15  ;;  %395 = vst.msk [vmem:[#allocation2 + $0xf] sm:$0x3] (!%p6018_p4), %vm394_vm2, %v7650_v6  ;;  %397 = vst.msk [vmem:[#allocation2 + $0xff] sm:$0x3] (!%p6018_p4), %vm394_vm2, %v7650_v6  ;;  %v7770_v8 = vld [vmem:[%s9473_s1 + $0xa] sm:$0x3] (!%p6018_p4)  ;;  %7525 = vmatprep.subr.msk.bf16.mxu1 (!%p6018_p4), %vm555_vm0, %v7765_v7 }
  0x13   : > { %s7732_s25 = scalar_lea.vmem %s9476_s4, %s7534_s16  ;;  %399 = vst.msk [vmem:[#allocation2 + $0xdf] sm:$0xff] (!%p6018_p4), %vm392_vm1, %v7650_v6  ;;  %401 = vst.msk [vmem:[#allocation2 + $0x1cf] sm:$0xff] (!%p6018_p4), %vm392_vm1, %v7650_v6  ;;  %7530 = vmatprep.subr.msk.bf16.mxu0 (!%p6018_p4), %vm555_vm0, %v7770_v8  ;;  %v448_v11 = vld [vmem:[%s9472_s0 + $0x20] sm:$0xff] (!%p6018_p4)  ;;  %v449_v12 = vld [vmem:[%s9472_s0 + $0x28] sm:$0xff] (!%p6018_p4)  ;;  %v681_v29 = vsel (!%p6018_p4), %vm555_vm0, %v7765_v7, 0  ;;  %v1329_v34 = vsel (!%p6018_p4), %vm555_vm0, %v7770_v8, 0 }
  0x14   : > { %400 = vst.msk [vmem:[#allocation2 + $0xe7] sm:$0x3] (!%p6018_p4), %vm394_vm2, %v7650_v6  ;;  %402 = vst.msk [vmem:[#allocation2 + $0x1d7] sm:$0x3] (!%p6018_p4), %vm394_vm2, %v7650_v6  ;;  %v450_v13 = vld [vmem:[%s9472_s0 + $0x30] sm:$0xff] (!%p6018_p4)  ;;  %v451_v14 = vld [vmem:[%s9472_s0 + $0x38] sm:$0xff] (!%p6018_p4) }
  0x15   : > { %404 = vst.msk [vmem:[#allocation2 + $0x7] sm:$0x1] (!%p6018_p4), %vm403_vm3, %v7650_v6  ;;  %424 = vst.msk [vmem:[#allocation2 + $0x10] sm:$0x1] (!%p6018_p4), %vm403_vm3, %v7650_v6  ;;  %v452_v15 = vld [vmem:[%s9472_s0 + $0x40] sm:$0xff] (!%p6018_p4)  ;;  %v453_v16 = vld [vmem:[%s9472_s0 + $0x48] sm:$0xff] (!%p6018_p4) }
  0x16   : > { %464 = vst.msk [vmem:[#allocation2 + $0x20] sm:$0xff] %vm463_vm4, %v444_v4  ;;  %465 = vst.msk [vmem:[#allocation2 + $0x38] sm:$0xff] %vm463_vm4, %v445_v5  ;;  %v454_v17 = vld [vmem:[%s9472_s0 + $0x50] sm:$0xff]  ;;  %v455_v18 = vld [vmem:[%s9472_s0 + $0x58] sm:$0xff] }
  0x17   : > { %405 = vst.msk [vmem:[#allocation2 + $0x1f] sm:$0x1] %vm403_vm3, %v7650_v6  ;;  %406 = vst.msk [vmem:[#allocation2 + $0x37] sm:$0x1] %vm403_vm3, %v7650_v6  ;;  %v456_v19 = vld [vmem:[%s9472_s0 + $0x60] sm:$0xff]  ;;  %v457_v20 = vld [vmem:[%s9472_s0 + $0x68] sm:$0xff] }
  0x18   : > { %407 = vst.msk [vmem:[#allocation2 + $0x4f] sm:$0x1] %vm403_vm3, %v7650_v6  ;;  %408 = vst.msk [vmem:[#allocation2 + $0x67] sm:$0x1] %vm403_vm3, %v7650_v6  ;;  %v458_v21 = vld [vmem:[%s9472_s0 + $0x70] sm:$0xff]  ;;  %v459_v22 = vld [vmem:[%s9472_s0 + $0x78] sm:$0xff] }
  0x19   : > { %409 = vst.msk [vmem:[#allocation2 + $0x7f] sm:$0x1] %vm403_vm3, %v7650_v6  ;;  %410 = vst.msk [vmem:[#allocation2 + $0x97] sm:$0x1] %vm403_vm3, %v7650_v6  ;;  %v505_v23 = vld [vmem:[#allocation2 + $0x8] sm:$0xff]  ;;  %v513_v43 = vld [vmem:[#allocation2 + $0xf8] sm:$0xff] }
  0x1a   : > { %411 = vst.msk [vmem:[#allocation2 + $0xaf] sm:$0x1] %vm403_vm3, %v7650_v6  ;;  %412 = vst.msk [vmem:[#allocation2 + $0xc7] sm:$0x1] %vm403_vm3, %v7650_v6  ;;  %v6072_v37 = vld [vmem:[%s9473_s1 + $0xc] sm:$0x3] }
  0x1b   : > { %415 = vst.msk [vmem:[#allocation2 + $0x10f] sm:$0x1] %vm403_vm3, %v7650_v6  ;;  %416 = vst.msk [vmem:[#allocation2 + $0x127] sm:$0x1] %vm403_vm3, %v7650_v6  ;;  %v7894_v41 = vld [vmem:[%s9473_s1 + $0x4] sm:$0x3] }
  0x1c   : > { %417 = vst.msk [vmem:[#allocation2 + $0x13f] sm:$0x1] %vm403_vm3, %v7650_v6  ;;  %418 = vst.msk [vmem:[#allocation2 + $0x157] sm:$0x1] %vm403_vm3, %v7650_v6  ;;  %v1496_v2 = vsel %vm555_vm0, %v6072_v37, 0 }
  0x1d   : > { %419 = vst.msk [vmem:[#allocation2 + $0x16f] sm:$0x1] %vm403_vm3, %v7650_v6  ;;  %420 = vst.msk [vmem:[#allocation2 + $0x187] sm:$0x1] %vm403_vm3, %v7650_v6  ;;  %v506_v24 = vld [vmem:[#allocation2 + $0x20] sm:$0xff]  ;;  %v1113_v25 = vld [vmem:[#allocation2 + $0x38] sm:$0xff] }
  0x1e   : > { %421 = vst.msk [vmem:[#allocation2 + $0x19f] sm:$0x1] %vm403_vm3, %v7650_v6  ;;  %422 = vst.msk [vmem:[#allocation2 + $0x1b7] sm:$0x1] %vm403_vm3, %v7650_v6  ;;  %v521_v26 = vpack.c.bf16 %v506_v24, %v505_v23  ;;  %v1128_v27 = vpack.c.bf16 %v1113_v25, %v506_v24  ;;  %v6081_v5 = vld [vmem:[%s9473_s1 + $0xe] sm:$0x3] }
  0x1f   : > { %425 = vst.msk [vmem:[#allocation2 + $0x28] sm:$0x1] %vm403_vm3, %v7650_v6  ;;  %426 = vst.msk [vmem:[#allocation2 + $0x40] sm:$0x1] %vm403_vm3, %v7650_v6 }
  0x20   : > { %427 = vst.msk [vmem:[#allocation2 + $0x58] sm:$0x1] %vm403_vm3, %v7650_v6  ;;  %428 = vst.msk [vmem:[#allocation2 + $0x70] sm:$0x1] %vm403_vm3, %v7650_v6  ;;  %6618 = vmatprep.mubr.msk.bf16.mxu1 %vm463_vm4, %v521_v26  ;;  %6690 = vmatprep.mubr.msk.bf16.mxu0 %vm463_vm4, %v1128_v27 }
  0x21   : > { %429 = vst.msk [vmem:[#allocation2 + $0x88] sm:$0x1] %vm403_vm3, %v7650_v6  ;;  %430 = vst.msk [vmem:[#allocation2 + $0xa0] sm:$0x1] %vm403_vm3, %v7650_v6 }
  0x22   : > { %431 = vst.msk [vmem:[#allocation2 + $0xb8] sm:$0x1] %vm403_vm3, %v7650_v6  ;;  %432 = vst.msk [vmem:[#allocation2 + $0xd0] sm:$0x1] %vm403_vm3, %v7650_v6 }
  0x23   : > { %435 = vst.msk [vmem:[#allocation2 + $0x118] sm:$0x1] %vm403_vm3, %v7650_v6  ;;  %436 = vst.msk [vmem:[#allocation2 + $0x130] sm:$0x1] %vm403_vm3, %v7650_v6 }
  0x24   : > { %437 = vst.msk [vmem:[#allocation2 + $0x148] sm:$0x1] %vm403_vm3, %v7650_v6  ;;  %438 = vst.msk [vmem:[#allocation2 + $0x160] sm:$0x1] %vm403_vm3, %v7650_v6 }
  0x25   : > { %439 = vst.msk [vmem:[#allocation2 + $0x178] sm:$0x1] %vm403_vm3, %v7650_v6  ;;  %440 = vst.msk [vmem:[#allocation2 + $0x190] sm:$0x1] %vm403_vm3, %v7650_v6 }
  0x26   : > { %441 = vst.msk [vmem:[#allocation2 + $0x1a8] sm:$0x1] %vm403_vm3, %v7650_v6  ;;  %442 = vst.msk [vmem:[#allocation2 + $0x1c0] sm:$0x1] %vm403_vm3, %v7650_v6  ;;  %v7899_v44 = vld [vmem:[#allocation2 + $0x21] sm:$0xff]  ;;  %v7912_v49 = vld [vmem:[#allocation2 + $0x39] sm:$0xff] }
  0x27   : > { %413 = vst.msk [vmem:[#allocation2 + $0xdf] sm:$0x1] %vm403_vm3, %v7650_v6  ;;  %414 = vst.msk [vmem:[#allocation2 + $0xf7] sm:$0x1] %vm403_vm3, %v7650_v6  ;;  %v1294_v57 = vpack.c.bf16 %v7912_v49, %v7899_v44 }
  0x28   : > { %423 = vst.msk [vmem:[#allocation2 + $0x1cf] sm:$0x1] %vm403_vm3, %v7650_v6  ;;  %433 = vst.msk [vmem:[#allocation2 + $0xe8] sm:$0x1] %vm403_vm3, %v7650_v6 }
  0x29   : > { %434 = vst.msk [vmem:[#allocation2 + $0x100] sm:$0x1] %vm403_vm3, %v7650_v6  ;;  %443 = vst.msk [vmem:[#allocation2 + $0x1d8] sm:$0x1] %vm403_vm3, %v7650_v6 }
  0x2a   : > { %466 = vst.msk [vmem:[#allocation2 + $0x50] sm:$0xff] %vm463_vm4, %v446_v9  ;;  %467 = vst.msk [vmem:[#allocation2 + $0x68] sm:$0xff] %vm463_vm4, %v447_v10  ;;  %v480_v9 = vld [vmem:[#allocation2 + $0x7] sm:$0xff]  ;;  %v7972_v10 = vld [vmem:[#allocation2 + $0x1f] sm:$0xff] }
  0x2b   : > { %468 = vst.msk [vmem:[#allocation2 + $0x80] sm:$0xff] %vm463_vm4, %v448_v11  ;;  %469 = vst.msk [vmem:[#allocation2 + $0x98] sm:$0xff] %vm463_vm4, %v449_v12 }
  0x2c   : > { %470 = vst.msk [vmem:[#allocation2 + $0xb0] sm:$0xff] %vm463_vm4, %v450_v13  ;;  %471 = vst.msk [vmem:[#allocation2 + $0xc8] sm:$0xff] %vm463_vm4, %v451_v14 }
  0x2d   : > { %472 = vst.msk [vmem:[#allocation2 + $0x110] sm:$0xff] %vm463_vm4, %v452_v15  ;;  %473 = vst.msk [vmem:[#allocation2 + $0x128] sm:$0xff] %vm463_vm4, %v453_v16  ;;  %v496_v15 = vpack.c.bf16 %v7972_v10, %v480_v9  ;;  %v1662_v9 = vsel %vm555_vm0, %v6081_v5, 0 }
  0x2e   : > { %474 = vst.msk [vmem:[#allocation2 + $0x140] sm:$0xff] %vm463_vm4, %v454_v17  ;;  %475 = vst.msk [vmem:[#allocation2 + $0x158] sm:$0xff] %vm463_vm4, %v455_v18  ;;  %v7991_v17 = vld [vmem:[#allocation2 + $0x37] sm:$0xff] }
  0x2f   : > { %476 = vst.msk [vmem:[#allocation2 + $0x170] sm:$0xff] %vm463_vm4, %v456_v19  ;;  %477 = vst.msk [vmem:[#allocation2 + $0x188] sm:$0xff] %vm463_vm4, %v457_v20 }
  0x30   : > { %478 = vst.msk [vmem:[#allocation2 + $0x1a0] sm:$0xff] %vm463_vm4, %v458_v21  ;;  %479 = vst.msk [vmem:[#allocation2 + $0x1b8] sm:$0xff] %vm463_vm4, %v459_v22 }
  0x31   : > { %v508_v28 = vld [vmem:[#allocation2 + $0x50] sm:$0xff]  ;;  %v1115_v30 = vld [vmem:[#allocation2 + $0x68] sm:$0xff] }
  0x32   : > { %v510_v31 = vld [vmem:[#allocation2 + $0x80] sm:$0xff]  ;;  %v7876_v32 = vpack.c.bf16 %v508_v28, %v1113_v25  ;;  %v1129_v33 = vpack.c.bf16 %v1115_v30, %v508_v28  ;;  %v1117_v36 = vld [vmem:[#allocation2 + $0x98] sm:$0xff]  ;;  %v7938_v59 = vld [vmem:[#allocation2 + $0x69] sm:$0xff]  ;;  %v831_v28 = vsel %vm555_vm0, %v7894_v41, 0 }
  0x33   : > { %v7880_v35 = vpack.c.bf16 %v510_v31, %v1115_v30  ;;  %v1130_v38 = vpack.c.bf16 %v1117_v36, %v510_v31  ;;  %v512_v42 = vld [vmem:[#allocation2 + $0xb0] sm:$0xff]  ;;  %v7903_v46 = vld [vmem:[#allocation2 + $0xc8] sm:$0xff]  ;;  %v7942_v61 = vld [vmem:[#allocation2 + $0x99] sm:$0xff] }
  0x34   : > { %v7887_v39 = vld [vmem:[#allocation2 + $0x110] sm:$0xff]  ;;  %v7889_v40 = vld [vmem:[#allocation2 + $0x128] sm:$0xff]  ;;  %6619 = vmatmul.mubr.msk.bf16.vlgmr.msra.gmra.mrb[0].mxu1 %vm463_vm4, %v7876_v32  ;;  %6691 = vmatmul.mubr.msk.bf16.vlgmr.msra.gmra.mrb[0].mxu0 %vm463_vm4, %v1129_v33  ;;  %v7925_v54 = vpack.c.bf16 %v512_v42, %v1117_v36  ;;  %v1131_v55 = vpack.c.bf16 %v7903_v46, %v512_v42  ;;  %v8003_v22 = vld [vmem:[#allocation2 + $0x7f] sm:$0xff] }
  0x35   : > { %v1132_v45 = vpack.c.bf16 %v7889_v40, %v7887_v39  ;;  %6635 = vmatpush3.bf16.msra.mxu1 %v681_v29  ;;  %6707 = vmatpush3.bf16.msra.mxu0 %v1329_v34  ;;  %v7905_v47 = vld [vmem:[#allocation2 + $0x140] sm:$0xff]  ;;  %v7907_v48 = vld [vmem:[#allocation2 + $0x158] sm:$0xff]  ;;  %v525_v56 = vpack.c.bf16 %v7887_v39, %v513_v43  ;;  %v7969_v8 = vld [vmem:[#allocation2 + $0xc9] sm:$0xff] }
  0x36   : > { %6622 = vmatprep.mubr.msk.bf16.mxu1 %vm463_vm4, %v7880_v35  ;;  %6694 = vmatprep.mubr.msk.bf16.mxu0 %vm463_vm4, %v1130_v38  ;;  %v7914_v50 = vld [vmem:[#allocation2 + $0x170] sm:$0xff]  ;;  %v7916_v51 = vld [vmem:[#allocation2 + $0x188] sm:$0xff]  ;;  %v1133_v52 = vpack.c.bf16 %v7907_v48, %v7905_v47  ;;  %v7946_v62 = vpack.c.bf16 %v7905_v47, %v7889_v40  ;;  %v7999_v20 = vld [vmem:[#allocation2 + $0x159] sm:$0xff] }
  0x37   : > { %7531 = vmatprep.subr.msk.bf16.mxu0 %vm555_vm0, %v6072_v37  ;;  %7526 = vmatprep.subr.msk.bf16.mxu1 %vm555_vm0, %v7894_v41  ;;  %v1134_v53 = vpack.c.bf16 %v7916_v51, %v7914_v50  ;;  %v7936_v58 = vld [vmem:[#allocation2 + $0x51] sm:$0xff]  ;;  %v7940_v60 = vld [vmem:[#allocation2 + $0x81] sm:$0xff]  ;;  %v7952_v0 = vpack.c.bf16 %v7914_v50, %v7907_v48  ;;  %v7976_v12 = vld [vmem:[#allocation2 + $0x129] sm:$0xff] }
  0x38   : > { %v1295_v63 = vpack.c.bf16 %v7938_v59, %v7936_v58  ;;  %v1296_v4 = vpack.c.bf16 %v7942_v61, %v7940_v60  ;;  %v7963_v6 = vld [vmem:[#allocation2 + $0x1a0] sm:$0xff]  ;;  %v7967_v7 = vld [vmem:[#allocation2 + $0xb1] sm:$0xff]  ;;  %v8007_v24 = vld [vmem:[#allocation2 + $0x189] sm:$0xff] }
  0x39   : > { %v7974_v11 = vld [vmem:[#allocation2 + $0x111] sm:$0xff]  ;;  %v7981_v13 = vpack.c.bf16 %v7963_v6, %v7916_v51  ;;  %v1297_v14 = vpack.c.bf16 %v7969_v8, %v7967_v7  ;;  %v7997_v19 = vld [vmem:[#allocation2 + $0x141] sm:$0xff]  ;;  %v8031_v36 = vld [vmem:[#allocation2 + $0x1b9] sm:$0xff] }
  0x3a   : > { %v1298_v16 = vpack.c.bf16 %v7976_v12, %v7974_v11  ;;  %v7995_v18 = vld [vmem:[#allocation2 + $0x4f] sm:$0xff]  ;;  %v8001_v21 = vld [vmem:[#allocation2 + $0x67] sm:$0xff]  ;;  %v1299_v26 = vpack.c.bf16 %v7999_v20, %v7997_v19  ;;  %v8024_v31 = vld [vmem:[#allocation2 + $0x97] sm:$0xff] }
  0x3b   : > { %v8005_v23 = vld [vmem:[#allocation2 + $0x171] sm:$0xff]  ;;  %v497_v25 = vpack.c.bf16 %v7995_v18, %v7991_v17  ;;  %v498_v27 = vpack.c.bf16 %v8003_v22, %v8001_v21  ;;  %v6045_v30 = vld [vmem:[%s9473_s1 + $0x6] sm:$0x3] }
  0x3c   : > { %6623 = vmatmul.mubr.msk.bf16.gmra.mrb[4].mxu1 %vm463_vm4, %v7925_v54  ;;  %6695 = vmatmul.mubr.msk.bf16.gmra.mrb[4].mxu0 %vm463_vm4, %v1131_v55  ;;  %v1300_v29 = vpack.c.bf16 %v8007_v24, %v8005_v23  ;;  %v8027_v33 = vld [vmem:[#allocation2 + $0xaf] sm:$0xff]  ;;  %v8029_v34 = vld [vmem:[#allocation2 + $0x1a1] sm:$0xff]  ;;  %v488_v37 = vld [vmem:[#allocation2 + $0xf7] sm:$0xff] }
  0x3d   : > { %6626 = vmatprep.mubr.msk.bf16.mxu1 %vm463_vm4, %v525_v56  ;;  %6708 = vmatprep.mubr.msk.bf16.mxu0 %vm463_vm4, %v1294_v57  ;;  %v8034_v38 = vld [vmem:[#allocation2 + $0x10f] sm:$0xff]  ;;  %v499_v41 = vpack.c.bf16 %v8027_v33, %v8024_v31  ;;  %v1301_v42 = vpack.c.bf16 %v8031_v36, %v8029_v34  ;;  %v8046_v55 = vld [vmem:[#allocation2 + $0x127] sm:$0xff]  ;;  %v8048_v56 = vld [vmem:[#allocation2 + $0x13f] sm:$0xff] }
  0x3e   : > { %v500_v43 = vpack.c.bf16 %v8034_v38, %v488_v37  ;;  %v8050_v57 = vld [vmem:[#allocation2 + $0x157] sm:$0xff]  ;;  %v797_v37 = vpack.c.bf16 %v7936_v58, %v7912_v49  ;;  %v799_v49 = vpack.c.bf16 %v7967_v7, %v7942_v61  ;;  %v1618_v7 = vld [vmem:[#allocation2 + $0xe0] sm:$0xff] }
  0x44   : > { %6627 = vmatmul.mubr.msk.bf16.gmra.mrb[8].mxu1 %vm463_vm4, %v7946_v62  ;;  %6709 = vmatmul.mubr.msk.bf16.vlgmr.msra.gmra.mrb[0].mxu0 %vm463_vm4, %v1295_v63  ;;  %v8052_v63 = vld [vmem:[#allocation2 + $0x16f] sm:$0xff] }
  0x45   : > { %6725 = vmatpush3.bf16.msra.mxu0 %v1496_v2  ;;  %6630 = vmatprep.mubr.msk.bf16.mxu1 %vm463_vm4, %v7952_v0  ;;  %v501_v2 = vpack.c.bf16 %v8048_v56, %v8046_v55 }
  0x46   : > { %6712 = vmatprep.mubr.msk.bf16.mxu0 %vm463_vm4, %v1296_v4  ;;  %7532 = vmatprep.subr.msk.bf16.mxu0 %vm555_vm0, %v6081_v5  ;;  %v502_v4 = vpack.c.bf16 %v8052_v63, %v8050_v57  ;;  %v780_v5 = vld [vmem:[#allocation2 + $0x9] sm:$0xff] }
  0x4c   : > { %6631 = vmatmul.mubr.msk.bf16.gmra.mrb[12].mxu1 %vm463_vm4, %v7981_v13  ;;  %6713 = vmatmul.mubr.msk.bf16.gmra.mrb[4].mxu0 %vm463_vm4, %v1297_v14  ;;  %v6090_v14 = vld [vmem:[%s9473_s1 + $0x10] sm:$0x3] }
  0x4d   : > { %6636 = vmatprep.mubr.msk.bf16.mxu1 %vm463_vm4, %v496_v15  ;;  %6716 = vmatprep.mubr.msk.bf16.mxu0 %vm463_vm4, %v1298_v16  ;;  %v8064_v15 = vld [vmem:[#allocation2 + $0x187] sm:$0xff]  ;;  %v8067_v16 = vld [vmem:[#allocation2 + $0x19f] sm:$0xff]  ;;  %v1828_v61 = vsel %vm555_vm0, %v6090_v14, 0 }
  0x54   : > { %6637 = vmatmul.mubr.msk.bf16.vlgmr.msra.gmra.mrb[0].mxu1 %vm463_vm4, %v497_v25  ;;  %6717 = vmatmul.mubr.msk.bf16.gmra.mrb[8].mxu0 %vm463_vm4, %v1299_v26  ;;  %v1452_v26 = vld [vmem:[#allocation2 + $0xdf] sm:$0xff] }
  0x55   : > { %6653 = vmatpush3.bf16.msra.mxu1 %v831_v28  ;;  %6640 = vmatprep.mubr.msk.bf16.mxu1 %vm463_vm4, %v498_v27  ;;  %v503_v28 = vpack.c.bf16 %v8067_v16, %v8064_v15 }
  0x56   : > { %6720 = vmatprep.mubr.msk.bf16.mxu0 %vm463_vm4, %v1300_v29  ;;  %7527 = vmatprep.subr.msk.bf16.mxu1 %vm555_vm0, %v6045_v30 }
  0x5c   : > { %6641 = vmatmul.mubr.msk.bf16.gmra.mrb[4].mxu1 %vm463_vm4, %v499_v41  ;;  %6721 = vmatmul.mubr.msk.bf16.gmra.mrb[12].mxu0 %vm463_vm4, %v1301_v42  ;;  %v997_v42 = vsel %vm555_vm0, %v6045_v30, 0 }
  0x5d   : > { %6644 = vmatprep.mubr.msk.bf16.mxu1 %vm463_vm4, %v500_v43  ;;  %6726 = vmatprep.mubr.msk.bf16.mxu0 %vm463_vm4, %v497_v25  ;;  %v1451_v25 = vld [vmem:[#allocation2 + $0xc7] sm:$0xff]  ;;  %v1460_v43 = vld [vmem:[#allocation2 + $0x1cf] sm:$0xff] }
  0x5e   : > { %v1464_v29 = vpack.c.bf16 %v1452_v26, %v1451_v25 }
  0x64   : > { %6645 = vmatmul.mubr.msk.bf16.gmra.mrb[8].mxu1 %vm463_vm4, %v501_v2  ;;  %6727 = vmatmul.mubr.msk.bf16.vlgmr.msra.gmra.mrb[0].mxu0 %vm463_vm4, %v498_v27  ;;  %v796_v27 = vpack.c.bf16 %v7899_v44, %v780_v5  ;;  %v1459_v44 = vld [vmem:[#allocation2 + $0x1b7] sm:$0xff] }
  0x65   : > { %6743 = vmatpush3.bf16.msra.mxu0 %v1662_v9  ;;  %6648 = vmatprep.mubr.msk.bf16.mxu1 %vm463_vm4, %v502_v4  ;;  %v1468_v58 = vpack.c.bf16 %v1460_v43, %v1459_v44 }
  0x66   : > { %6730 = vmatprep.mubr.msk.bf16.mxu0 %vm463_vm4, %v499_v41  ;;  %7533 = vmatprep.subr.msk.bf16.mxu0 %vm555_vm0, %v6090_v14  ;;  %v798_v41 = vpack.c.bf16 %v7940_v60, %v7938_v59  ;;  %v801_v60 = vpack.c.bf16 %v7997_v19, %v7976_v12  ;;  %v962_v12 = vpack.c.bf16 %v7991_v17, %v7972_v10  ;;  %v1626_v10 = vld [vmem:[#allocation2 + $0x1d0] sm:$0xff] }
  0x67   : > { %v969_v19 = vpack.c.bf16 %v1459_v44, %v8067_v16 }
  0x6c   : > { %6649 = vmatmul.mubr.msk.bf16.gmra.mrb[12].mxu1 %vm463_vm4, %v503_v28  ;;  %6731 = vmatmul.mubr.msk.bf16.gmra.mrb[4].mxu0 %vm463_vm4, %v1464_v29 }
  0x6d   : > { %6654 = vmatprep.mubr.msk.bf16.mxu1 %vm463_vm4, %v796_v27  ;;  %6734 = vmatprep.mubr.msk.bf16.mxu0 %vm463_vm4, %v501_v2  ;;  %v788_v2 = vld [vmem:[#allocation2 + $0xf9] sm:$0xff] }
  0x6e   : > { %v800_v59 = vpack.c.bf16 %v7974_v11, %v788_v2  ;;  %v1630_v11 = vpack.c.bf16 %v1618_v7, %v7903_v46  ;;  %v1625_v46 = vld [vmem:[#allocation2 + $0x1b8] sm:$0xff] }
  0x6f   : > { %v1634_v17 = vpack.c.bf16 %v1626_v10, %v1625_v46  ;;  %v1135_v39 = vpack.c.bf16 %v1625_v46, %v7963_v6 }
  0x74   : > { %6655 = vmatmul.mubr.msk.bf16.vlgmr.msra.gmra.mrb[0].mxu1 %vm463_vm4, %v797_v37  ;;  %6735 = vmatmul.mubr.msk.bf16.gmra.mrb[8].mxu0 %vm463_vm4, %v502_v4 }
  0x75   : > { %6671 = vmatpush3.bf16.msra.mxu1 %v997_v42  ;;  %6658 = vmatprep.mubr.msk.bf16.mxu1 %vm463_vm4, %v798_v41 }
  0x76   : > { %6738 = vmatprep.mubr.msk.bf16.mxu0 %vm463_vm4, %v503_v28  ;;  %7529 = vmatprep.subr.msk.bf16.mxu1 %vm555_vm0, %v7741_v1  ;;  %v802_v1 = vpack.c.bf16 %v8005_v23, %v7999_v20 }
  0x7c   : > { %6659 = vmatmul.mubr.msk.bf16.gmra.mrb[4].mxu1 %vm463_vm4, %v799_v49  ;;  %6739 = vmatmul.mubr.msk.bf16.gmra.mrb[12].mxu0 %vm463_vm4, %v1468_v58 }
  0x7d   : > { %6662 = vmatprep.mubr.msk.bf16.mxu1 %vm463_vm4, %v800_v59  ;;  %6744 = vmatprep.mubr.msk.bf16.mxu0 %vm463_vm4, %v7876_v32  ;;  %v803_v32 = vpack.c.bf16 %v8029_v34, %v8007_v24 }
  0x84   : > { %6663 = vmatmul.mubr.msk.bf16.gmra.mrb[8].mxu1 %vm463_vm4, %v801_v60  ;;  %6745 = vmatmul.mubr.msk.bf16.vlgmr.msra.gmra.mrb[0].mxu0 %vm463_vm4, %v7880_v35  ;;  %v963_v35 = vpack.c.bf16 %v8001_v21, %v7995_v18  ;;  %v966_v18 = vpack.c.bf16 %v8046_v55, %v8034_v38 }
  0x85   : > { %6761 = vmatpush3.bf16.msra.mxu0 %v1828_v61  ;;  %6666 = vmatprep.mubr.msk.bf16.mxu1 %vm463_vm4, %v802_v1 }
  0x86   : > { %6748 = vmatprep.mubr.msk.bf16.mxu0 %vm463_vm4, %v7925_v54  ;;  %v964_v54 = vpack.c.bf16 %v8024_v31, %v8003_v22 }
  0x8c   : > { %6667 = vmatmul.mubr.msk.bf16.gmra.mrb[12].mxu1 %vm463_vm4, %v803_v32  ;;  %6749 = vmatmul.mubr.msk.bf16.gmra.mrb[4].mxu0 %vm463_vm4, %v1630_v11 }
  0x8d   : > { %6672 = vmatprep.mubr.msk.bf16.mxu1 %vm463_vm4, %v962_v12  ;;  %6752 = vmatprep.mubr.msk.bf16.mxu0 %vm463_vm4, %v7946_v62  ;;  %v965_v62 = vpack.c.bf16 %v1451_v25, %v8027_v33 }
  0x94   : > { %6673 = vmatmul.mubr.msk.bf16.vlgmr.msra.gmra.mrb[0].mxu1 %vm463_vm4, %v963_v35  ;;  %6753 = vmatmul.mubr.msk.bf16.gmra.mrb[8].mxu0 %vm463_vm4, %v7952_v0  ;;  %v968_v0 = vpack.c.bf16 %v8064_v15, %v8052_v63 }
  0x95   : > { %7139 = vmatpush3.bf16.msra.mxu1 %v7749_v3  ;;  %6676 = vmatprep.mubr.msk.bf16.mxu1 %vm463_vm4, %v964_v54  ;;  %v967_v3 = vpack.c.bf16 %v8050_v57, %v8048_v56 }
  0x96   : > { %6756 = vmatprep.mubr.msk.bf16.mxu0 %vm463_vm4, %v7981_v13  ;;  %v1784_v13 = vld [vmem:[#allocation2 + $0xe1] sm:$0xff] }
  0x97   : > { %v1796_v20 = vpack.c.bf16 %v1784_v13, %v7969_v8  ;;  %v1792_v8 = vld [vmem:[#allocation2 + $0x1d1] sm:$0xff] }
  0x98   : > { %v1800_v40 = vpack.c.bf16 %v1792_v8, %v8031_v36 }
  0x9c   : > { %6677 = vmatmul.mubr.msk.bf16.gmra.mrb[4].mxu1 %vm463_vm4, %v965_v62  ;;  %6757 = vmatmul.mubr.msk.bf16.gmra.mrb[12].mxu0 %vm463_vm4, %v1634_v17 }
  0x9d   : > { %6680 = vmatprep.mubr.msk.bf16.mxu1 %vm463_vm4, %v966_v18  ;;  %6762 = vmatprep.mubr.msk.bf16.mxu0 %vm463_vm4, %v797_v37 }
  0xa4   : > { %6681 = vmatmul.mubr.msk.bf16.gmra.mrb[8].mxu1 %vm463_vm4, %v967_v3  ;;  %6763 = vmatmul.mubr.msk.bf16.vlgmr.msra.gmra.mrb[0].mxu0 %vm463_vm4, %v798_v41 }
  0xa5   : > { %6684 = vmatprep.mubr.msk.bf16.mxu1 %vm463_vm4, %v968_v0  ;;  %6766 = vmatprep.mubr.msk.bf16.mxu0 %vm463_vm4, %v799_v49 }
  0xac   : > { %6685 = vmatmul.mubr.msk.bf16.gmra.mrb[12].mxu1 %vm463_vm4, %v969_v19  ;;  %6767 = vmatmul.mubr.msk.bf16.gmra.mrb[4].mxu0 %vm463_vm4, %v1796_v20 }
  0xad   : > { %6698 = vmatprep.mubr.msk.bf16.mxu1 %vm463_vm4, %v1132_v45  ;;  %6770 = vmatprep.mubr.msk.bf16.mxu0 %vm463_vm4, %v801_v60 }
  0xb4   : > { %6699 = vmatmul.mubr.msk.bf16.vlgmr.msra.gmra.mrb[8].mxu1 %vm463_vm4, %v1133_v52  ;;  %6771 = vmatmul.mubr.msk.bf16.gmra.mrb[8].mxu0 %vm463_vm4, %v802_v1 }
  0xb5   : > { %6702 = vmatprep.mubr.msk.bf16.mxu1 %vm463_vm4, %v1134_v53  ;;  %6774 = vmatprep.mubr.msk.bf16.mxu0 %vm463_vm4, %v803_v32 }
  0xbc   : > { %6703 = vmatmul.mubr.msk.bf16.gmra.mrb[12].mxu1 %vm463_vm4, %v1135_v39  ;;  %6775 = vmatmul.mubr.msk.bf16.gmra.mrb[12].mxu0 %vm463_vm4, %v1800_v40 }
 0x167   : > { %v6674_v45 = vpop.f32.mrb[0].mxu1 }
 0x168   : > { %v1033_v47 = vpop.f32.mrb[1].mxu1 }
 0x169   : > { %v6675_v48 = vpop.f32.mrb[2].mxu1 }
 0x16a   : > { %v1036_v52 = vpop.f32.mrb[3].mxu1 }
 0x16f   : > { %v6678_v21 = vpop.f32.mrb[4].mxu1 }
 0x170   : > { %v1049_v22 = vpop.f32.mrb[5].mxu1 }
 0x171   : > { %v6679_v50 = vpop.f32.mrb[6].mxu1 }
 0x172   : > { %v1052_v51 = vpop.f32.mrb[7].mxu1 }
 0x177   : > { %v6764_v53 = vpop.f32.mrb[0].mxu0 }
 0x178   : > { %v8167_v23 = vadd.f32 %v6764_v53, %v6674_v45  ;;  %v1864_v24 = vpop.f32.mrb[1].mxu0 }
 0x179   : > { %v8169_v30 = vadd.f32 %v1864_v24, %v1033_v47  ;;  %v6765_v6 = vpop.f32.mrb[2].mxu0 }
 0x17a   : > { %v8171_v31 = vadd.f32 %v6765_v6, %v6675_v48  ;;  %v1867_v33 = vpop.f32.mrb[3].mxu0  ;;  %v1982_v38 = vmul.f32 %v8167_v23, %v8167_v23  ;;  %v1946_v9 = vsel %vm392_vm1, %v8167_v23, 0.0 }
 0x17b   : > { %v1980_v34 = vmul.f32 %v8169_v30, %v8169_v30  ;;  %v8175_v36 = vadd.f32 %v1867_v33, %v1036_v52  ;;  %v1943_v55 = vsel %vm392_vm1, %v8169_v30, 0.0 }
 0x17c   : > { %v1983_v63 = vmul.f32 %v8171_v31, %v8171_v31  ;;  %v1999_v29 = vsel %vm392_vm1, %v1982_v38, 0.0  ;;  %v1948_v27 = vsel %vm392_vm1, %v8171_v31, 0.0 }
 0x17d   : > { %v1944_v56 = vsel %vm392_vm1, %v8175_v36, 0.0  ;;  %v1981_v57 = vmul.f32 %v8175_v36, %v8175_v36  ;;  %v1996_v14 = vsel %vm392_vm1, %v1980_v34, 0.0 }
 0x17e   : > { %v1945_v4 = vadd.f32 %v1944_v56, %v1943_v55  ;;  %v2001_v42 = vsel %vm392_vm1, %v1983_v63, 0.0 }
 0x17f   : > { %v1997_v15 = vsel %vm392_vm1, %v1981_v57, 0.0  ;;  %v6768_v16 = vpop.f32.mrb[4].mxu0 }
 0x180   : > { %v1947_v25 = vadd.f32 %v1946_v9, %v1945_v4  ;;  %v1998_v26 = vadd.f32 %v1997_v15, %v1996_v14  ;;  %v8191_v5 = vadd.f32 %v6768_v16, %v6678_v21  ;;  %v1880_v28 = vpop.f32.mrb[5].mxu0 }
 0x181   : > { %v8196_v37 = vadd.f32 %v1880_v28, %v1049_v22  ;;  %v6769_v41 = vpop.f32.mrb[6].mxu0 }
 0x182   : > { %v2000_v44 = vadd.f32 %v1999_v29, %v1998_v26  ;;  %v1949_v43 = vadd.f32 %v1948_v27, %v1947_v25  ;;  %v1883_v2 = vpop.f32.mrb[7].mxu0  ;;  %v8203_v59 = vadd.f32 %v6769_v41, %v6679_v50  ;;  %v1986_v11 = vmul.f32 %v8191_v5, %v8191_v5 }
 0x183   : > { %v1950_v49 = vsel %vm392_vm1, %v8196_v37, 0.0  ;;  %v1984_v58 = vmul.f32 %v8196_v37, %v8196_v37  ;;  %v8205_v60 = vadd.f32 %v1883_v2, %v1052_v51  ;;  %v1954_v46 = vsel %vm392_vm1, %v8191_v5, 0.0 }
 0x184   : > { %v1951_v1 = vadd.f32 %v1950_v49, %v1949_v43  ;;  %v2002_v61 = vadd.f32 %v2001_v42, %v2000_v44  ;;  %v1987_v17 = vmul.f32 %v8203_v59, %v8203_v59  ;;  %v1956_v20 = vsel %vm392_vm1, %v8203_v59, 0.0 }
 0x185   : > { %v2003_v7 = vsel %vm392_vm1, %v1984_v58, 0.0  ;;  %v1952_v32 = vsel %vm392_vm1, %v8205_v60, 0.0  ;;  %v1985_v54 = vmul.f32 %v8205_v60, %v8205_v60  ;;  %v2007_v47 = vsel %vm392_vm1, %v1986_v11, 0.0 }
 0x186   : > { %v2004_v12 = vadd.f32 %v2003_v7, %v2002_v61  ;;  %v1953_v35 = vadd.f32 %v1952_v32, %v1951_v1  ;;  %v2009_v6 = vsel %vm392_vm1, %v1987_v17, 0.0 }
 0x187   : > { %v6700_v10 = vpop.f32.mrb[8].mxu1  ;;  %v6772_v62 = vpop.f32.mrb[8].mxu0  ;;  %v2005_v3 = vsel %vm392_vm1, %v1985_v54, 0.0 }
 0x188   : > { %v1955_v18 = vadd.f32 %v1954_v46, %v1953_v35  ;;  %v8219_v0 = vadd.f32 %v6772_v62, %v6700_v10  ;;  %v1231_v13 = vpop.f32.mrb[9].mxu1  ;;  %v1896_v19 = vpop.f32.mrb[9].mxu0  ;;  %v2006_v8 = vadd.f32 %v2005_v3, %v2004_v12 }
 0x189   : > { %v8223_v39 = vadd.f32 %v1896_v19, %v1231_v13  ;;  %v6701_v40 = vpop.f32.mrb[10].mxu1  ;;  %v6773_v45 = vpop.f32.mrb[10].mxu0 }
 0x18a   : > { %v1957_v48 = vadd.f32 %v1956_v20, %v1955_v18  ;;  %v8226_v52 = vadd.f32 %v6773_v45, %v6701_v40  ;;  %v1234_v21 = vpop.f32.mrb[11].mxu1  ;;  %v1899_v22 = vpop.f32.mrb[11].mxu0  ;;  %v2008_v50 = vadd.f32 %v2007_v47, %v2006_v8  ;;  %v1990_v57 = vmul.f32 %v8219_v0, %v8219_v0 }
 0x18b   : > { %v1958_v51 = vsel %vm392_vm1, %v8223_v39, 0.0  ;;  %v1988_v53 = vmul.f32 %v8223_v39, %v8223_v39  ;;  %v8232_v24 = vadd.f32 %v1899_v22, %v1234_v21  ;;  %v1962_v4 = vsel %vm392_vm1, %v8219_v0, 0.0 }
 0x18c   : > { %v1959_v33 = vadd.f32 %v1958_v51, %v1957_v48  ;;  %v2010_v34 = vadd.f32 %v2009_v6, %v2008_v50  ;;  %v1991_v25 = vmul.f32 %v8226_v52, %v8226_v52  ;;  %v1964_v41 = vsel %vm392_vm1, %v8226_v52, 0.0 }
 0x18d   : > { %v2011_v38 = vsel %vm392_vm1, %v1988_v53, 0.0  ;;  %v1960_v55 = vsel %vm392_vm1, %v8232_v24, 0.0  ;;  %v1989_v56 = vmul.f32 %v8232_v24, %v8232_v24  ;;  %v2015_v49 = vsel %vm392_vm1, %v1990_v57, 0.0 }
 0x18e   : > { %v1961_v63 = vadd.f32 %v1960_v55, %v1959_v33  ;;  %v2012_v9 = vadd.f32 %v2011_v38, %v2010_v34  ;;  %v2017_v54 = vsel %vm392_vm1, %v1991_v25, 0.0 }
 0x18f   : > { %v2013_v14 = vsel %vm392_vm1, %v1989_v56, 0.0  ;;  %v6704_v15 = vpop.f32.mrb[12].mxu1  ;;  %v6776_v16 = vpop.f32.mrb[12].mxu0 }
 0x190   : > { %v1963_v26 = vadd.f32 %v1962_v4, %v1961_v63  ;;  %v8247_v28 = vadd.f32 %v6776_v16, %v6704_v15  ;;  %v1247_v29 = vpop.f32.mrb[13].mxu1  ;;  %v1912_v27 = vpop.f32.mrb[13].mxu0  ;;  %v2014_v42 = vadd.f32 %v2013_v14, %v2012_v9 }
 0x191   : > { %v8251_v44 = vadd.f32 %v1912_v27, %v1247_v29  ;;  %v6705_v43 = vpop.f32.mrb[14].mxu1  ;;  %v6777_v2 = vpop.f32.mrb[14].mxu0 }
 0x192   : > { %v1965_v58 = vadd.f32 %v1964_v41, %v1963_v26  ;;  %v8254_v1 = vadd.f32 %v6777_v2, %v6705_v43  ;;  %v1250_v61 = vpop.f32.mrb[15].mxu1  ;;  %v1915_v7 = vpop.f32.mrb[15].mxu0  ;;  %v2016_v32 = vadd.f32 %v2015_v49, %v2014_v42  ;;  %v1994_v3 = vmul.f32 %v8247_v28, %v8247_v28  ;;  %v460_v2 = vld [vmem:[%s9474_s2] sm:$0x1] }
 0x193   : > { %v1966_v11 = vsel %vm392_vm1, %v8251_v44, 0.0  ;;  %v1992_v12 = vmul.f32 %v8251_v44, %v8251_v44  ;;  %v7155_v35 = vadd.f32 %v1915_v7, %v1250_v61  ;;  %v1970_v19 = vsel %vm392_vm1, %v8247_v28, 0.0  ;;  %v461_v7 = vld [vmem:[%s9475_s3] sm:$0x1] }
 0x194   : > { %v1967_v46 = vadd.f32 %v1966_v11, %v1965_v58  ;;  %v2018_v10 = vadd.f32 %v2017_v54, %v2016_v32  ;;  %v1995_v40 = vmul.f32 %v8254_v1, %v8254_v1  ;;  %v1972_v47 = vsel %vm392_vm1, %v8254_v1, 0.0 }
 0x195   : > { %v2019_v62 = vsel %vm392_vm1, %v1992_v12, 0.0  ;;  %v1968_v17 = vsel %vm392_vm1, %v7155_v35, 0.0  ;;  %v1993_v18 = vmul.f32 %v7155_v35, %v7155_v35  ;;  %v2023_v21 = vsel %vm392_vm1, %v1994_v3, 0.0 }
 0x196   : > { %v1969_v13 = vadd.f32 %v1968_v17, %v1967_v46  ;;  %v2020_v20 = vadd.f32 %v2019_v62, %v2018_v10  ;;  %v2025_v51 = vsel %vm392_vm1, %v1995_v40, 0.0  ;;  %v2044_v42 = vlaneseq }
 0x197   : > { %v2021_v8 = vsel %vm392_vm1, %v1993_v18, 0.0 }
 0x198   : > { %v1971_v45 = vadd.f32 %v1970_v19, %v1969_v13  ;;  %v2022_v48 = vadd.f32 %v2021_v8, %v2020_v20  ;;  %v2045_v43 = vshrl.u32 %v2044_v42, 7 }
 0x19a   : > { %v1973_v22 = vadd.f32 %v1972_v47, %v1971_v45  ;;  %v2024_v50 = vadd.f32 %v2023_v21, %v2022_v48  ;;  %v2046_v49 = vsub.s32 0, %v2045_v43 }
 0x19c   : > { %v1974_v53 = vrot.slane %v1973_v22, 4  ;;  %v2026_v6 = vadd.f32 %v2025_v51, %v2024_v50 }
 0x19e   : > { %v1975_v33 = vadd.f32 %v1974_v53, %v1973_v22  ;;  %v2027_v34 = vrot.slane %v2026_v6, 4 }
 0x1a0   : > { %v1976_v38 = vrot.slane %v1975_v33, 2  ;;  %v2028_v55 = vadd.f32 %v2027_v34, %v2026_v6 }
 0x1a2   : > { %v1977_v56 = vadd.f32 %v1976_v38, %v1975_v33  ;;  %v2029_v57 = vrot.slane %v2028_v55, 2 }
 0x1a4   : > { %v1978_v63 = vrot.slane %v1977_v56, 1  ;;  %v2030_v4 = vadd.f32 %v2029_v57, %v2028_v55 }
 0x1a6   : > { %v1979_v9 = vadd.f32 %v1978_v63, %v1977_v56  ;;  %v2031_v14 = vrot.slane %v2030_v4, 1 }
 0x1a8   : > { %v2033_v15 = vmul.f32 0.0078125, %v1979_v9  ;;  %v2032_v16 = vadd.f32 %v2031_v14, %v2030_v4 }
 0x1aa   : > { %v2035_v25 = vmul.f32 %v2033_v15, %v2033_v15  ;;  %v2034_v26 = vmul.f32 0.0078125, %v2032_v16 }
 0x1ac   : > { %v2036_v29 = vsub.f32 %v2034_v26, %v2035_v25 }
 0x1ae   : > { %v2037_v27 = vmax.f32 %v2036_v29, 0.0 }
 0x1b0   : > { %v2038_v41 = vadd.f32 1e-05, %v2037_v27 }
 0x1b2   : > { %7552 = vrsqrt.f32 %v2038_v41 }
 0x1bc   : > { %v7553_v58 = vpop.eup %7552 }
 0x1bd   : > { %v2040_v61 = vmul.f32 %v7553_v58, %v460_v2 }
 0x1bf   : > { %v2041_v32 = vmul.f32 %v2040_v61, %v2033_v15  ;;  %v2047_v11 = vrot.slane %v2040_v61, %v2046_v49 }
 0x1c1   : > { %v2042_v12 = vsub.f32 %v461_v7, %v2041_v32  ;;  %v2049_v54 = vmul.f32 %v8169_v30, %v2047_v11  ;;  %v2050_v46 = vmul.f32 %v8175_v36, %v2047_v11  ;;  %v2053_v10 = vmul.f32 %v8196_v37, %v2047_v11 }
 0x1c2   : > { %v2054_v62 = vmul.f32 %v8205_v60, %v2047_v11  ;;  %v2055_v17 = vmul.f32 %v8191_v5, %v2047_v11  ;;  %v2056_v18 = vmul.f32 %v8203_v59, %v2047_v11  ;;  %v2057_v3 = vmul.f32 %v8223_v39, %v2047_v11 }
 0x1c3   : > { %v2058_v13 = vmul.f32 %v8232_v24, %v2047_v11  ;;  %v2059_v19 = vmul.f32 %v8219_v0, %v2047_v11  ;;  %v2060_v20 = vmul.f32 %v8226_v52, %v2047_v11  ;;  %v2061_v30 = vmul.f32 %v8251_v44, %v2047_v11 }
 0x1c4   : > { %v2062_v8 = vmul.f32 %v7155_v35, %v2047_v11  ;;  %v2063_v36 = vmul.f32 %v8247_v28, %v2047_v11  ;;  %v2051_v37 = vmul.f32 %v8167_v23, %v2047_v11  ;;  %v2052_v60 = vmul.f32 %v8171_v31, %v2047_v11 }
 0x1c5   : > { %v2064_v5 = vmul.f32 %v8254_v1, %v2047_v11  ;;  %v2069_v59 = vrot.slane %v2042_v12, %v2046_v49 }
 0x1c7   : > { %v2071_v40 = vadd.f32 %v2069_v59, %v2049_v54  ;;  %v2072_v39 = vadd.f32 %v2069_v59, %v2050_v46  ;;  %v2073_v45 = vadd.f32 %v2069_v59, %v2051_v37  ;;  %v2074_v24 = vadd.f32 %v2069_v59, %v2052_v60 }
 0x1c8   : > { %v2075_v47 = vadd.f32 %v2069_v59, %v2053_v10  ;;  %v2076_v0 = vadd.f32 %v2069_v59, %v2054_v62  ;;  %v2077_v48 = vadd.f32 %v2069_v59, %v2055_v17  ;;  %v2078_v52 = vadd.f32 %v2069_v59, %v2056_v18 }
 0x1c9   : > { %v2079_v21 = vadd.f32 %v2069_v59, %v2057_v3  ;;  %v2080_v44 = vadd.f32 %v2069_v59, %v2058_v13  ;;  %v2081_v35 = vadd.f32 %v2069_v59, %v2059_v19  ;;  %v2082_v22 = vadd.f32 %v2069_v59, %v2060_v20 }
 0x1ca   : > { %v2083_v28 = vadd.f32 %v2069_v59, %v2061_v30  ;;  %v2084_v50 = vadd.f32 %v2069_v59, %v2062_v8  ;;  %v2085_v23 = vadd.f32 %v2069_v59, %v2063_v36  ;;  %v2086_v51 = vadd.f32 %v2069_v59, %v2064_v5 }
 0x1cb   : > { %v2087_v31 = vmax.f32 %v2071_v40, 0.0  ;;  %v2088_v53 = vmax.f32 %v2072_v39, 0.0  ;;  %v2089_v1 = vmax.f32 %v2073_v45, 0.0  ;;  %v2090_v6 = vmax.f32 %v2074_v24, 0.0 }
 0x1cc   : > { %v2091_v33 = vmax.f32 %v2075_v47, 0.0  ;;  %v2092_v34 = vmax.f32 %v2076_v0, 0.0  ;;  %v2093_v38 = vmax.f32 %v2077_v48, 0.0  ;;  %v2094_v55 = vmax.f32 %v2078_v52, 0.0 }
 0x1cd   : > { %v2095_v56 = vmax.f32 %v2079_v21, 0.0  ;;  %v2096_v57 = vmax.f32 %v2080_v44, 0.0  ;;  %v2097_v63 = vmax.f32 %v2081_v35, 0.0  ;;  %v2098_v4 = vmax.f32 %v2082_v22, 0.0  ;;  %2103 = vst.msk [vmem:[#allocation3] sm:$0xff] %vm392_vm1, %v2087_v31  ;;  %2104 = vst.msk [vmem:[#allocation3 + $0x8] sm:$0xff] %vm392_vm1, %v2088_v53 }
 0x1ce   : > { %2105 = vst.msk [vmem:[#allocation3 + $0x10] sm:$0xff] %vm392_vm1, %v2089_v1  ;;  %2106 = vst.msk [vmem:[#allocation3 + $0x18] sm:$0xff] %vm392_vm1, %v2090_v6  ;;  %v2099_v9 = vmax.f32 %v2083_v28, 0.0  ;;  %v2100_v14 = vmax.f32 %v2084_v50, 0.0  ;;  %v2101_v15 = vmax.f32 %v2085_v23, 0.0  ;;  %v2102_v16 = vmax.f32 %v2086_v51, 0.0 }
 0x1cf   : > { %2107 = vst.msk [vmem:[#allocation3 + $0x20] sm:$0xff] %vm392_vm1, %v2091_v33  ;;  %2108 = vst.msk [vmem:[#allocation3 + $0x28] sm:$0xff] %vm392_vm1, %v2092_v34 }
 0x1d0   : > { %2109 = vst.msk [vmem:[#allocation3 + $0x30] sm:$0xff] %vm392_vm1, %v2093_v38  ;;  %2110 = vst.msk [vmem:[#allocation3 + $0x38] sm:$0xff] %vm392_vm1, %v2094_v55 }
 0x1d1   : > { %2111 = vst.msk [vmem:[#allocation3 + $0x40] sm:$0xff] %vm392_vm1, %v2095_v56  ;;  %2112 = vst.msk [vmem:[#allocation3 + $0x48] sm:$0xff] %vm392_vm1, %v2096_v57 }
 0x1d2   : > { %2113 = vst.msk [vmem:[#allocation3 + $0x50] sm:$0xff] %vm392_vm1, %v2097_v63  ;;  %2114 = vst.msk [vmem:[#allocation3 + $0x58] sm:$0xff] %vm392_vm1, %v2098_v4 }
 0x1d3   : > { %2115 = vst.msk [vmem:[#allocation3 + $0x60] sm:$0xff] %vm392_vm1, %v2099_v9  ;;  %2116 = vst.msk [vmem:[#allocation3 + $0x68] sm:$0xff] %vm392_vm1, %v2100_v14 }
 0x1d4   : > { %2117 = vst.msk [vmem:[#allocation3 + $0x70] sm:$0xff] %vm392_vm1, %v2101_v15  ;;  %2118 = vst.msk [vmem:[#allocation3 + $0x78] sm:$0xff] %vm392_vm1, %v2102_v16 }
 0x1d5 PF: > { %v7554_v25 = vld [vmem:[%s7732_s25 + $0x10] sm:$0xff]   ;;  %vm2138_vm5 = vcmask 261120   ;;  %v7555_v26 = vld [vmem:[%s7732_s25 + $0x18] sm:$0xff]   ;;  %v8313_v29 = vld [vmem:[#allocation3] sm:$0xff]  ;;  %p6349_p5 = scmp.ne.s32.totalorder %s7714_s14, 1 }
 0x1d6   : > { %6778 = vmatprep.subr.bf16.mxu0 %v7554_v25  ;;  %9509 = vst [vmem:[#allocation7_spill] sm:$0xff] %v8313_v29  ;;  %2139 = vst.msk [vmem:[#allocation2 + $0x20] sm:$0xff] %vm2138_vm5, %v8313_v29  ;;  %v7556_v27 = vld [vmem:[%s7732_s25] sm:$0xff]   ;;  %v8318_v41 = vld [vmem:[#allocation3 + $0x8] sm:$0xff]  ;;  %vm5797_vm6 = vcmask (!%p6349_p5), 130112   ;;  %vm5808_vm7 = vcmask (!%p6349_p5), 1041409  }
 0x1d7   : > { %6779 = vmatpush3.bf16.msra.mxu0 %v7554_v25  ;;  %9510 = vst [vmem:[#allocation8_spill] sm:$0xff] %v8318_v41  ;;  %v8320_v42 = vld [vmem:[#allocation3 + $0x10] sm:$0xff]  ;;  %2140 = vst.msk [vmem:[#allocation2 + $0x38] sm:$0xff] %vm2138_vm5, %v8318_v41  ;;  %v8324_v43 = vld [vmem:[#allocation3 + $0x18] sm:$0xff]  ;;  %vm5811_vm8 = vcmask (!%p6349_p5), 123904   ;;  %vm5731_vm9 = vcmask (!%p6349_p5), 253952  }
 0x1d8   : > { %6780 = vmatprep.subr.bf16.mxu0 %v7555_v26  ;;  %9511 = vst [vmem:[#allocation9_spill] sm:$0xff] %v8320_v42  ;;  %9512 = vst [vmem:[#allocation10_spill] sm:$0xff] %v8324_v43  ;;  %v8326_v2 = vld [vmem:[#allocation3 + $0x20] sm:$0xff]  ;;  %v8334_v49 = vld [vmem:[#allocation3 + $0x28] sm:$0xff]  ;;  %vm5938_vm10 = vcmask (!%p6349_p5), 1024  }
 0x1d9   : > { %9513 = vst [vmem:[#allocation11_spill] sm:$0xff] %v8326_v2  ;;  %2141 = vst.msk [vmem:[#allocation2 + $0x50] sm:$0xff] %vm2138_vm5, %v8320_v42  ;;  %v8336_v58 = vld [vmem:[#allocation3 + $0x30] sm:$0xff]  ;;  %v8338_v61 = vld [vmem:[#allocation3 + $0x40] sm:$0xff] }
 0x1da   : > { %2142 = vst.msk [vmem:[#allocation2 + $0x68] sm:$0xff] %vm2138_vm5, %v8324_v43  ;;  %2143 = vst.msk [vmem:[#allocation2 + $0x80] sm:$0xff] %vm2138_vm5, %v8326_v2  ;;  %v2183_v7 = vld [vmem:[#allocation2 + $0x8] sm:$0xff]  ;;  %v8348_v11 = vld [vmem:[#allocation3 + $0x50] sm:$0xff] }
 0x1db   : > { %9514 = vst [vmem:[#allocation12_spill] sm:$0xff] %v8334_v49  ;;  %9515 = vst [vmem:[#allocation13_spill] sm:$0xff] %v8336_v58  ;;  %6781 = vmatpush3.bf16.msra.mxu0 %v7555_v26  ;;  %v8346_v32 = vld [vmem:[#allocation3 + $0x48] sm:$0xff]  ;;  %v8354_v12 = vld [vmem:[#allocation3 + $0x58] sm:$0xff] }
 0x1dc   : > { %9516 = vst [vmem:[#allocation14_spill] sm:$0xff] %v8338_v61  ;;  %2144 = vst.msk [vmem:[#allocation2 + $0x98] sm:$0xff] %vm2138_vm5, %v8334_v49  ;;  %6798 = vmatprep.subr.bf16.mxu0 %v7556_v27  ;;  %v8356_v54 = vld [vmem:[#allocation3 + $0x60] sm:$0xff]  ;;  %v8358_v46 = vld [vmem:[#allocation3 + $0x68] sm:$0xff] }
 0x1dd   : > { %2145 = vst.msk [vmem:[#allocation2 + $0xb0] sm:$0xff] %vm2138_vm5, %v8336_v58  ;;  %2147 = vst.msk [vmem:[#allocation2 + $0x110] sm:$0xff] %vm2138_vm5, %v8338_v61  ;;  %v8364_v10 = vld [vmem:[#allocation3 + $0x70] sm:$0xff]  ;;  %v8368_v62 = vld [vmem:[#allocation2 + $0x20] sm:$0xff] }
 0x1de   : > { %9517 = vst [vmem:[#allocation15_spill] sm:$0xff] %v8346_v32  ;;  %9518 = vst [vmem:[#allocation16_spill] sm:$0xff] %v8348_v11  ;;  %v2199_v17 = vpack.c.bf16 %v8368_v62, %v2183_v7  ;;  %v8373_v18 = vld [vmem:[#allocation2 + $0x38] sm:$0xff]  ;;  %v7557_v8 = vld [vmem:[%s7732_s25 + $0x8] sm:$0xff]  }
 0x1df   : > { %2148 = vst.msk [vmem:[#allocation2 + $0x128] sm:$0xff] %vm2138_vm5, %v8346_v32  ;;  %2149 = vst.msk [vmem:[#allocation2 + $0x140] sm:$0xff] %vm2138_vm5, %v8348_v11  ;;  %v2191_v60 = vld [vmem:[#allocation2 + $0xf8] sm:$0xff]  ;;  %v7558_v59 = vld [vmem:[%s7732_s25 + $0x20] sm:$0xff]  }
 0x1e0   : > { %9519 = vst [vmem:[#allocation17_spill] sm:$0xff] %v8354_v12  ;;  %9520 = vst [vmem:[#allocation18_spill] sm:$0xff] %v8356_v54  ;;  %v8375_v3 = vld [vmem:[#allocation2 + $0x50] sm:$0xff]  ;;  %6782 = vmatprep.mubr.msk.bf16.mxu0 %vm2138_vm5, %v2199_v17  ;;  %v8426_v21 = vld [vmem:[#allocation3 + $0x38] sm:$0xff] }
 0x1e1   : > { %9521 = vst [vmem:[#allocation19_spill] sm:$0xff] %v8358_v46  ;;  %2150 = vst.msk [vmem:[#allocation2 + $0x158] sm:$0xff] %vm2138_vm5, %v8354_v12  ;;  %v8377_v13 = vld [vmem:[#allocation2 + $0x68] sm:$0xff]  ;;  %v8379_v19 = vld [vmem:[#allocation2 + $0x80] sm:$0xff]  ;;  %v8384_v20 = vpack.c.bf16 %v8375_v3, %v8373_v18 }
 0x1e2   : > { %2151 = vst.msk [vmem:[#allocation2 + $0x170] sm:$0xff] %vm2138_vm5, %v8356_v54  ;;  %9522 = vst [vmem:[#allocation20_spill] sm:$0xff] %v8364_v10  ;;  %v8388_v30 = vpack.c.bf16 %v8379_v19, %v8377_v13  ;;  %v2155_v35 = vld [vmem:[#allocation2 + $0x7] sm:$0xff]  ;;  %v8434_v22 = vld [vmem:[#allocation3 + $0x78] sm:$0xff] }
 0x1e3   : > { %2152 = vst.msk [vmem:[#allocation2 + $0x188] sm:$0xff] %vm2138_vm5, %v8358_v46  ;;  %2153 = vst.msk [vmem:[#allocation2 + $0x1a0] sm:$0xff] %vm2138_vm5, %v8364_v10  ;;  %6783 = vmatmul.mubr.msk.bf16.vlgmr.msra.gmra.mrb[0].mxu0 %vm2138_vm5, %v8384_v20  ;;  %v8395_v36 = vld [vmem:[#allocation2 + $0x98] sm:$0xff]  ;;  %v8453_v53 = vld [vmem:[#allocation2 + $0x4f] sm:$0xff] }
 0x1e4   : > { %6799 = vmatpush3.bf16.msra.mxu0 %v7556_v27  ;;  %6786 = vmatprep.mubr.msk.bf16.mxu0 %vm2138_vm5, %v8388_v30  ;;  %v8397_v37 = vld [vmem:[#allocation2 + $0xb0] sm:$0xff]  ;;  %9523 = vst [vmem:[#allocation21_spill] sm:$0xff] %v8426_v21  ;;  %2146 = vst.msk [vmem:[#allocation2 + $0xc8] sm:$0xff] %vm2138_vm5, %v8426_v21  ;;  %v8442_v50 = vld [vmem:[#allocation2 + $0x1f] sm:$0xff] }
 0x1e5   : > { %v8399_v5 = vld [vmem:[#allocation2 + $0x110] sm:$0xff]  ;;  %6800 = vmatprep.subr.bf16.mxu0 %v7557_v8  ;;  %v8404_v40 = vpack.c.bf16 %v8397_v37, %v8395_v36  ;;  %9524 = vst [vmem:[#allocation22_spill] sm:$0xff] %v8434_v22  ;;  %2154 = vst.msk [vmem:[#allocation2 + $0x1b8] sm:$0xff] %vm2138_vm5, %v8434_v22  ;;  %v2171_v51 = vpack.c.bf16 %v8442_v50, %v2155_v35  ;;  %v8455_v1 = vld [vmem:[#allocation2 + $0x67] sm:$0xff] }
 0x1e6   : > { %v2203_v39 = vpack.c.bf16 %v8399_v5, %v2191_v60  ;;  %v8410_v45 = vld [vmem:[#allocation2 + $0x128] sm:$0xff]  ;;  %v8412_v24 = vld [vmem:[#allocation2 + $0x140] sm:$0xff]  ;;  %v8449_v31 = vld [vmem:[#allocation2 + $0x37] sm:$0xff]  ;;  %v2673_v41 = vpack.c.bf16 %v8455_v1, %v8453_v53 }
 0x1e7   : > { %v8420_v48 = vpack.c.bf16 %v8412_v24, %v8410_v45  ;;  %v8458_v6 = vld [vmem:[#allocation2 + $0x7f] sm:$0xff]  ;;  %v8462_v33 = vpack.c.bf16 %v8453_v53, %v8449_v31  ;;  %v7559_v34 = vld [vmem:[%s7732_s25 + $0x28] sm:$0xff]   ;;  %v8469_v55 = vld [vmem:[#allocation2 + $0x97] sm:$0xff]  ;;  %v2672_v42 = vpack.c.bf16 %v8449_v31, %v8442_v50 }
 0x1e8   : > { %6801 = vmatpush3.bf16.msra.mxu0 %v7557_v8  ;;  %v8414_v47 = vld [vmem:[#allocation2 + $0x158] sm:$0xff]  ;;  %v8467_v38 = vpack.c.bf16 %v8458_v6, %v8455_v1  ;;  %v8471_v56 = vld [vmem:[#allocation2 + $0xaf] sm:$0xff]  ;;  %v8488_v15 = vld [vmem:[#allocation2 + $0x127] sm:$0xff]  ;;  %v2674_v29 = vpack.c.bf16 %v8469_v55, %v8458_v6  ;;  %v2850_v1 = vpack.c.bf16 %v8373_v18, %v8368_v62  ;;  %v2851_v6 = vpack.c.bf16 %v8377_v13, %v8375_v3 }
 0x1e9   : > { %6818 = vmatprep.subr.bf16.mxu0 %v7558_v59  ;;  %v8416_v0 = vld [vmem:[#allocation2 + $0x170] sm:$0xff]  ;;  %v8482_v9 = vpack.c.bf16 %v8471_v56, %v8469_v55  ;;  %v8490_v16 = vld [vmem:[#allocation2 + $0x13f] sm:$0xff]  ;;  %v2852_v55 = vpack.c.bf16 %v8395_v36, %v8379_v19  ;;  %v2855_v3 = vpack.c.bf16 %v8414_v47, %v8412_v24  ;;  %v7567_v24 = vld [vmem:[%s7732_s25 + $0x68] sm:$0xff]  }
 0x1ea   : > { %v8424_v52 = vpack.c.bf16 %v8416_v0, %v8414_v47  ;;  %v8428_v44 = vld [vmem:[#allocation2 + $0x188] sm:$0xff]  ;;  %v8438_v28 = vld [vmem:[#allocation2 + $0x1a0] sm:$0xff]  ;;  %v2163_v57 = vld [vmem:[#allocation2 + $0xf7] sm:$0xff]  ;;  %v8498_v27 = vpack.c.bf16 %v8490_v16, %v8488_v15 }
 0x1eb   : > { %6787 = vmatmul.mubr.msk.bf16.gmra.mrb[4].mxu0 %vm2138_vm5, %v8404_v40  ;;  %v8446_v23 = vpack.c.bf16 %v8438_v28, %v8428_v44  ;;  %v8475_v63 = vld [vmem:[#allocation2 + $0x10f] sm:$0xff]  ;;  %v8492_v25 = vld [vmem:[#allocation2 + $0x157] sm:$0xff]  ;;  %v8508_v17 = vld [vmem:[#allocation2 + $0x187] sm:$0xff]  ;;  %v2856_v13 = vpack.c.bf16 %v8428_v44, %v8416_v0 }
 0x1ec   : > { %6790 = vmatprep.mubr.msk.bf16.mxu0 %vm2138_vm5, %v2203_v39  ;;  %v7560_v4 = vld [vmem:[%s7732_s25 + $0x30] sm:$0xff]   ;;  %v2175_v14 = vpack.c.bf16 %v8475_v63, %v2163_v57  ;;  %v8510_v8 = vld [vmem:[#allocation2 + $0x19f] sm:$0xff] }
 0x1ed   : > { %v8494_v26 = vld [vmem:[#allocation2 + $0x16f] sm:$0xff]  ;;  %v8516_v39 = vpack.c.bf16 %v8510_v8, %v8508_v17  ;;  %v7561_v10 = vld [vmem:[%s7732_s25 + $0x38] sm:$0xff]   ;;  %v7562_v11 = vld [vmem:[%s7732_s25 + $0x40] sm:$0xff]  }
 0x1ee   : > { %v8502_v7 = vpack.c.bf16 %v8494_v26, %v8492_v25  ;;  %v2478_v60 = vld [vmem:[#allocation2 + $0x9] sm:$0xff]  ;;  %v8545_v46 = vld [vmem:[#allocation2 + $0xb1] sm:$0xff]  ;;  %v2486_v54 = vld [vmem:[#allocation2 + $0xf9] sm:$0xff] }
 0x1ef   : > { %v8526_v57 = vld [vmem:[#allocation2 + $0x69] sm:$0xff]  ;;  %v8547_v12 = vld [vmem:[#allocation2 + $0x111] sm:$0xff]  ;;  %v8560_v21 = vld [vmem:[#allocation2 + $0x141] sm:$0xff] }
 0x1f0   : > { %v2498_v61 = vpack.c.bf16 %v8547_v12, %v2486_v54  ;;  %v8562_v58 = vld [vmem:[#allocation2 + $0x159] sm:$0xff]  ;;  %v8564_v49 = vld [vmem:[#allocation2 + $0x171] sm:$0xff]  ;;  %v3019_v47 = vld [vmem:[#allocation2 + $0xc9] sm:$0xff] }
 0x1f1   : > { %v8572_v54 = vpack.c.bf16 %v8564_v49, %v8562_v58  ;;  %v7564_v50 = vld [vmem:[%s7732_s25 + $0x50] sm:$0xff]   ;;  %v7566_v62 = vld [vmem:[%s7732_s25 + $0x60] sm:$0xff]   ;;  %v2849_v19 = vld [vmem:[#allocation2 + $0x1b8] sm:$0xff]  ;;  %v3031_v44 = vpack.c.bf16 %v3019_v47, %v8545_v46 }
 0x1f2   : > { %v2857_v36 = vpack.c.bf16 %v2849_v19, %v8438_v28  ;;  %v7568_v0 = vld [vmem:[%s7732_s25 + $0x70] sm:$0xff]  }
 0x1f3   : > { %6791 = vmatmul.mubr.msk.bf16.gmra.mrb[8].mxu0 %vm2138_vm5, %v8420_v48  ;;  %9526 = vst [vmem:[#allocation24_spill] sm:$0xff] %v8572_v54 }
 0x1f4   : > { %6794 = vmatprep.mubr.msk.bf16.mxu0 %vm2138_vm5, %v8424_v52 }
 0x1fb   : > { %6795 = vmatmul.mubr.msk.bf16.gmra.mrb[12].mxu0 %vm2138_vm5, %v8446_v23 }
 0x1fc   : > { %6802 = vmatprep.mubr.msk.bf16.mxu0 %vm2138_vm5, %v2171_v51  ;;  %v8522_v51 = vld [vmem:[#allocation2 + $0x39] sm:$0xff] }
 0x203   : > { %6803 = vmatmul.mubr.msk.bf16.vlgmr.msra.gmra.mrb[0].mxu0 %vm2138_vm5, %v8462_v33 }
 0x204   : > { %6819 = vmatpush3.bf16.msra.mxu0 %v7558_v59  ;;  %6806 = vmatprep.mubr.msk.bf16.mxu0 %vm2138_vm5, %v8467_v38  ;;  %v8512_v59 = vld [vmem:[#allocation2 + $0x21] sm:$0xff] }
 0x205   : > { %6820 = vmatprep.subr.bf16.mxu0 %v7559_v34  ;;  %v2494_v35 = vpack.c.bf16 %v8512_v59, %v2478_v60 }
 0x208   : > { %6821 = vmatpush3.bf16.msra.mxu0 %v7559_v34  ;;  %v8524_v34 = vld [vmem:[#allocation2 + $0x51] sm:$0xff] }
 0x209   : > { %6838 = vmatprep.subr.bf16.mxu0 %v7560_v4  ;;  %v8532_v22 = vpack.c.bf16 %v8524_v34, %v8522_v51 }
 0x20b   : > { %6807 = vmatmul.mubr.msk.bf16.gmra.mrb[4].mxu0 %vm2138_vm5, %v8482_v9 }
 0x20c   : > { %6810 = vmatprep.mubr.msk.bf16.mxu0 %vm2138_vm5, %v2175_v14  ;;  %v8528_v14 = vld [vmem:[#allocation2 + $0x81] sm:$0xff] }
 0x20d   : > { %v8536_v60 = vpack.c.bf16 %v8528_v14, %v8526_v57 }
 0x213   : > { %6811 = vmatmul.mubr.msk.bf16.gmra.mrb[8].mxu0 %vm2138_vm5, %v8498_v27 }
 0x214   : > { %6814 = vmatprep.mubr.msk.bf16.mxu0 %vm2138_vm5, %v8502_v7 }
 0x21b   : > { %6815 = vmatmul.mubr.msk.bf16.gmra.mrb[12].mxu0 %vm2138_vm5, %v8516_v39 }
 0x21c   : > { %6822 = vmatprep.mubr.msk.bf16.mxu0 %vm2138_vm5, %v2494_v35  ;;  %v8543_v35 = vld [vmem:[#allocation2 + $0x99] sm:$0xff] }
 0x21d   : > { %v8552_v32 = vpack.c.bf16 %v8545_v46, %v8543_v35  ;;  %v3027_v46 = vld [vmem:[#allocation2 + $0x1b9] sm:$0xff] }
 0x223   : > { %6823 = vmatmul.mubr.msk.bf16.vlgmr.msra.gmra.mrb[0].mxu0 %vm2138_vm5, %v8532_v22 }
 0x224   : > { %6839 = vmatpush3.bf16.msra.mxu0 %v7560_v4  ;;  %6826 = vmatprep.mubr.msk.bf16.mxu0 %vm2138_vm5, %v8536_v60  ;;  %v8558_v4 = vld [vmem:[#allocation2 + $0x129] sm:$0xff] }
 0x225   : > { %6840 = vmatprep.subr.bf16.mxu0 %v7561_v10  ;;  %v8568_v2 = vpack.c.bf16 %v8560_v21, %v8558_v4  ;;  %v3032_v28 = vpack.c.bf16 %v8558_v4, %v8547_v12 }
 0x227   : > { %9525 = vst [vmem:[#allocation23_spill] sm:$0xff] %v8568_v2 }
 0x228   : > { %6841 = vmatpush3.bf16.msra.mxu0 %v7561_v10  ;;  %v8580_v10 = vld [vmem:[#allocation2 + $0x1a1] sm:$0xff] }
 0x229   : > { %6858 = vmatprep.subr.bf16.mxu0 %v7562_v11  ;;  %v3035_v12 = vpack.c.bf16 %v3027_v46, %v8580_v10 }
 0x22b   : > { %6827 = vmatmul.mubr.msk.bf16.gmra.mrb[4].mxu0 %vm2138_vm5, %v8552_v32 }
 0x22c   : > { %6830 = vmatprep.mubr.msk.bf16.mxu0 %vm2138_vm5, %v2498_v61  ;;  %v8578_v61 = vld [vmem:[#allocation2 + $0x189] sm:$0xff] }
 0x22d   : > { %v8584_v43 = vpack.c.bf16 %v8580_v10, %v8578_v61 }
 0x233   : > { %6831 = vmatmul.mubr.msk.bf16.gmra.mrb[8].mxu0 %vm2138_vm5, %v8568_v2  ;;  %v8598_v2 = vld [vmem:[#allocation2 + $0xc7] sm:$0xff] }
 0x234   : > { %6834 = vmatprep.mubr.msk.bf16.mxu0 %vm2138_vm5, %v8572_v54  ;;  %v7563_v54 = vld [vmem:[%s7732_s25 + $0x48] sm:$0xff]   ;;  %v2675_v31 = vpack.c.bf16 %v8598_v2, %v8471_v56  ;;  %v7565_v56 = vld [vmem:[%s7732_s25 + $0x58] sm:$0xff]  }
 0x23b   : > { %6835 = vmatmul.mubr.msk.bf16.gmra.mrb[12].mxu0 %vm2138_vm5, %v8584_v43 }
 0x23c   : > { %6842 = vmatprep.mubr.msk.bf16.mxu0 %vm2138_vm5, %v2672_v42  ;;  %v2676_v42 = vpack.c.bf16 %v8488_v15, %v8475_v63  ;;  %v8628_v63 = vld [vmem:[#allocation2 + $0xc8] sm:$0xff]  ;;  %v2854_v15 = vpack.c.bf16 %v8410_v45, %v8399_v5  ;;  %v3029_v5 = vpack.c.bf16 %v8526_v57, %v8524_v34  ;;  %v3030_v45 = vpack.c.bf16 %v8543_v35, %v8528_v14 }
 0x23d   : > { %v2853_v18 = vpack.c.bf16 %v8628_v63, %v8397_v37  ;;  %v3028_v37 = vpack.c.bf16 %v8522_v51, %v8512_v59 }
 0x243   : > { %6843 = vmatmul.mubr.msk.bf16.vlgmr.msra.gmra.mrb[0].mxu0 %vm2138_vm5, %v2673_v41  ;;  %v2678_v41 = vpack.c.bf16 %v8508_v17, %v8494_v26  ;;  %v7569_v26 = vld [vmem:[%s7732_s25 + $0x78] sm:$0xff]   ;;  %v7572_v17 = vld [vmem:[%s7732_s25 + $0xa0] sm:$0xff]  }
 0x244   : > { %6859 = vmatpush3.bf16.msra.mxu0 %v7562_v11  ;;  %6846 = vmatprep.mubr.msk.bf16.mxu0 %vm2138_vm5, %v2674_v29  ;;  %v2677_v29 = vpack.c.bf16 %v8492_v25, %v8490_v16  ;;  %v8613_v11 = vld [vmem:[#allocation2 + $0x1b7] sm:$0xff]  ;;  %v3033_v16 = vpack.c.bf16 %v8562_v58, %v8560_v21  ;;  %v3034_v25 = vpack.c.bf16 %v8578_v61, %v8564_v49  ;;  %v3198_v49 = vld [vmem:[#allocation2 + $0xdf] sm:$0xff] }
 0x245   : > { %6860 = vmatprep.subr.bf16.mxu0 %v7563_v54  ;;  %v2679_v53 = vpack.c.bf16 %v8613_v11, %v8510_v8  ;;  %v7570_v58 = vld [vmem:[%s7732_s25 + $0x80] sm:$0xff]   ;;  %v3210_v21 = vpack.c.bf16 %v3198_v49, %v8598_v2  ;;  %v7571_v2 = vld [vmem:[%s7732_s25 + $0x88] sm:$0xff]   ;;  %6958 = vmatprep.subr.bf16.mxu1 %v7572_v17  ;;  %v8720_v8 = vld [vmem:[%s7732_s25 + $0x90] sm:$0xff]  }
 0x246   : > { %6959 = vmatpush3.bf16.msra.mxu1 %v7572_v17 }
 0x248   : > { %6861 = vmatpush3.bf16.msra.mxu0 %v7563_v54 }
 0x249   : > { %6878 = vmatprep.subr.bf16.mxu0 %v7564_v50 }
 0x24b   : > { %6847 = vmatmul.mubr.msk.bf16.gmra.mrb[4].mxu0 %vm2138_vm5, %v2675_v31 }
 0x24c   : > { %6850 = vmatprep.mubr.msk.bf16.mxu0 %vm2138_vm5, %v2676_v42 }
 0x253   : > { %6851 = vmatmul.mubr.msk.bf16.gmra.mrb[8].mxu0 %vm2138_vm5, %v2677_v29 }
 0x254   : > { %6854 = vmatprep.mubr.msk.bf16.mxu0 %vm2138_vm5, %v2678_v41 }
 0x25b   : > { %6855 = vmatmul.mubr.msk.bf16.gmra.mrb[12].mxu0 %vm2138_vm5, %v2679_v53 }
 0x25c   : > { %6862 = vmatprep.mubr.msk.bf16.mxu0 %vm2138_vm5, %v2850_v1 }
 0x263   : > { %6863 = vmatmul.mubr.msk.bf16.vlgmr.msra.gmra.mrb[0].mxu0 %vm2138_vm5, %v2851_v6 }
 0x264   : > { %6879 = vmatpush3.bf16.msra.mxu0 %v7564_v50  ;;  %6866 = vmatprep.mubr.msk.bf16.mxu0 %vm2138_vm5, %v2852_v55 }
 0x265   : > { %6880 = vmatprep.subr.bf16.mxu0 %v7565_v56 }
 0x268   : > { %6881 = vmatpush3.bf16.msra.mxu0 %v7565_v56 }
 0x269   : > { %6898 = vmatprep.subr.bf16.mxu0 %v7566_v62 }
 0x26b   : > { %6867 = vmatmul.mubr.msk.bf16.gmra.mrb[4].mxu0 %vm2138_vm5, %v2853_v18 }
 0x26c   : > { %6870 = vmatprep.mubr.msk.bf16.mxu0 %vm2138_vm5, %v2854_v15 }
 0x273   : > { %6871 = vmatmul.mubr.msk.bf16.gmra.mrb[8].mxu0 %vm2138_vm5, %v2855_v3 }
 0x274   : > { %6874 = vmatprep.mubr.msk.bf16.mxu0 %vm2138_vm5, %v2856_v13 }
 0x27b   : > { %6875 = vmatmul.mubr.msk.bf16.gmra.mrb[12].mxu0 %vm2138_vm5, %v2857_v36 }
 0x27c   : > { %6882 = vmatprep.mubr.msk.bf16.mxu0 %vm2138_vm5, %v3028_v37 }
 0x283   : > { %6883 = vmatmul.mubr.msk.bf16.vlgmr.msra.gmra.mrb[0].mxu0 %vm2138_vm5, %v3029_v5 }
 0x284   : > { %6899 = vmatpush3.bf16.msra.mxu0 %v7566_v62  ;;  %6886 = vmatprep.mubr.msk.bf16.mxu0 %vm2138_vm5, %v3030_v45 }
 0x285   : > { %6900 = vmatprep.subr.bf16.mxu0 %v7567_v24 }
 0x288   : > { %6901 = vmatpush3.bf16.msra.mxu0 %v7567_v24 }
 0x289   : > { %6918 = vmatprep.subr.bf16.mxu0 %v7568_v0 }
 0x28b   : > { %6887 = vmatmul.mubr.msk.bf16.gmra.mrb[4].mxu0 %vm2138_vm5, %v3031_v44 }
 0x28c   : > { %6890 = vmatprep.mubr.msk.bf16.mxu0 %vm2138_vm5, %v3032_v28 }
 0x293   : > { %6891 = vmatmul.mubr.msk.bf16.gmra.mrb[8].mxu0 %vm2138_vm5, %v3033_v16 }
 0x294   : > { %6894 = vmatprep.mubr.msk.bf16.mxu0 %vm2138_vm5, %v3034_v25 }
 0x29b   : > { %6895 = vmatmul.mubr.msk.bf16.gmra.mrb[12].mxu0 %vm2138_vm5, %v3035_v12 }
 0x29c   : > { %6902 = vmatprep.mubr.msk.bf16.mxu0 %vm2138_vm5, %v8462_v33  ;;  %v3206_v33 = vld [vmem:[#allocation2 + $0x1cf] sm:$0xff] }
 0x2a3   : > { %6903 = vmatmul.mubr.msk.bf16.vlgmr.msra.gmra.mrb[0].mxu0 %vm2138_vm5, %v8467_v38  ;;  %v3214_v38 = vpack.c.bf16 %v3206_v33, %v8613_v11 }
 0x2a4   : > { %6919 = vmatpush3.bf16.msra.mxu0 %v7568_v0  ;;  %6906 = vmatprep.mubr.msk.bf16.mxu0 %vm2138_vm5, %v8482_v9  ;;  %v3376_v9 = vld [vmem:[#allocation2 + $0xe0] sm:$0xff] }
 0x2a5   : > { %6920 = vmatprep.subr.bf16.mxu0 %v7569_v26 }
 0x2a8   : > { %6921 = vmatpush3.bf16.msra.mxu0 %v7569_v26 }
 0x2a9   : > { %6938 = vmatprep.subr.bf16.mxu0 %v7570_v58 }
 0x2ab   : > { %6907 = vmatmul.mubr.msk.bf16.gmra.mrb[4].mxu0 %vm2138_vm5, %v3210_v21 }
 0x2ac   : > { %6910 = vmatprep.mubr.msk.bf16.mxu0 %vm2138_vm5, %v8498_v27  ;;  %v3388_v27 = vpack.c.bf16 %v3376_v9, %v8628_v63 }
 0x2b3   : > { %6911 = vmatmul.mubr.msk.bf16.gmra.mrb[8].mxu0 %vm2138_vm5, %v8502_v7 }
 0x2b4   : > { %6914 = vmatprep.mubr.msk.bf16.mxu0 %vm2138_vm5, %v8516_v39 }
 0x2bb   : > { %6915 = vmatmul.mubr.msk.bf16.gmra.mrb[12].mxu0 %vm2138_vm5, %v3214_v38 }
 0x2bc   : > { %6922 = vmatprep.mubr.msk.bf16.mxu0 %vm2138_vm5, %v8384_v20  ;;  %v3384_v20 = vld [vmem:[#allocation2 + $0x1d0] sm:$0xff] }
 0x2c3   : > { %6923 = vmatmul.mubr.msk.bf16.vlgmr.msra.gmra.mrb[0].mxu0 %vm2138_vm5, %v8388_v30  ;;  %v3392_v30 = vpack.c.bf16 %v3384_v20, %v2849_v19 }
 0x2c4   : > { %6939 = vmatpush3.bf16.msra.mxu0 %v7570_v58  ;;  %6926 = vmatprep.mubr.msk.bf16.mxu0 %vm2138_vm5, %v8404_v40  ;;  %v3554_v40 = vld [vmem:[#allocation2 + $0xe1] sm:$0xff] }
 0x2c5   : > { %6940 = vmatprep.subr.bf16.mxu0 %v7571_v2 }
 0x2c8   : > { %6941 = vmatpush3.bf16.msra.mxu0 %v7571_v2 }
 0x2cb   : > { %6927 = vmatmul.mubr.msk.bf16.gmra.mrb[4].mxu0 %vm2138_vm5, %v3388_v27 }
 0x2cc   : > { %6930 = vmatprep.mubr.msk.bf16.mxu0 %vm2138_vm5, %v8420_v48  ;;  %v3566_v48 = vpack.c.bf16 %v3554_v40, %v3019_v47 }
 0x2d3   : > { %6931 = vmatmul.mubr.msk.bf16.gmra.mrb[8].mxu0 %vm2138_vm5, %v8424_v52  ;;  %v9527_v52 = vld [vmem:[#allocation23_spill] sm:$0xff] }
 0x2d4   : > { %6934 = vmatprep.mubr.msk.bf16.mxu0 %vm2138_vm5, %v8446_v23  ;;  %v9528_v23 = vld [vmem:[#allocation24_spill] sm:$0xff] }
 0x2db   : > { %6935 = vmatmul.mubr.msk.bf16.gmra.mrb[12].mxu0 %vm2138_vm5, %v3392_v30 }
 0x2dc   : > { %6942 = vmatprep.mubr.msk.bf16.mxu0 %vm2138_vm5, %v8532_v22  ;;  %v3562_v22 = vld [vmem:[#allocation2 + $0x1d1] sm:$0xff] }
 0x2dd   : > { %v3570_v7 = vpack.c.bf16 %v3562_v22, %v3027_v46 }
 0x2e3   : > { %6943 = vmatmul.mubr.msk.bf16.vlgmr.msra.gmra.mrb[0].mxu0 %vm2138_vm5, %v8536_v60 }
 0x2e4   : > { %6946 = vmatprep.mubr.msk.bf16.mxu0 %vm2138_vm5, %v8552_v32  ;;  %v7573_v32 = vld [vmem:[%s7732_s25 + $0xa8] sm:$0xff]  }
 0x2e5   : > { %6960 = vmatprep.subr.bf16.mxu1 %v7573_v32 }
 0x2e6   : > { %6961 = vmatpush3.bf16.msra.mxu1 %v7573_v32 }
 0x2e7   : > { %6978 = vmatprep.subr.bf16.mxu1 %v8720_v8 }
 0x2eb   : > { %6947 = vmatmul.mubr.msk.bf16.gmra.mrb[4].mxu0 %vm2138_vm5, %v3566_v48 }
 0x2ec   : > { %6950 = vmatprep.mubr.msk.bf16.mxu0 %vm2138_vm5, %v9527_v52 }
 0x2f3   : > { %6951 = vmatmul.mubr.msk.bf16.gmra.mrb[8].mxu0 %vm2138_vm5, %v9528_v23 }
 0x2f4   : > { %6954 = vmatprep.mubr.msk.bf16.mxu0 %vm2138_vm5, %v8584_v43 }
 0x2fb   : > { %6955 = vmatmul.mubr.msk.bf16.gmra.mrb[12].mxu0 %vm2138_vm5, %v3570_v7 }
 0x3b6   : > { %v8723_v59 = vpop.f32.mrb[0].mxu0 }
 0x3b7   : > { %v8725_v39 = vpop.f32.mrb[1].mxu0  ;;  %v3764_v57 = vmul.f32 %v8723_v59, %v8723_v59  ;;  %v3728_v54 = vsel %vm2138_vm5, %v8723_v59, 0.0 }
 0x3b8   : > { %v3762_v43 = vmul.f32 %v8725_v39, %v8725_v39  ;;  %v8729_v51 = vpop.f32.mrb[2].mxu0  ;;  %v3725_v14 = vsel %vm2138_vm5, %v8725_v39, 0.0 }
 0x3b9   : > { %v8731_v34 = vpop.f32.mrb[3].mxu0  ;;  %v3765_v10 = vmul.f32 %v8729_v51, %v8729_v51  ;;  %v3781_v29 = vsel %vm2138_vm5, %v3764_v57, 0.0  ;;  %v3730_v41 = vsel %vm2138_vm5, %v8729_v51, 0.0 }
 0x3ba   : > { %v3726_v60 = vsel %vm2138_vm5, %v8731_v34, 0.0  ;;  %v3763_v35 = vmul.f32 %v8731_v34, %v8731_v34  ;;  %v3778_v61 = vsel %vm2138_vm5, %v3762_v43, 0.0 }
 0x3bb   : > { %v3727_v4 = vadd.f32 %v3726_v60, %v3725_v14  ;;  %v3783_v55 = vsel %vm2138_vm5, %v3765_v10, 0.0 }
 0x3bc   : > { %v3779_v50 = vsel %vm2138_vm5, %v3763_v35, 0.0 }
 0x3bd   : > { %v3729_v31 = vadd.f32 %v3728_v54, %v3727_v4  ;;  %v3780_v42 = vadd.f32 %v3779_v50, %v3778_v61 }
 0x3be   : > { %v8750_v11 = vpop.f32.mrb[4].mxu0 }
 0x3bf   : > { %v3782_v53 = vadd.f32 %v3781_v29, %v3780_v42  ;;  %v8752_v1 = vpop.f32.mrb[5].mxu0  ;;  %v3731_v6 = vadd.f32 %v3730_v41, %v3729_v31  ;;  %v3768_v13 = vmul.f32 %v8750_v11, %v8750_v11  ;;  %v3736_v24 = vsel %vm2138_vm5, %v8750_v11, 0.0 }
 0x3c0   : > { %v3732_v56 = vsel %vm2138_vm5, %v8752_v1, 0.0  ;;  %v3766_v63 = vmul.f32 %v8752_v1, %v8752_v1  ;;  %v8759_v62 = vpop.f32.mrb[6].mxu0 }
 0x3c1   : > { %v3733_v18 = vadd.f32 %v3732_v56, %v3731_v6  ;;  %v3784_v15 = vadd.f32 %v3783_v55, %v3782_v53  ;;  %v8761_v3 = vpop.f32.mrb[7].mxu0  ;;  %v3769_v47 = vmul.f32 %v8759_v62, %v8759_v62  ;;  %v3789_v16 = vsel %vm2138_vm5, %v3768_v13, 0.0 }
 0x3c2   : > { %v3785_v19 = vsel %vm2138_vm5, %v3766_v63, 0.0  ;;  %v3734_v36 = vsel %vm2138_vm5, %v8761_v3, 0.0  ;;  %v3767_v37 = vmul.f32 %v8761_v3, %v8761_v3  ;;  %v3738_v25 = vsel %vm2138_vm5, %v8759_v62, 0.0 }
 0x3c3   : > { %v3786_v5 = vadd.f32 %v3785_v19, %v3784_v15  ;;  %v3735_v45 = vadd.f32 %v3734_v36, %v3733_v18  ;;  %v3791_v58 = vsel %vm2138_vm5, %v3769_v47, 0.0 }
 0x3c4   : > { %v3787_v0 = vsel %vm2138_vm5, %v3767_v37, 0.0 }
 0x3c5   : > { %v3737_v44 = vadd.f32 %v3736_v24, %v3735_v45  ;;  %v3788_v28 = vadd.f32 %v3787_v0, %v3786_v5 }
 0x3c6   : > { %v8778_v46 = vpop.f32.mrb[8].mxu0 }
 0x3c7   : > { %v3790_v12 = vadd.f32 %v3789_v16, %v3788_v28  ;;  %v8780_v26 = vpop.f32.mrb[9].mxu0  ;;  %v3739_v49 = vadd.f32 %v3738_v25, %v3737_v44  ;;  %v3772_v20 = vmul.f32 %v8778_v46, %v8778_v46  ;;  %v3744_v22 = vsel %vm2138_vm5, %v8778_v46, 0.0 }
 0x3c8   : > { %v3740_v21 = vsel %vm2138_vm5, %v8780_v26, 0.0  ;;  %v3770_v33 = vmul.f32 %v8780_v26, %v8780_v26  ;;  %v8787_v38 = vpop.f32.mrb[10].mxu0 }
 0x3c9   : > { %v3741_v2 = vadd.f32 %v3740_v21, %v3739_v49  ;;  %v3792_v9 = vadd.f32 %v3791_v58, %v3790_v12  ;;  %v8789_v27 = vpop.f32.mrb[11].mxu0  ;;  %v3773_v7 = vmul.f32 %v8787_v38, %v8787_v38  ;;  %v3797_v57 = vsel %vm2138_vm5, %v3772_v20, 0.0 }
 0x3ca   : > { %v3793_v30 = vsel %vm2138_vm5, %v3770_v33, 0.0  ;;  %v3742_v40 = vsel %vm2138_vm5, %v8789_v27, 0.0  ;;  %v3771_v48 = vmul.f32 %v8789_v27, %v8789_v27  ;;  %v3746_v14 = vsel %vm2138_vm5, %v8787_v38, 0.0 }
 0x3cb   : > { %v3794_v52 = vadd.f32 %v3793_v30, %v3792_v9  ;;  %v3743_v23 = vadd.f32 %v3742_v40, %v3741_v2  ;;  %v3799_v61 = vsel %vm2138_vm5, %v3773_v7, 0.0 }
 0x3cc   : > { %v3795_v17 = vsel %vm2138_vm5, %v3771_v48, 0.0 }
 0x3cd   : > { %v3745_v32 = vadd.f32 %v3744_v22, %v3743_v23  ;;  %v3796_v43 = vadd.f32 %v3795_v17, %v3794_v52  ;;  %v9501_v17 = vlaneseq }
 0x3ce   : > { %v8806_v60 = vpop.f32.mrb[12].mxu0 }
 0x3cf   : > { %v3798_v35 = vadd.f32 %v3797_v57, %v3796_v43  ;;  %v8808_v4 = vpop.f32.mrb[13].mxu0  ;;  %v3747_v54 = vadd.f32 %v3746_v14, %v3745_v32  ;;  %v3776_v53 = vmul.f32 %v8806_v60, %v8806_v60  ;;  %v3752_v15 = vsel %vm2138_vm5, %v8806_v60, 0.0  ;;  %v2135_v43 = vld [vmem:[%s7722_s19] sm:$0x1] }
 0x3d0   : > { %v3748_v10 = vsel %vm2138_vm5, %v8808_v4, 0.0  ;;  %v3774_v50 = vmul.f32 %v8808_v4, %v8808_v4  ;;  %v8815_v31 = vpop.f32.mrb[14].mxu0  ;;  %v8831_v32 = vshrl.u32 %v9501_v17, 7 }
 0x3d1   : > { %v3749_v42 = vadd.f32 %v3748_v10, %v3747_v54  ;;  %v3800_v29 = vadd.f32 %v3799_v61, %v3798_v35  ;;  %v3697_v41 = vpop.f32.mrb[15].mxu0  ;;  %v3777_v13 = vmul.f32 %v8815_v31, %v8815_v31  ;;  %v3805_v5 = vsel %vm2138_vm5, %v3776_v53, 0.0  ;;  %v2136_v54 = vld [vmem:[%s7727_s22] sm:$0x1] }
 0x3d2   : > { %v3801_v6 = vsel %vm2138_vm5, %v3774_v50, 0.0  ;;  %v3750_v55 = vsel %vm2138_vm5, %v3697_v41, 0.0  ;;  %v3775_v56 = vmul.f32 %v3697_v41, %v3697_v41  ;;  %v3754_v45 = vsel %vm2138_vm5, %v8815_v31, 0.0  ;;  %9529 = vst [vmem:[#allocation23_spill] sm:$0xff] %v8831_v32 }
 0x3d3   : > { %v3802_v63 = vadd.f32 %v3801_v6, %v3800_v29  ;;  %v3751_v18 = vadd.f32 %v3750_v55, %v3749_v42  ;;  %v3807_v0 = vsel %vm2138_vm5, %v3777_v13, 0.0  ;;  %v8835_v57 = vsub.s32 0, %v8831_v32 }
 0x3d4   : > { %v3803_v19 = vsel %vm2138_vm5, %v3775_v56, 0.0 }
 0x3d5   : > { %v3753_v36 = vadd.f32 %v3752_v15, %v3751_v18  ;;  %v3804_v37 = vadd.f32 %v3803_v19, %v3802_v63  ;;  %9530 = vst [vmem:[#allocation24_spill] sm:$0xff] %v8835_v57 }
 0x3d7   : > { %v3755_v24 = vadd.f32 %v3754_v45, %v3753_v36  ;;  %v3806_v47 = vadd.f32 %v3805_v5, %v3804_v37 }
 0x3d9   : > { %v3756_v44 = vrot.slane %v3755_v24, 4  ;;  %v3808_v28 = vadd.f32 %v3807_v0, %v3806_v47 }
 0x3db   : > { %v3757_v16 = vadd.f32 %v3756_v44, %v3755_v24  ;;  %v3809_v25 = vrot.slane %v3808_v28, 4 }
 0x3dd   : > { %v3758_v12 = vrot.slane %v3757_v16, 2  ;;  %v3810_v49 = vadd.f32 %v3809_v25, %v3808_v28 }
 0x3df   : > { %v3759_v58 = vadd.f32 %v3758_v12, %v3757_v16  ;;  %v3811_v21 = vrot.slane %v3810_v49, 2 }
 0x3e1   : > { %v3760_v33 = vrot.slane %v3759_v58, 1  ;;  %v3812_v2 = vadd.f32 %v3811_v21, %v3810_v49 }
 0x3e3   : > { %v3761_v9 = vadd.f32 %v3760_v33, %v3759_v58  ;;  %v3813_v20 = vrot.slane %v3812_v2, 1 }
 0x3e5   : > { %v3814_v30 = vadd.f32 %v3813_v20, %v3812_v2  ;;  %v3815_v40 = vmul.f32 0.0078125, %v3761_v9 }
 0x3e7   : > { %v3816_v48 = vmul.f32 0.0078125, %v3814_v30  ;;  %v3817_v52 = vmul.f32 %v3815_v40, %v3815_v40 }
 0x3e9   : > { %v3818_v23 = vsub.f32 %v3816_v48, %v3817_v52  ;;  %v3934_v52 = vld [vmem:[#allocation2 + $0x8] sm:$0xff] }
 0x3eb   : > { %v3819_v22 = vmax.f32 %v3818_v23, 0.0 }
 0x3ed   : > { %v3820_v7 = vadd.f32 1e-05, %v3819_v22 }
 0x3ef   : > { %7590 = vrsqrt.f32 %v3820_v7 }
 0x3f9   : > { %v7591_v14 = vpop.eup %7590 }
 0x3fa   : > { %v3822_v35 = vmul.f32 %v7591_v14, %v2135_v43 }
 0x3fc   : > { %v3823_v61 = vmul.f32 %v3822_v35, %v3815_v40  ;;  %v3829_v10 = vrot.slane %v3822_v35, %v8835_v57 }
 0x3fe   : > { %v3824_v50 = vsub.f32 %v2136_v54, %v3823_v61  ;;  %v3844_v42 = vmul.f32 %v3829_v10, %v3697_v41  ;;  %v3831_v29 = vmul.f32 %v3829_v10, %v8725_v39  ;;  %v3832_v53 = vmul.f32 %v3829_v10, %v8731_v34 }
 0x3ff   : > { %v3833_v6 = vmul.f32 %v8723_v59, %v3829_v10  ;;  %v3834_v55 = vmul.f32 %v8729_v51, %v3829_v10  ;;  %v3835_v56 = vmul.f32 %v3829_v10, %v8752_v1  ;;  %v3836_v63 = vmul.f32 %v3829_v10, %v8761_v3 }
 0x400   : > { %v3851_v18 = vrot.slane %v3824_v50, %v8835_v57  ;;  %v3837_v15 = vmul.f32 %v8750_v11, %v3829_v10  ;;  %v3839_v13 = vmul.f32 %v3829_v10, %v8780_v26  ;;  %v3840_v41 = vmul.f32 %v3829_v10, %v8789_v27  ;;  %v7575_v50 = vld [vmem:[%s7732_s25 + $0x98] sm:$0xff]  }
 0x401   : > { %v3841_v39 = vmul.f32 %v8778_v46, %v3829_v10  ;;  %v3842_v34 = vmul.f32 %v8787_v38, %v3829_v10  ;;  %v3843_v59 = vmul.f32 %v3829_v10, %v8808_v4  ;;  %v3845_v51 = vmul.f32 %v8806_v60, %v3829_v10  ;;  %v7581_v57 = vld [vmem:[%s7732_s25 + $0xd8] sm:$0xff]  }
 0x402   : > { %v3866_v19 = vadd.f32 %v3851_v18, %v3844_v42  ;;  %v3853_v1 = vadd.f32 %v3851_v18, %v3831_v29  ;;  %v3854_v36 = vadd.f32 %v3851_v18, %v3832_v53  ;;  %v3855_v3 = vadd.f32 %v3851_v18, %v3833_v6 }
 0x403   : > { %v3856_v37 = vadd.f32 %v3851_v18, %v3834_v55  ;;  %v3857_v5 = vadd.f32 %v3851_v18, %v3835_v56  ;;  %v3858_v45 = vadd.f32 %v3851_v18, %v3836_v63  ;;  %v3859_v11 = vadd.f32 %v3851_v18, %v3837_v15 }
 0x404   : > { %v3882_v24 = vmax.f32 %v3866_v19, 0.0  ;;  %v3869_v26 = vmax.f32 %v3853_v1, 0.0  ;;  %v3870_v47 = vmax.f32 %v3854_v36, 0.0  ;;  %v3871_v27 = vmax.f32 %v3855_v3, 0.0 }
 0x405   : > { %v3872_v0 = vmax.f32 %v3856_v37, 0.0  ;;  %v3873_v46 = vmax.f32 %v3857_v5, 0.0  ;;  %v3874_v44 = vmax.f32 %v3858_v45, 0.0  ;;  %v3875_v38 = vmax.f32 %v3859_v11, 0.0 }
 0x406   : > { %3902 = vst.msk [vmem:[#allocation2 + $0x188] sm:$0xff] %vm2138_vm5, %v3882_v24  ;;  %3889 = vst.msk [vmem:[#allocation2 + $0x20] sm:$0xff] %vm2138_vm5, %v3869_v26  ;;  %v3861_v60 = vadd.f32 %v3851_v18, %v3839_v13  ;;  %v3862_v4 = vadd.f32 %v3851_v18, %v3840_v41  ;;  %v3863_v28 = vadd.f32 %v3851_v18, %v3841_v39  ;;  %v7576_v41 = vld [vmem:[%s7732_s25 + $0xb0] sm:$0xff]  }
 0x407   : > { %3890 = vst.msk [vmem:[#allocation2 + $0x38] sm:$0xff] %vm2138_vm5, %v3870_v47  ;;  %3891 = vst.msk [vmem:[#allocation2 + $0x50] sm:$0xff] %vm2138_vm5, %v3871_v27  ;;  %v3864_v16 = vadd.f32 %v3851_v18, %v3842_v34  ;;  %v3865_v25 = vadd.f32 %v3851_v18, %v3843_v59  ;;  %v3867_v12 = vadd.f32 %v3851_v18, %v3845_v51  ;;  %v7579_v34 = vld [vmem:[%s7732_s25 + $0xc8] sm:$0xff]  }
 0x408   : > { %3892 = vst.msk [vmem:[#allocation2 + $0x68] sm:$0xff] %vm2138_vm5, %v3872_v0  ;;  %3893 = vst.msk [vmem:[#allocation2 + $0x80] sm:$0xff] %vm2138_vm5, %v3873_v46  ;;  %v3838_v49 = vmul.f32 %v8759_v62, %v3829_v10  ;;  %v3846_v58 = vmul.f32 %v8815_v31, %v3829_v10  ;;  %v3877_v21 = vmax.f32 %v3861_v60, 0.0  ;;  %v3878_v33 = vmax.f32 %v3862_v4, 0.0  ;;  %v4229_v46 = vld [vmem:[#allocation2 + $0x9] sm:$0xff] }
 0x409   : > { %3894 = vst.msk [vmem:[#allocation2 + $0x98] sm:$0xff] %vm2138_vm5, %v3874_v44  ;;  %3895 = vst.msk [vmem:[#allocation2 + $0xb0] sm:$0xff] %vm2138_vm5, %v3875_v38  ;;  %v3879_v2 = vmax.f32 %v3863_v28, 0.0  ;;  %v3880_v9 = vmax.f32 %v3864_v16, 0.0  ;;  %v3881_v20 = vmax.f32 %v3865_v25, 0.0  ;;  %v3883_v30 = vmax.f32 %v3867_v12, 0.0 }
 0x40a   : > { %v3860_v40 = vadd.f32 %v3851_v18, %v3838_v49  ;;  %v3868_v48 = vadd.f32 %v3851_v18, %v3846_v58  ;;  %3897 = vst.msk [vmem:[#allocation2 + $0x110] sm:$0xff] %vm2138_vm5, %v3877_v21  ;;  %3898 = vst.msk [vmem:[#allocation2 + $0x128] sm:$0xff] %vm2138_vm5, %v3878_v33  ;;  %v3905_v49 = vld [vmem:[#allocation2 + $0x7] sm:$0xff] }
 0x40b   : > { %3899 = vst.msk [vmem:[#allocation2 + $0x140] sm:$0xff] %vm2138_vm5, %v3879_v2  ;;  %3900 = vst.msk [vmem:[#allocation2 + $0x158] sm:$0xff] %vm2138_vm5, %v3880_v9 }
 0x40c   : > { %3901 = vst.msk [vmem:[#allocation2 + $0x170] sm:$0xff] %vm2138_vm5, %v3881_v20  ;;  %3903 = vst.msk [vmem:[#allocation2 + $0x1a0] sm:$0xff] %vm2138_vm5, %v3883_v30  ;;  %v3876_v62 = vmax.f32 %v3860_v40, 0.0  ;;  %v3884_v31 = vmax.f32 %v3868_v48, 0.0  ;;  %v7577_v48 = vld [vmem:[%s7732_s25 + $0xb8] sm:$0xff]  }
 0x40d   : > { %v8869_v23 = vld [vmem:[#allocation2 + $0x20] sm:$0xff]  ;;  %v8900_v6 = vld [vmem:[#allocation2 + $0x188] sm:$0xff] }
 0x40e   : > { %v8871_v22 = vld [vmem:[#allocation2 + $0x38] sm:$0xff]  ;;  %v8873_v7 = vld [vmem:[#allocation2 + $0x50] sm:$0xff]  ;;  %3896 = vst.msk [vmem:[#allocation2 + $0xc8] sm:$0xff] %vm2138_vm5, %v3876_v62  ;;  %3904 = vst.msk [vmem:[#allocation2 + $0x1b8] sm:$0xff] %vm2138_vm5, %v3884_v31  ;;  %v3950_v43 = vpack.c.bf16 %v8869_v23, %v3934_v52 }
 0x40f   : > { %v8880_v14 = vpack.c.bf16 %v8873_v7, %v8871_v22  ;;  %v8882_v35 = vld [vmem:[#allocation2 + $0x68] sm:$0xff]  ;;  %v8884_v54 = vld [vmem:[#allocation2 + $0x80] sm:$0xff]  ;;  %v8934_v36 = vld [vmem:[#allocation2 + $0x51] sm:$0xff] }
 0x410   : > { %v8886_v61 = vld [vmem:[#allocation2 + $0x98] sm:$0xff]  ;;  %6962 = vmatprep.mubr.msk.bf16.mxu1 %vm2138_vm5, %v3950_v43  ;;  %v8898_v53 = vpack.c.bf16 %v8884_v54, %v8882_v35  ;;  %v8924_v59 = vld [vmem:[#allocation2 + $0xb0] sm:$0xff]  ;;  %v8926_v51 = vld [vmem:[#allocation2 + $0x21] sm:$0xff] }
 0x411   : > { %6963 = vmatmul.mubr.msk.bf16.vlgmr.msra.gmra.mrb[0].mxu1 %vm2138_vm5, %v8880_v14  ;;  %v8904_v55 = vld [vmem:[#allocation2 + $0x110] sm:$0xff]  ;;  %v8906_v56 = vld [vmem:[#allocation2 + $0x128] sm:$0xff]  ;;  %v8928_v19 = vld [vmem:[#allocation2 + $0x39] sm:$0xff]  ;;  %v8932_v1 = vpack.c.bf16 %v8924_v59, %v8886_v61  ;;  %v4245_v26 = vpack.c.bf16 %v8926_v51, %v4229_v46 }
 0x412   : > { %v8908_v63 = vld [vmem:[#allocation2 + $0x140] sm:$0xff]  ;;  %6979 = vmatpush3.bf16.msra.mxu1 %v8720_v8  ;;  %6966 = vmatprep.mubr.msk.bf16.mxu1 %vm2138_vm5, %v8898_v53  ;;  %v8913_v18 = vld [vmem:[#allocation2 + $0x158] sm:$0xff]  ;;  %v8936_v3 = vld [vmem:[#allocation2 + $0x69] sm:$0xff]  ;;  %v9037_v5 = vpack.c.bf16 %v8934_v36, %v8928_v19 }
 0x413   : > { %v8915_v15 = vld [vmem:[#allocation2 + $0x170] sm:$0xff]  ;;  %6980 = vmatprep.subr.bf16.mxu1 %v7575_v50  ;;  %v3942_v8 = vld [vmem:[#allocation2 + $0xf8] sm:$0xff]  ;;  %v8938_v37 = vld [vmem:[#allocation2 + $0x81] sm:$0xff]  ;;  %v8972_v16 = vpack.c.bf16 %v8908_v63, %v8906_v56 }
 0x414   : > { %v3954_v45 = vpack.c.bf16 %v8904_v55, %v3942_v8  ;;  %v8943_v11 = vld [vmem:[#allocation2 + $0x99] sm:$0xff]  ;;  %v8945_v24 = vld [vmem:[#allocation2 + $0x111] sm:$0xff]  ;;  %v8951_v47 = vld [vmem:[#allocation2 + $0x129] sm:$0xff]  ;;  %v8976_v25 = vpack.c.bf16 %v8915_v15, %v8913_v18  ;;  %v9042_v39 = vpack.c.bf16 %v8938_v37, %v8936_v3 }
 0x415   : > { %v8953_v27 = vld [vmem:[#allocation2 + $0x141] sm:$0xff]  ;;  %v8955_v0 = vld [vmem:[#allocation2 + $0x159] sm:$0xff]  ;;  %v8960_v44 = vld [vmem:[#allocation2 + $0x171] sm:$0xff] }
 0x416   : > { %6981 = vmatpush3.bf16.msra.mxu1 %v7575_v50  ;;  %v8962_v38 = vld [vmem:[#allocation2 + $0x189] sm:$0xff]  ;;  %v8982_v12 = vld [vmem:[#allocation2 + $0x1a0] sm:$0xff]  ;;  %v3907_v2 = vld [vmem:[#allocation2 + $0x37] sm:$0xff] }
 0x417   : > { %6998 = vmatprep.subr.bf16.mxu1 %v7576_v41  ;;  %v8984_v58 = vld [vmem:[#allocation2 + $0x1f] sm:$0xff]  ;;  %v8988_v21 = vpack.c.bf16 %v8982_v12, %v8900_v6  ;;  %v8994_v9 = vld [vmem:[#allocation2 + $0x4f] sm:$0xff]  ;;  %v8996_v20 = vld [vmem:[#allocation2 + $0x67] sm:$0xff] }
 0x418   : > { %v3921_v33 = vpack.c.bf16 %v8984_v58, %v3905_v49  ;;  %v8998_v30 = vld [vmem:[#allocation2 + $0x7f] sm:$0xff]  ;;  %v9001_v40 = vpack.c.bf16 %v8994_v9, %v3907_v2  ;;  %v3911_v31 = vld [vmem:[#allocation2 + $0x97] sm:$0xff]  ;;  %v9013_v43 = vld [vmem:[#allocation2 + $0xaf] sm:$0xff]  ;;  %v4423_v10 = vpack.c.bf16 %v3907_v2, %v8984_v58  ;;  %v4424_v32 = vpack.c.bf16 %v8996_v20, %v8994_v9 }
 0x419   : > { %6967 = vmatmul.mubr.msk.bf16.gmra.mrb[4].mxu1 %vm2138_vm5, %v8932_v1  ;;  %v9006_v52 = vpack.c.bf16 %v8998_v30, %v8996_v20  ;;  %v7578_v62 = vld [vmem:[%s7732_s25 + $0xc0] sm:$0xff]   ;;  %v3913_v50 = vld [vmem:[#allocation2 + $0xf7] sm:$0xff]  ;;  %v3914_v8 = vld [vmem:[#allocation2 + $0x10f] sm:$0xff] }
 0x41a   : > { %6970 = vmatprep.mubr.msk.bf16.mxu1 %vm2138_vm5, %v3954_v45  ;;  %v9016_v45 = vpack.c.bf16 %v9013_v43, %v3911_v31  ;;  %v3925_v49 = vpack.c.bf16 %v3914_v8, %v3913_v50  ;;  %v3917_v17 = vld [vmem:[#allocation2 + $0x157] sm:$0xff]  ;;  %v3918_v28 = vld [vmem:[#allocation2 + $0x16f] sm:$0xff]  ;;  %v3920_v50 = vld [vmem:[#allocation2 + $0x19f] sm:$0xff] }
 0x41b   : > { %v9023_v60 = vpack.c.bf16 %v3918_v28, %v3917_v17  ;;  %v7580_v46 = vld [vmem:[%s7732_s25 + $0xd0] sm:$0xff]   ;;  %v4414_v58 = vld [vmem:[#allocation2 + $0xc7] sm:$0xff] }
 0x41c   : > { %v9049_v13 = vld [vmem:[#allocation2 + $0xb1] sm:$0xff]  ;;  %v4426_v2 = vpack.c.bf16 %v4414_v58, %v9013_v43  ;;  %v9534_v43 = vpack.c.bf16 %v8882_v35, %v8873_v7  ;;  %v9537_v7 = vpack.c.bf16 %v8913_v18, %v8908_v63  ;;  %v9538_v35 = vpack.c.bf16 %v8900_v6, %v8915_v15  ;;  %v7586_v18 = vld [vmem:[%s7732_s25 + $0x100] sm:$0xff]   ;;  %v4770_v15 = vld [vmem:[#allocation2 + $0xc9] sm:$0xff] }
 0x41d   : > { %v9053_v29 = vpack.c.bf16 %v9049_v13, %v8943_v11  ;;  %v9540_v63 = vpack.c.bf16 %v8936_v3, %v8934_v36  ;;  %v9541_v6 = vpack.c.bf16 %v8943_v11, %v8938_v37  ;;  %v9544_v36 = vpack.c.bf16 %v8962_v38, %v8960_v44  ;;  %v4778_v3 = vld [vmem:[#allocation2 + $0x1b9] sm:$0xff]  ;;  %v7587_v37 = vld [vmem:[%s7732_s25 + $0x108] sm:$0xff]   ;;  %v7588_v11 = vld [vmem:[%s7732_s25 + $0x110] sm:$0xff]  }
 0x421   : > { %6971 = vmatmul.mubr.msk.bf16.gmra.mrb[8].mxu1 %vm2138_vm5, %v8972_v16 }
 0x422   : > { %6974 = vmatprep.mubr.msk.bf16.mxu1 %vm2138_vm5, %v8976_v25 }
 0x429   : > { %6975 = vmatmul.mubr.msk.bf16.gmra.mrb[12].mxu1 %vm2138_vm5, %v8988_v21 }
 0x42a   : > { %6982 = vmatprep.mubr.msk.bf16.mxu1 %vm2138_vm5, %v3921_v33  ;;  %v3916_v33 = vld [vmem:[#allocation2 + $0x13f] sm:$0xff] }
 0x42b   : > { %v4428_v9 = vpack.c.bf16 %v3917_v17, %v3916_v33  ;;  %v9535_v17 = vpack.c.bf16 %v8886_v61, %v8884_v54  ;;  %v4600_v54 = vld [vmem:[#allocation2 + $0x1b8] sm:$0xff] }
 0x42c   : > { %v4608_v61 = vpack.c.bf16 %v4600_v54, %v8982_v12 }
 0x431   : > { %6983 = vmatmul.mubr.msk.bf16.vlgmr.msra.gmra.mrb[0].mxu1 %vm2138_vm5, %v9001_v40 }
 0x432   : > { %6999 = vmatpush3.bf16.msra.mxu1 %v7576_v41  ;;  %6986 = vmatprep.mubr.msk.bf16.mxu1 %vm2138_vm5, %v9006_v52  ;;  %v3915_v41 = vld [vmem:[#allocation2 + $0x127] sm:$0xff] }
 0x433   : > { %7000 = vmatprep.subr.bf16.mxu1 %v7577_v48  ;;  %v9021_v4 = vpack.c.bf16 %v3916_v33, %v3915_v41 }
 0x436   : > { %7001 = vmatpush3.bf16.msra.mxu1 %v7577_v48  ;;  %v3919_v48 = vld [vmem:[#allocation2 + $0x187] sm:$0xff] }
 0x437   : > { %7018 = vmatprep.subr.bf16.mxu1 %v7578_v62  ;;  %v4429_v20 = vpack.c.bf16 %v3919_v48, %v3918_v28  ;;  %v7584_v28 = vld [vmem:[%s7732_s25 + $0xf0] sm:$0xff]  }
 0x439   : > { %6987 = vmatmul.mubr.msk.bf16.gmra.mrb[4].mxu1 %vm2138_vm5, %v9016_v45 }
 0x43a   : > { %6990 = vmatprep.mubr.msk.bf16.mxu1 %vm2138_vm5, %v3925_v49  ;;  %v9029_v49 = vpack.c.bf16 %v3920_v50, %v3919_v48 }
 0x441   : > { %6991 = vmatmul.mubr.msk.bf16.gmra.mrb[8].mxu1 %vm2138_vm5, %v9021_v4 }
 0x442   : > { %6994 = vmatprep.mubr.msk.bf16.mxu1 %vm2138_vm5, %v9023_v60 }
 0x449   : > { %6995 = vmatmul.mubr.msk.bf16.gmra.mrb[12].mxu1 %vm2138_vm5, %v9029_v49 }
 0x44a   : > { %7002 = vmatprep.mubr.msk.bf16.mxu1 %vm2138_vm5, %v4245_v26  ;;  %v4237_v26 = vld [vmem:[#allocation2 + $0xf9] sm:$0xff] }
 0x44b   : > { %v4249_v42 = vpack.c.bf16 %v8945_v24, %v4237_v26  ;;  %v9071_v26 = vld [vmem:[#allocation2 + $0x1a1] sm:$0xff] }
 0x451   : > { %7003 = vmatmul.mubr.msk.bf16.vlgmr.msra.gmra.mrb[0].mxu1 %vm2138_vm5, %v9037_v5 }
 0x452   : > { %7019 = vmatpush3.bf16.msra.mxu1 %v7578_v62  ;;  %7006 = vmatprep.mubr.msk.bf16.mxu1 %vm2138_vm5, %v9042_v39  ;;  %v9061_v62 = vpack.c.bf16 %v8953_v27, %v8951_v47 }
 0x453   : > { %7020 = vmatprep.subr.bf16.mxu1 %v7579_v34 }
 0x454   : > { %9531 = vst [vmem:[#allocation25_spill] sm:$0xff] %v9061_v62 }
 0x456   : > { %7021 = vmatpush3.bf16.msra.mxu1 %v7579_v34  ;;  %v9065_v34 = vpack.c.bf16 %v8960_v44, %v8955_v0  ;;  %v7589_v44 = vld [vmem:[%s7732_s25 + $0x118] sm:$0xff]  }
 0x457   : > { %7038 = vmatprep.subr.bf16.mxu1 %v7580_v46 }
 0x458   : > { %9532 = vst [vmem:[#allocation26_spill] sm:$0xff] %v9065_v34 }
 0x459   : > { %7007 = vmatmul.mubr.msk.bf16.gmra.mrb[4].mxu1 %vm2138_vm5, %v9053_v29 }
 0x45a   : > { %7010 = vmatprep.mubr.msk.bf16.mxu1 %vm2138_vm5, %v4249_v42  ;;  %v9075_v42 = vpack.c.bf16 %v9071_v26, %v8962_v38  ;;  %v5126_v38 = vld [vmem:[#allocation2 + $0xe0] sm:$0xff] }
 0x461   : > { %7011 = vmatmul.mubr.msk.bf16.gmra.mrb[8].mxu1 %vm2138_vm5, %v9061_v62  ;;  %v4425_v62 = vpack.c.bf16 %v3911_v31, %v8998_v30  ;;  %v7583_v31 = vld [vmem:[%s7732_s25 + $0xe8] sm:$0xff]  }
 0x462   : > { %7014 = vmatprep.mubr.msk.bf16.mxu1 %vm2138_vm5, %v9065_v34  ;;  %v7582_v34 = vld [vmem:[%s7732_s25 + $0xe0] sm:$0xff]  }
 0x469   : > { %7015 = vmatmul.mubr.msk.bf16.gmra.mrb[12].mxu1 %vm2138_vm5, %v9075_v42 }
 0x46a   : > { %7022 = vmatprep.mubr.msk.bf16.mxu1 %vm2138_vm5, %v4423_v10  ;;  %v4427_v10 = vpack.c.bf16 %v3915_v41, %v3914_v8  ;;  %v4592_v8 = vld [vmem:[#allocation2 + $0xc8] sm:$0xff] }
 0x471   : > { %7023 = vmatmul.mubr.msk.bf16.vlgmr.msra.gmra.mrb[0].mxu1 %vm2138_vm5, %v4424_v32  ;;  %v4422_v32 = vld [vmem:[#allocation2 + $0x1b7] sm:$0xff] }
 0x472   : > { %7039 = vmatpush3.bf16.msra.mxu1 %v7580_v46  ;;  %7026 = vmatprep.mubr.msk.bf16.mxu1 %vm2138_vm5, %v4425_v62  ;;  %v4430_v30 = vpack.c.bf16 %v4422_v32, %v3920_v50 }
 0x473   : > { %7040 = vmatprep.subr.bf16.mxu1 %v7581_v57 }
 0x476   : > { %7041 = vmatpush3.bf16.msra.mxu1 %v7581_v57  ;;  %v9533_v57 = vpack.c.bf16 %v8871_v22, %v8869_v23  ;;  %v4604_v23 = vpack.c.bf16 %v4592_v8, %v8924_v59  ;;  %v9536_v22 = vpack.c.bf16 %v8906_v56, %v8904_v55  ;;  %v9539_v55 = vpack.c.bf16 %v8928_v19, %v8926_v51  ;;  %v7585_v56 = vld [vmem:[%s7732_s25 + $0xf8] sm:$0xff]  }
 0x477   : > { %7058 = vmatprep.subr.bf16.mxu1 %v7582_v34  ;;  %v4782_v59 = vpack.c.bf16 %v4770_v15, %v9049_v13  ;;  %v9542_v51 = vpack.c.bf16 %v8951_v47, %v8945_v24  ;;  %v9543_v19 = vpack.c.bf16 %v8955_v0, %v8953_v27  ;;  %v4786_v13 = vpack.c.bf16 %v4778_v3, %v9071_v26  ;;  %v4948_v24 = vld [vmem:[#allocation2 + $0xdf] sm:$0xff]  ;;  %v4956_v27 = vld [vmem:[#allocation2 + $0x1cf] sm:$0xff] }
 0x478   : > { %v4960_v47 = vpack.c.bf16 %v4948_v24, %v4414_v58  ;;  %v4964_v0 = vpack.c.bf16 %v4956_v27, %v4422_v32 }
 0x479   : > { %7027 = vmatmul.mubr.msk.bf16.gmra.mrb[4].mxu1 %vm2138_vm5, %v4426_v2 }
 0x47a   : > { %7030 = vmatprep.mubr.msk.bf16.mxu1 %vm2138_vm5, %v4427_v10 }
 0x481   : > { %7031 = vmatmul.mubr.msk.bf16.gmra.mrb[8].mxu1 %vm2138_vm5, %v4428_v9 }
 0x482   : > { %7034 = vmatprep.mubr.msk.bf16.mxu1 %vm2138_vm5, %v4429_v20 }
 0x489   : > { %7035 = vmatmul.mubr.msk.bf16.gmra.mrb[12].mxu1 %vm2138_vm5, %v4430_v30 }
 0x48a   : > { %7042 = vmatprep.mubr.msk.bf16.mxu1 %vm2138_vm5, %v9533_v57 }
 0x491   : > { %7043 = vmatmul.mubr.msk.bf16.vlgmr.msra.gmra.mrb[0].mxu1 %vm2138_vm5, %v9534_v43 }
 0x492   : > { %7059 = vmatpush3.bf16.msra.mxu1 %v7582_v34  ;;  %7046 = vmatprep.mubr.msk.bf16.mxu1 %vm2138_vm5, %v9535_v17 }
 0x493   : > { %7060 = vmatprep.subr.bf16.mxu1 %v7583_v31 }
 0x496   : > { %7061 = vmatpush3.bf16.msra.mxu1 %v7583_v31 }
 0x497   : > { %7078 = vmatprep.subr.bf16.mxu1 %v7584_v28 }
 0x499   : > { %7047 = vmatmul.mubr.msk.bf16.gmra.mrb[4].mxu1 %vm2138_vm5, %v4604_v23 }
 0x49a   : > { %7050 = vmatprep.mubr.msk.bf16.mxu1 %vm2138_vm5, %v9536_v22 }
 0x4a1   : > { %7051 = vmatmul.mubr.msk.bf16.gmra.mrb[8].mxu1 %vm2138_vm5, %v9537_v7 }
 0x4a2   : > { %7054 = vmatprep.mubr.msk.bf16.mxu1 %vm2138_vm5, %v9538_v35 }
 0x4a9   : > { %7055 = vmatmul.mubr.msk.bf16.gmra.mrb[12].mxu1 %vm2138_vm5, %v4608_v61 }
 0x4aa   : > { %7062 = vmatprep.mubr.msk.bf16.mxu1 %vm2138_vm5, %v9539_v55 }
 0x4b1   : > { %7063 = vmatmul.mubr.msk.bf16.vlgmr.msra.gmra.mrb[0].mxu1 %vm2138_vm5, %v9540_v63 }
 0x4b2   : > { %7079 = vmatpush3.bf16.msra.mxu1 %v7584_v28  ;;  %7066 = vmatprep.mubr.msk.bf16.mxu1 %vm2138_vm5, %v9541_v6 }
 0x4b3   : > { %7080 = vmatprep.subr.bf16.mxu1 %v7585_v56 }
 0x4b6   : > { %7081 = vmatpush3.bf16.msra.mxu1 %v7585_v56 }
 0x4b7   : > { %7098 = vmatprep.subr.bf16.mxu1 %v7586_v18 }
 0x4b9   : > { %7067 = vmatmul.mubr.msk.bf16.gmra.mrb[4].mxu1 %vm2138_vm5, %v4782_v59 }
 0x4ba   : > { %7070 = vmatprep.mubr.msk.bf16.mxu1 %vm2138_vm5, %v9542_v51 }
 0x4c1   : > { %7071 = vmatmul.mubr.msk.bf16.gmra.mrb[8].mxu1 %vm2138_vm5, %v9543_v19 }
 0x4c2   : > { %7074 = vmatprep.mubr.msk.bf16.mxu1 %vm2138_vm5, %v9544_v36 }
 0x4c9   : > { %7075 = vmatmul.mubr.msk.bf16.gmra.mrb[12].mxu1 %vm2138_vm5, %v4786_v13 }
 0x4ca   : > { %7082 = vmatprep.mubr.msk.bf16.mxu1 %vm2138_vm5, %v9001_v40 }
 0x4d1   : > { %7083 = vmatmul.mubr.msk.bf16.vlgmr.msra.gmra.mrb[0].mxu1 %vm2138_vm5, %v9006_v52 }
 0x4d2   : > { %7099 = vmatpush3.bf16.msra.mxu1 %v7586_v18  ;;  %7086 = vmatprep.mubr.msk.bf16.mxu1 %vm2138_vm5, %v9016_v45 }
 0x4d3   : > { %7100 = vmatprep.subr.bf16.mxu1 %v7587_v37 }
 0x4d6   : > { %7101 = vmatpush3.bf16.msra.mxu1 %v7587_v37 }
 0x4d7   : > { %7118 = vmatprep.subr.bf16.mxu1 %v7588_v11 }
 0x4d9   : > { %7087 = vmatmul.mubr.msk.bf16.gmra.mrb[4].mxu1 %vm2138_vm5, %v4960_v47 }
 0x4da   : > { %7090 = vmatprep.mubr.msk.bf16.mxu1 %vm2138_vm5, %v9021_v4 }
 0x4e1   : > { %7091 = vmatmul.mubr.msk.bf16.gmra.mrb[8].mxu1 %vm2138_vm5, %v9023_v60  ;;  %v5138_v60 = vpack.c.bf16 %v5126_v38, %v4592_v8 }
 0x4e2   : > { %7094 = vmatprep.mubr.msk.bf16.mxu1 %vm2138_vm5, %v9029_v49 }
 0x4e9   : > { %7095 = vmatmul.mubr.msk.bf16.gmra.mrb[12].mxu1 %vm2138_vm5, %v4964_v0 }
 0x4ea   : > { %7102 = vmatprep.mubr.msk.bf16.mxu1 %vm2138_vm5, %v8880_v14  ;;  %v5134_v14 = vld [vmem:[#allocation2 + $0x1d0] sm:$0xff] }
 0x4f1   : > { %7103 = vmatmul.mubr.msk.bf16.vlgmr.msra.gmra.mrb[0].mxu1 %vm2138_vm5, %v8898_v53  ;;  %v5142_v53 = vpack.c.bf16 %v5134_v14, %v4600_v54 }
 0x4f2   : > { %7119 = vmatpush3.bf16.msra.mxu1 %v7588_v11  ;;  %7106 = vmatprep.mubr.msk.bf16.mxu1 %vm2138_vm5, %v8932_v1  ;;  %v5304_v1 = vld [vmem:[#allocation2 + $0xe1] sm:$0xff] }
 0x4f3   : > { %7120 = vmatprep.subr.bf16.mxu1 %v7589_v44  ;;  %v5316_v4 = vpack.c.bf16 %v5304_v1, %v4770_v15 }
 0x4f6   : > { %7121 = vmatpush3.bf16.msra.mxu1 %v7589_v44 }
 0x4f9   : > { %7107 = vmatmul.mubr.msk.bf16.gmra.mrb[4].mxu1 %vm2138_vm5, %v5138_v60 }
 0x4fa   : > { %7110 = vmatprep.mubr.msk.bf16.mxu1 %vm2138_vm5, %v8972_v16  ;;  %v9545_v16 = vld [vmem:[#allocation25_spill] sm:$0xff] }
 0x501   : > { %7111 = vmatmul.mubr.msk.bf16.gmra.mrb[8].mxu1 %vm2138_vm5, %v8976_v25  ;;  %v9546_v25 = vld [vmem:[#allocation26_spill] sm:$0xff] }
 0x502   : > { %7114 = vmatprep.mubr.msk.bf16.mxu1 %vm2138_vm5, %v8988_v21 }
 0x509   : > { %7115 = vmatmul.mubr.msk.bf16.gmra.mrb[12].mxu1 %vm2138_vm5, %v5142_v53 }
 0x50a   : > { %7122 = vmatprep.mubr.msk.bf16.mxu1 %vm2138_vm5, %v9037_v5  ;;  %v5312_v5 = vld [vmem:[#allocation2 + $0x1d1] sm:$0xff] }
 0x50b   : > { %v5320_v12 = vpack.c.bf16 %v5312_v5, %v4778_v3 }
 0x511   : > { %7123 = vmatmul.mubr.msk.bf16.vlgmr.msra.gmra.mrb[0].mxu1 %vm2138_vm5, %v9042_v39 }
 0x512   : > { %7126 = vmatprep.mubr.msk.bf16.mxu1 %vm2138_vm5, %v9053_v29 }
 0x519   : > { %7127 = vmatmul.mubr.msk.bf16.gmra.mrb[4].mxu1 %vm2138_vm5, %v5316_v4 }
 0x51a   : > { %7130 = vmatprep.mubr.msk.bf16.mxu1 %vm2138_vm5, %v9545_v16 }
 0x521   : > { %7131 = vmatmul.mubr.msk.bf16.gmra.mrb[8].mxu1 %vm2138_vm5, %v9546_v25 }
 0x522   : > { %7134 = vmatprep.mubr.msk.bf16.mxu1 %vm2138_vm5, %v9075_v42 }
 0x529   : > { %7135 = vmatmul.mubr.msk.bf16.gmra.mrb[12].mxu1 %vm2138_vm5, %v5320_v12 }
 0x5e4   : > { %v9199_v39 = vpop.f32.mrb[0].mxu1 }
 0x5e5   : > { %v9201_v29 = vpop.f32.mrb[1].mxu1  ;;  %v5514_v45 = vmul.f32 %v9199_v39, %v9199_v39  ;;  %v5478_v49 = vsel %vm2138_vm5, %v9199_v39, 0.0 }
 0x5e6   : > { %v5512_v21 = vmul.f32 %v9201_v29, %v9201_v29  ;;  %v9205_v40 = vpop.f32.mrb[2].mxu1  ;;  %v5475_v41 = vsel %vm2138_vm5, %v9201_v29, 0.0 }
 0x5e7   : > { %v9207_v52 = vpop.f32.mrb[3].mxu1  ;;  %v5515_v62 = vmul.f32 %v9205_v40, %v9205_v40  ;;  %v5531_v58 = vsel %vm2138_vm5, %v5514_v45, 0.0  ;;  %v5480_v2 = vsel %vm2138_vm5, %v9205_v40, 0.0 }
 0x5e8   : > { %v5476_v33 = vsel %vm2138_vm5, %v9207_v52, 0.0  ;;  %v5513_v48 = vmul.f32 %v9207_v52, %v9207_v52  ;;  %v5528_v46 = vsel %vm2138_vm5, %v5512_v21, 0.0 }
 0x5e9   : > { %v5477_v50 = vadd.f32 %v5476_v33, %v5475_v41  ;;  %v5533_v30 = vsel %vm2138_vm5, %v5515_v62, 0.0 }
 0x5ea   : > { %v5529_v34 = vsel %vm2138_vm5, %v5513_v48, 0.0 }
 0x5eb   : > { %v5479_v26 = vadd.f32 %v5478_v49, %v5477_v50  ;;  %v5530_v42 = vadd.f32 %v5529_v34, %v5528_v46 }
 0x5ec   : > { %v9226_v10 = vpop.f32.mrb[4].mxu1 }
 0x5ed   : > { %v5532_v9 = vadd.f32 %v5531_v58, %v5530_v42  ;;  %v9228_v20 = vpop.f32.mrb[5].mxu1  ;;  %v5481_v32 = vadd.f32 %v5480_v2, %v5479_v26  ;;  %v5518_v23 = vmul.f32 %v9226_v10, %v9226_v10  ;;  %v5486_v55 = vsel %vm2138_vm5, %v9226_v10, 0.0 }
 0x5ee   : > { %v5482_v57 = vsel %vm2138_vm5, %v9228_v20, 0.0  ;;  %v5516_v31 = vmul.f32 %v9228_v20, %v9228_v20  ;;  %v9235_v43 = vpop.f32.mrb[6].mxu1 }
 0x5ef   : > { %v5483_v17 = vadd.f32 %v5482_v57, %v5481_v32  ;;  %v5534_v28 = vadd.f32 %v5533_v30, %v5532_v9  ;;  %v9237_v8 = vpop.f32.mrb[7].mxu1  ;;  %v5519_v56 = vmul.f32 %v9235_v43, %v9235_v43  ;;  %v5539_v15 = vsel %vm2138_vm5, %v5518_v23, 0.0 }
 0x5f0   : > { %v5535_v22 = vsel %vm2138_vm5, %v5516_v31, 0.0  ;;  %v5484_v7 = vsel %vm2138_vm5, %v9237_v8, 0.0  ;;  %v5517_v35 = vmul.f32 %v9237_v8, %v9237_v8  ;;  %v5488_v59 = vsel %vm2138_vm5, %v9235_v43, 0.0 }
 0x5f1   : > { %v5536_v54 = vadd.f32 %v5535_v22, %v5534_v28  ;;  %v5485_v61 = vadd.f32 %v5484_v7, %v5483_v17  ;;  %v5541_v13 = vsel %vm2138_vm5, %v5519_v56, 0.0 }
 0x5f2   : > { %v5537_v63 = vsel %vm2138_vm5, %v5517_v35, 0.0 }
 0x5f3   : > { %v5487_v6 = vadd.f32 %v5486_v55, %v5485_v61  ;;  %v5538_v18 = vadd.f32 %v5537_v63, %v5536_v54 }
 0x5f4   : > { %v9254_v51 = vpop.f32.mrb[8].mxu1 }
 0x5f5   : > { %v5540_v19 = vadd.f32 %v5539_v15, %v5538_v18  ;;  %v9256_v36 = vpop.f32.mrb[9].mxu1  ;;  %v5489_v3 = vadd.f32 %v5488_v59, %v5487_v6  ;;  %v5522_v44 = vmul.f32 %v9254_v51, %v9254_v51  ;;  %v5494_v4 = vsel %vm2138_vm5, %v9254_v51, 0.0 }
 0x5f6   : > { %v5490_v37 = vsel %vm2138_vm5, %v9256_v36, 0.0  ;;  %v5520_v11 = vmul.f32 %v9256_v36, %v9256_v36  ;;  %v9263_v24 = vpop.f32.mrb[10].mxu1 }
 0x5f7   : > { %v5491_v47 = vadd.f32 %v5490_v37, %v5489_v3  ;;  %v5542_v27 = vadd.f32 %v5541_v13, %v5540_v19  ;;  %v9265_v0 = vpop.f32.mrb[11].mxu1  ;;  %v5523_v16 = vmul.f32 %v9263_v24, %v9263_v24  ;;  %v5547_v21 = vsel %vm2138_vm5, %v5522_v44, 0.0 }
 0x5f8   : > { %v5543_v38 = vsel %vm2138_vm5, %v5520_v11, 0.0  ;;  %v5492_v60 = vsel %vm2138_vm5, %v9265_v0, 0.0  ;;  %v5521_v14 = vmul.f32 %v9265_v0, %v9265_v0  ;;  %v5496_v45 = vsel %vm2138_vm5, %v9263_v24, 0.0 }
 0x5f9   : > { %v5544_v53 = vadd.f32 %v5543_v38, %v5542_v27  ;;  %v5493_v1 = vadd.f32 %v5492_v60, %v5491_v47  ;;  %v5549_v49 = vsel %vm2138_vm5, %v5523_v16, 0.0  ;;  %v6221_v16 = vld [vmem:[%s7722_s19 + $0x1] sm:$0x1] }
 0x5fa   : > { %v5545_v25 = vsel %vm2138_vm5, %v5521_v14, 0.0 }
 0x5fb   : > { %v5495_v5 = vadd.f32 %v5494_v4, %v5493_v1  ;;  %v5546_v12 = vadd.f32 %v5545_v25, %v5544_v53 }
 0x5fc   : > { %v9282_v41 = vpop.f32.mrb[12].mxu1 }
 0x5fd   : > { %v5548_v33 = vadd.f32 %v5547_v21, %v5546_v12  ;;  %v9284_v48 = vpop.f32.mrb[13].mxu1  ;;  %v5497_v50 = vadd.f32 %v5496_v45, %v5495_v5  ;;  %v5526_v2 = vmul.f32 %v9282_v41, %v9282_v41  ;;  %v5502_v17 = vsel %vm2138_vm5, %v9282_v41, 0.0  ;;  %v6222_v12 = vld [vmem:[%s7727_s22 + $0x1] sm:$0x1]  ;;  %v9547_v45 = vld [vmem:[#allocation24_spill] sm:$0xff] }
 0x5fe   : > { %v5498_v46 = vsel %vm2138_vm5, %v9284_v48, 0.0  ;;  %v5524_v62 = vmul.f32 %v9284_v48, %v9284_v48  ;;  %v7137_v34 = vpop.f32.mrb[14].mxu1 }
 0x5ff   : > { %v5499_v26 = vadd.f32 %v5498_v46, %v5497_v50  ;;  %v5550_v42 = vadd.f32 %v5549_v49, %v5548_v33  ;;  %v5447_v58 = vpop.f32.mrb[15].mxu1  ;;  %v5527_v28 = vmul.f32 %v7137_v34, %v7137_v34  ;;  %v5555_v35 = vsel %vm2138_vm5, %v5526_v2, 0.0 }
 0x600   : > { %v5551_v9 = vsel %vm2138_vm5, %v5524_v62, 0.0  ;;  %v5500_v32 = vsel %vm2138_vm5, %v5447_v58, 0.0  ;;  %v5525_v30 = vmul.f32 %v5447_v58, %v5447_v58  ;;  %v5504_v54 = vsel %vm2138_vm5, %v7137_v34, 0.0 }
 0x601   : > { %v5552_v57 = vadd.f32 %v5551_v9, %v5550_v42  ;;  %v5501_v31 = vadd.f32 %v5500_v32, %v5499_v26  ;;  %v5557_v56 = vsel %vm2138_vm5, %v5527_v28, 0.0 }
 0x602   : > { %v5553_v23 = vsel %vm2138_vm5, %v5525_v30, 0.0 }
 0x603   : > { %v5503_v22 = vadd.f32 %v5502_v17, %v5501_v31  ;;  %v5554_v7 = vadd.f32 %v5553_v23, %v5552_v57 }
 0x605   : > { %v5505_v61 = vadd.f32 %v5504_v54, %v5503_v22  ;;  %v5556_v55 = vadd.f32 %v5555_v35, %v5554_v7 }
 0x607   : > { %v5506_v63 = vrot.slane %v5505_v61, 4  ;;  %v5558_v6 = vadd.f32 %v5557_v56, %v5556_v55  ;;  %v9549_v55 = vld [vmem:[#allocation8_spill] sm:$0xff] }
 0x609   : > { %v5507_v18 = vadd.f32 %v5506_v63, %v5505_v61  ;;  %v5559_v15 = vrot.slane %v5558_v6, 4  ;;  %v9550_v63 = vld [vmem:[#allocation9_spill] sm:$0xff] }
 0x60b   : > { %v5508_v59 = vrot.slane %v5507_v18, 2  ;;  %v5560_v19 = vadd.f32 %v5559_v15, %v5558_v6 }
 0x60d   : > { %v5509_v3 = vadd.f32 %v5508_v59, %v5507_v18  ;;  %v5561_v13 = vrot.slane %v5560_v19, 2  ;;  %v9551_v18 = vld [vmem:[#allocation10_spill] sm:$0xff]  ;;  %v9552_v59 = vld [vmem:[#allocation11_spill] sm:$0xff] }
 0x60f   : > { %v5510_v37 = vrot.slane %v5509_v3, 1  ;;  %v5562_v11 = vadd.f32 %v5561_v13, %v5560_v19 }
 0x611   : > { %v5511_v47 = vadd.f32 %v5510_v37, %v5509_v3  ;;  %v5563_v27 = vrot.slane %v5562_v11, 1  ;;  %v9553_v3 = vld [vmem:[#allocation12_spill] sm:$0xff]  ;;  %v9554_v37 = vld [vmem:[#allocation13_spill] sm:$0xff] }
 0x613   : > { %v5564_v44 = vadd.f32 %v5563_v27, %v5562_v11  ;;  %v5565_v38 = vmul.f32 0.0078125, %v5511_v47  ;;  %v9555_v47 = vld [vmem:[#allocation21_spill] sm:$0xff] }
 0x615   : > { %v5566_v60 = vmul.f32 0.0078125, %v5564_v44  ;;  %v5567_v14 = vmul.f32 %v5565_v38, %v5565_v38  ;;  %v9556_v44 = vld [vmem:[#allocation14_spill] sm:$0xff] }
 0x617   : > { %v5568_v53 = vsub.f32 %v5566_v60, %v5567_v14  ;;  %v9557_v60 = vld [vmem:[#allocation15_spill] sm:$0xff] }
 0x619   : > { %v5569_v1 = vmax.f32 %v5568_v53, 0.0  ;;  %v9558_v53 = vld [vmem:[#allocation16_spill] sm:$0xff] }
 0x61b   : > { %v5570_v4 = vadd.f32 1e-05, %v5569_v1 }
 0x61d   : > { %7592 = vrsqrt.f32 %v5570_v4  ;;  %v9559_v4 = vld [vmem:[#allocation17_spill] sm:$0xff] }
 0x627   : > { %v7593_v25 = vpop.eup %7592 }
 0x628   : > { %v5572_v5 = vmul.f32 %v7593_v25, %v6221_v16  ;;  %v9560_v25 = vld [vmem:[#allocation18_spill] sm:$0xff] }
 0x62a   : > { %v5573_v21 = vmul.f32 %v5572_v5, %v5565_v38  ;;  %v5579_v33 = vrot.slane %v5572_v5, %v9547_v45 }
 0x62c   : > { %v5574_v50 = vsub.f32 %v6222_v12, %v5573_v21  ;;  %v5581_v49 = vmul.f32 %v5579_v33, %v9201_v29  ;;  %v5582_v46 = vmul.f32 %v5579_v33, %v9207_v52  ;;  %v5583_v62 = vmul.f32 %v9199_v39, %v5579_v33  ;;  %v9561_v12 = vld [vmem:[#allocation19_spill] sm:$0xff] }
 0x62d   : > { %v5584_v26 = vmul.f32 %v9205_v40, %v5579_v33  ;;  %v5585_v42 = vmul.f32 %v5579_v33, %v9228_v20  ;;  %v5586_v2 = vmul.f32 %v5579_v33, %v9237_v8  ;;  %v5587_v9 = vmul.f32 %v9226_v10, %v5579_v33 }
 0x62e   : > { %v5588_v32 = vmul.f32 %v9235_v43, %v5579_v33  ;;  %v5589_v30 = vmul.f32 %v5579_v33, %v9256_v36  ;;  %v5590_v57 = vmul.f32 %v5579_v33, %v9265_v0  ;;  %v5591_v29 = vmul.f32 %v9254_v51, %v5579_v33 }
 0x62f   : > { %v5592_v52 = vmul.f32 %v9263_v24, %v5579_v33  ;;  %v5593_v39 = vmul.f32 %v5579_v33, %v9284_v48  ;;  %v5594_v31 = vmul.f32 %v5579_v33, %v5447_v58  ;;  %v5595_v40 = vmul.f32 %v9282_v41, %v5579_v33  ;;  %v9548_v41 = vld [vmem:[#allocation7_spill] sm:$0xff] }
 0x630   : > { %v5596_v20 = vmul.f32 %v7137_v34, %v5579_v33  ;;  %v5601_v8 = vrot.slane %v5574_v50, %v9547_v45  ;;  %v9562_v45 = vld [vmem:[#allocation20_spill] sm:$0xff]  ;;  %v9563_v50 = vld [vmem:[#allocation22_spill] sm:$0xff] }
 0x632   : > { %v5603_v17 = vadd.f32 %v5601_v8, %v5581_v49  ;;  %v5604_v10 = vadd.f32 %v5601_v8, %v5582_v46  ;;  %v5605_v28 = vadd.f32 %v5601_v8, %v5583_v62  ;;  %v5606_v43 = vadd.f32 %v5601_v8, %v5584_v26 }
 0x633   : > { %v5607_v23 = vadd.f32 %v5601_v8, %v5585_v42  ;;  %v5608_v36 = vadd.f32 %v5601_v8, %v5586_v2  ;;  %v5609_v22 = vadd.f32 %v5601_v8, %v5587_v9  ;;  %v5610_v0 = vadd.f32 %v5601_v8, %v5588_v32 }
 0x634   : > { %v5611_v7 = vadd.f32 %v5601_v8, %v5589_v30  ;;  %v5612_v51 = vadd.f32 %v5601_v8, %v5590_v57  ;;  %v5613_v35 = vadd.f32 %v5601_v8, %v5591_v29  ;;  %v5614_v24 = vadd.f32 %v5601_v8, %v5592_v52 }
 0x635   : > { %v5615_v54 = vadd.f32 %v5601_v8, %v5593_v39  ;;  %v5616_v48 = vadd.f32 %v5601_v8, %v5594_v31  ;;  %v5617_v58 = vadd.f32 %v5601_v8, %v5595_v40  ;;  %v5618_v61 = vadd.f32 %v5601_v8, %v5596_v20 }
 0x636   : > { %v5619_v34 = vadd.f32 %v5603_v17, %v9548_v41  ;;  %v5620_v56 = vadd.f32 %v5604_v10, %v9549_v55  ;;  %v5621_v6 = vadd.f32 %v5605_v28, %v9550_v63  ;;  %v5622_v15 = vadd.f32 %v5606_v43, %v9551_v18 }
 0x637   : > { %v5623_v19 = vadd.f32 %v5607_v23, %v9552_v59  ;;  %v9325_v13 = vadd.f32 %v5608_v36, %v9553_v3  ;;  %v9328_v11 = vadd.f32 %v5609_v22, %v9554_v37  ;;  %v9331_v27 = vadd.f32 %v5610_v0, %v9555_v47 }
 0x638   : > { %v5627_v38 = vadd.f32 %v5611_v7, %v9556_v44  ;;  %v5628_v14 = vadd.f32 %v5612_v51, %v9557_v60  ;;  %v5629_v1 = vadd.f32 %v5613_v35, %v9558_v53  ;;  %v5630_v16 = vadd.f32 %v5614_v24, %v9559_v4 }
 0x639   : > { %v5631_v5 = vadd.f32 %v5615_v54, %v9560_v25  ;;  %v5632_v21 = vadd.f32 %v5616_v48, %v9561_v12  ;;  %v5633_v33 = vadd.f32 %v5617_v58, %v9562_v45  ;;  %v5634_v49 = vadd.f32 %v5618_v61, %v9563_v50  ;;  %v5717_v12 = vld [vmem:[%s9479_s7 + $0x8] sm:$0xff] (!%p6349_p5) }
 0x63a   : > { %v5635_v46 = vmax.f32 %v5619_v34, 0.0  ;;  %v5636_v62 = vmax.f32 %v5620_v56, 0.0  ;;  %v5637_v26 = vmax.f32 %v5621_v6, 0.0  ;;  %v5638_v42 = vmax.f32 %v5622_v15, 0.0 }
 0x63b   : > { %v5639_v2 = vmax.f32 %v5623_v19, 0.0  ;;  %v5640_v9 = vmax.f32 %v9325_v13, 0.0  ;;  %v5641_v32 = vmax.f32 %v9328_v11, 0.0  ;;  %v5642_v30 = vmax.f32 %v9331_v27, 0.0 }
 0x63c   : > { %v5643_v57 = vmax.f32 %v5627_v38, 0.0  ;;  %v5644_v29 = vmax.f32 %v5628_v14, 0.0  ;;  %v5645_v52 = vmax.f32 %v5629_v1, 0.0  ;;  %v5646_v39 = vmax.f32 %v5630_v16, 0.0  ;;  %5651 = vst.msk [vmem:[#allocation3] sm:$0xff] %vm2138_vm5, %v5635_v46  ;;  %5652 = vst.msk [vmem:[#allocation3 + $0x8] sm:$0xff] %vm2138_vm5, %v5636_v62 }
 0x63d   : > { %5653 = vst.msk [vmem:[#allocation3 + $0x10] sm:$0xff] %vm2138_vm5, %v5637_v26  ;;  %5654 = vst.msk [vmem:[#allocation3 + $0x18] sm:$0xff] %vm2138_vm5, %v5638_v42  ;;  %v5647_v31 = vmax.f32 %v5631_v5, 0.0  ;;  %v5648_v40 = vmax.f32 %v5632_v21, 0.0  ;;  %v5649_v20 = vmax.f32 %v5633_v33, 0.0  ;;  %v5650_v8 = vmax.f32 %v5634_v49, 0.0 }
 0x63e   : > { %5655 = vst.msk [vmem:[#allocation3 + $0x20] sm:$0xff] %vm2138_vm5, %v5639_v2  ;;  %5656 = vst.msk [vmem:[#allocation3 + $0x28] sm:$0xff] %vm2138_vm5, %v5640_v9  ;;  %5670 = sbr.rel (%p6349_p5) target bundleno = 2526 (0x9de), region = 64  ;;  %v5692_v17 = vsel (!%p6349_p5), %vm2138_vm5, %v5643_v57, 0.0  ;;  %v5693_v10 = vsel (!%p6349_p5), %vm2138_vm5, %v5644_v29, 0.0  ;;  %v5695_v28 = vsel (!%p6349_p5), %vm2138_vm5, %v5645_v52, 0.0 }
 0x63f   : > { %5657 = vst.msk [vmem:[#allocation3 + $0x30] sm:$0xff] %vm2138_vm5, %v5641_v32  ;;  %5658 = vst.msk [vmem:[#allocation3 + $0x38] sm:$0xff] %vm2138_vm5, %v5642_v30  ;;  %v5694_v43 = vadd.f32 (!%p6349_p5), %v5693_v10, %v5692_v17  ;;  %v5697_v23 = vsel (!%p6349_p5), %vm2138_vm5, %v5646_v39, 0.0  ;;  %v5671_v36 = vsel (!%p6349_p5), %vm2138_vm5, %v5635_v46, 0.0  ;;  %v5672_v22 = vsel (!%p6349_p5), %vm2138_vm5, %v5636_v62, 0.0  ;;  %v5716_v5 = vld [vmem:[%s9479_s7] sm:$0xff] (!%p6349_p5) }
 0x640   : > { %5659 = vst.msk [vmem:[#allocation3 + $0x40] sm:$0xff] %vm2138_vm5, %v5643_v57  ;;  %5660 = vst.msk [vmem:[#allocation3 + $0x48] sm:$0xff] %vm2138_vm5, %v5644_v29  ;;  %v5674_v0 = vsel (!%p6349_p5), %vm2138_vm5, %v5637_v26, 0.0  ;;  %v5673_v51 = vadd.f32 (!%p6349_p5), %v5672_v22, %v5671_v36  ;;  %v5699_v35 = vsel (!%p6349_p5), %vm2138_vm5, %v5647_v31, 0.0  ;;  %v5676_v24 = vsel (!%p6349_p5), %vm2138_vm5, %v5638_v42, 0.0  ;;  %v9565_v22 = vld [vmem:[#allocation23_spill] sm:$0xff] (!%p6349_p5) }
 0x641   : > { %5661 = vst.msk [vmem:[#allocation3 + $0x50] sm:$0xff] %vm2138_vm5, %v5645_v52  ;;  %5662 = vst.msk [vmem:[#allocation3 + $0x58] sm:$0xff] %vm2138_vm5, %v5646_v39  ;;  %v5696_v7 = vadd.f32 (!%p6349_p5), %v5695_v28, %v5694_v43  ;;  %v5701_v58 = vsel (!%p6349_p5), %vm2138_vm5, %v5648_v40, 0.0  ;;  %v5678_v61 = vsel (!%p6349_p5), %vm2138_vm5, %v5639_v2, 0.0  ;;  %v5703_v55 = vsel (!%p6349_p5), %vm2138_vm5, %v5649_v20, 0.0 }
 0x642   : > { %5663 = vst.msk [vmem:[#allocation3 + $0x60] sm:$0xff] %vm2138_vm5, %v5647_v31  ;;  %5664 = vst.msk [vmem:[#allocation3 + $0x68] sm:$0xff] %vm2138_vm5, %v5648_v40  ;;  %v5675_v48 = vadd.f32 (!%p6349_p5), %v5674_v0, %v5673_v51  ;;  %v5680_v56 = vsel (!%p6349_p5), %vm2138_vm5, %v5640_v9, 0.0  ;;  %v5705_v18 = vsel (!%p6349_p5), %vm2138_vm5, %v5650_v8, 0.0  ;;  %v5682_v15 = vsel (!%p6349_p5), %vm2138_vm5, %v5641_v32, 0.0 }
 0x643   : > { %5665 = vst.msk [vmem:[#allocation3 + $0x70] sm:$0xff] %vm2138_vm5, %v5649_v20  ;;  %5666 = vst.msk [vmem:[#allocation3 + $0x78] sm:$0xff] %vm2138_vm5, %v5650_v8  ;;  %v5698_v54 = vadd.f32 (!%p6349_p5), %v5697_v23, %v5696_v7  ;;  %v5684_v3 = vsel (!%p6349_p5), %vm2138_vm5, %v5642_v30, 0.0  ;;  %v9398_v32 = vld [vmem:[%s9480_s8] ss:$0 sm:$0xff] (!%p6349_p5)  ;;  %v7651_v30 = vmov (!%p6349_p5), 0   ;;  %v9564_v28 = vlaneseq (!%p6349_p5) }
 0x644   : > { %v5677_v34 = vadd.f32 (!%p6349_p5), %v5676_v24, %v5675_v48  ;;  %7595 = vset.pattern.permute.xlu0 (!%p6349_p5), %v7651_v30  ;;  %7594 = vset.pattern.permute.xlu1 (!%p6349_p5), %v7651_v30 }
 0x645   : > { %v5700_v41 = vadd.f32 %v5699_v35, %v5698_v54  ;;  %v5787_v43 = vand.u32 127, %v9564_v28 }
 0x646   : > { %v5679_v6 = vadd.f32 %v5678_v61, %v5677_v34 }
 0x647   : > { %v5702_v63 = vadd.f32 %v5701_v58, %v5700_v41  ;;  %v5792_v23 = vadd.s32 4294967288, %v5787_v43  ;;  %v9407_v51 = vsub.s32 %v5787_v43, %v9565_v22 }
 0x648   : > { %v5681_v19 = vadd.f32 %v5680_v56, %v5679_v6 }
 0x649   : > { %v5704_v59 = vadd.f32 %v5703_v55, %v5702_v63  ;;  %v9404_v0 = vsub.s32 %v5792_v23, %v9565_v22  ;;  %v5822_v63 = vsub.s32 1, %v9565_v22 }
 0x64a   : > { %v5683_v37 = vadd.f32 %v5682_v15, %v5681_v19 }
 0x64b   : > { %v5706_v13 = vadd.f32 %v5705_v18, %v5704_v59  ;;  %v9566_v18 = vld [vmem:[#allocation24_spill] sm:$0xff] }
 0x64c   : > { %v5685_v47 = vadd.f32 %v5684_v3, %v5683_v37 }
 0x64d   : > { %v5707_v11 = vrot.slane %v5706_v13, 4 }
 0x64e   : > { %v5686_v44 = vrot.slane %v5685_v47, 4 }
 0x64f   : > { %v5708_v27 = vadd.f32 %v5707_v11, %v5706_v13 }
 0x650   : > { %v5687_v60 = vadd.f32 %v5686_v44, %v5685_v47 }
 0x651   : > { %v5709_v38 = vrot.slane %v5708_v27, 2 }
 0x652   : > { %v5688_v53 = vrot.slane %v5687_v60, 2 }
 0x653   : > { %v5710_v14 = vadd.f32 %v5709_v38, %v5708_v27 }
 0x654   : > { %v5689_v4 = vadd.f32 %v5688_v53, %v5687_v60 }
 0x655   : > { %v5711_v1 = vrot.slane %v5710_v14, 1 }
 0x656   : > { %v5690_v25 = vrot.slane %v5689_v4, 1 }
 0x657   : > { %v5712_v16 = vadd.f32 %v5711_v1, %v5710_v14  ;;  %v5718_v1 = vld [vmem:[%s9479_s7 + $0x10] sm:$0x1] }
 0x658   : > { %v5691_v45 = vadd.f32 %v5690_v25, %v5689_v4 }
 0x659   : > { %v9383_v21 = vmul.f32 0.015625, %v5712_v16 }
 0x65a   : > { %v9386_v50 = vmul.f32 0.015625, %v5691_v45 }
 0x65b   : > { %v5722_v33 = vmul.f32 %v5716_v5, %v9383_v21  ;;  %v5723_v49 = vmul.f32 %v5717_v12, %v9383_v21  ;;  %v5724_v4 = vmul.f32 %v5718_v1, %v9383_v21 }
 0x65c   : > { %v5719_v62 = vmul.f32 %v5716_v5, %v9386_v50  ;;  %v5720_v26 = vmul.f32 %v5717_v12, %v9386_v50  ;;  %v5721_v16 = vmul.f32 %v5718_v1, %v9386_v50 }
 0x65d   : > { %v5735_v46 = vsel %vm2138_vm5, %v5722_v33, 0.0  ;;  %v5738_v2 = vsel %vm2138_vm5, %v5723_v49, 0.0  ;;  %v5741_v25 = vsel %vm5731_vm9, %v5724_v4, 0.0 }
 0x65e   : > { %5736 = vadd.xlane.f32.xlu1 %v5735_v46  ;;  %v5725_v42 = vsel %vm2138_vm5, %v5719_v62, 0.0  ;;  %v5728_v9 = vsel %vm2138_vm5, %v5720_v26, 0.0  ;;  %v5732_v5 = vsel %vm5731_vm9, %v5721_v16, 0.0 }
 0x65f   : > { %5726 = vadd.xlane.f32.xlu0 %v5725_v42 }
 0x662   : > { %5739 = vadd.xlane.f32.xlu1 %v5738_v2 }
 0x663   : > { %5729 = vadd.xlane.f32.xlu0 %v5728_v9 }
 0x673   : > { %5755 = vbcast.lane.b32.xlu1 %v9398_v32, 264 }
 0x679   : > { %5751 = vbcast.lane.b32.xlu0 %v9398_v32, 256 }
 0x6eb   : > { %v5737_v57 = vpop.xlane.xlu1 %5736 }
 0x6ec   : > { %v5727_v29 = vpop.xlane.xlu0 %5726 }
 0x6ef   : > { %v5740_v52 = vpop.xlane.xlu1 %5739 }
 0x6f0   : > { %v5730_v39 = vpop.xlane.xlu0 %5729 }
 0x6f3   : > { %v5756_v8 = vpop.permute.xlu1 %5755 }
 0x6f4   : > { %v5752_v31 = vpop.permute.xlu0 %5751  ;;  %v5765_v17 = vadd.f32 %v5756_v8, %v5730_v39  ;;  %v5768_v10 = vadd.f32 %v5756_v8, %v5740_v52 }
 0x6f5   : > { %v5764_v40 = vadd.f32 %v5752_v31, %v5727_v29  ;;  %v5767_v20 = vadd.f32 %v5752_v31, %v5737_v57 }
 0x6f7   : > { %5781 = vperm.xlu0 %7595, %v5767_v20   ;;  %5775 = vperm.xlu1 %7594, %v5764_v40  }
 0x6fb   : > { %5778 = vperm.xlu1 %7594, %v5765_v17  }
 0x6ff   : > { %5784 = vperm.xlu1 %7594, %v5768_v10  }
 0x776   : > { %v5776_v36 = vpop.permute.xlu1 %5775  ;;  %v5782_v35 = vpop.permute.xlu0 %5781 }
 0x777   : > { %v5802_v48 = vrot.slane %v5782_v35, %v9407_v51  ;;  %v5791_v58 = vrot.slane %v5776_v36, %v9407_v51 }
 0x77a   : > { %v5779_v7 = vpop.permute.xlu1 %5778 }
 0x77b   : > { %v5796_v24 = vrot.slane %v5779_v7, %v9404_v0 }
 0x77d   : > { %v5798_v41 = vsel %vm5797_vm6, %v5796_v24, %v5791_v58 }
 0x77e   : > { %v5785_v54 = vpop.permute.xlu1 %5784 }
 0x77f   : > { %v5806_v61 = vrot.slane %v5785_v54, %v9404_v0 }
 0x781   : > { %v5807_v34 = vsel %vm5797_vm6, %v5806_v61, %v5802_v48 }
 0x782   : > { %v5809_v55 = vsel %vm5808_vm7, %v5807_v34, %v5798_v41 }
 0x783   : > { %v5812_v56 = vsel %vm5811_vm8, %v5809_v55, -inf }
 0x784   : > { %5813 = vmax.xlane.f32.xlu1 %v5812_v56 }
 0x788   : > { %5742 = vadd.xlane.f32.xlu1 %v5741_v25 }
 0x78c   : > { %5733 = vadd.xlane.f32.xlu1 %v5732_v5 }
 0x79d   : > { %5759 = vbcast.lane.b32.xlu1 %v9398_v32, 272 }
 0x811   : > { %v5814_v6 = vpop.xlane.xlu1 %5813 }
 0x812   : > { %v5819_v15 = vrot.slane %v5814_v6, %v9566_v18  ;;  %v5823_v59 = vrot.slane %v5814_v6, %v5822_v63 }
 0x814   : > { %v5826_v19 = vsub.f32 %v5764_v40, %v5819_v15  ;;  %v5827_v3 = vsub.f32 %v5765_v17, %v5819_v15  ;;  %v5828_v37 = vsub.f32 %v5767_v20, %v5823_v59  ;;  %v5829_v47 = vsub.f32 %v5768_v10, %v5823_v59 }
 0x815   : > { %v5743_v32 = vpop.xlane.xlu1 %5742 }
 0x816   : > { %v5830_v13 = vmul.f32 1.442695, %v5826_v19  ;;  %v5832_v11 = vmul.f32 1.442695, %v5827_v3  ;;  %v5834_v27 = vmul.f32 1.442695, %v5828_v37 }
 0x817   : > { %v5836_v44 = vmul.f32 1.442695, %v5829_v47 }
 0x818   : > { %7596 = vpow2.f32 %v5830_v13 }
 0x819   : > { %7598 = vpow2.f32 %v5832_v11  ;;  %v5734_v30 = vpop.xlane.xlu1 %5733 }
 0x81a   : > { %7600 = vpow2.f32 %v5834_v27 }
 0x81b   : > { %7602 = vpow2.f32 %v5836_v44 }
 0x81d   : > { %v5760_v57 = vpop.permute.xlu1 %5759 }
 0x81e   : > { %v5766_v29 = vadd.f32 %v5760_v57, %v5734_v30  ;;  %v5769_v52 = vadd.f32 %v5760_v57, %v5743_v32 }
 0x820   : > { %7604 = vtanh.f32 %v5766_v29 }
 0x821   : > { %7606 = vtanh.f32 %v5769_v52 }
 0x822   : > { %v7597_v38 = vpop.eup %7596 }
 0x823   : > { %5843 = vperm.xlu0 %7595, %v7597_v38   ;;  %v7599_v60 = vpop.eup %7598 }
 0x824   : > { %v7601_v14 = vpop.eup %7600 }
 0x825   : > { %v7603_v53 = vpop.eup %7602 }
 0x827   : > { %5846 = vperm.xlu0 %7595, %v7599_v60  }
 0x82a   : > { %v7605_v39 = vpop.eup %7604 }
 0x82b   : > { %5849 = vperm.xlu0 %7595, %v7601_v14   ;;  %v7607_v31 = vpop.eup %7606 }
 0x82c   : > { %v5935_v40 = vrot.slane %v7607_v31, 7 }
 0x82e   : > { %v5936_v20 = vsel %vm5808_vm7, %v5935_v40, %v7605_v39 }
 0x82f   : > { %5852 = vperm.xlu0 %7595, %v7603_v53   ;;  %5939 = vst.msk [vmem:[%s9482_s10] sm:$0x3] %vm5938_vm10, %v5936_v20 }
 0x8a2   : > { %v5844_v12 = vpop.permute.xlu0 %5843 }
 0x8a3   : > { %v5857_v62 = vrot.slane %v5844_v12, %v9407_v51 }
 0x8a6   : > { %v5847_v45 = vpop.permute.xlu0 %5846 }
 0x8a7   : > { %v5861_v49 = vrot.slane %v5847_v45, %v9404_v0 }
 0x8a9   : > { %v5862_v50 = vsel %vm5797_vm6, %v5861_v49, %v5857_v62 }
 0x8aa   : > { %v5850_v33 = vpop.permute.xlu0 %5849 }
 0x8ab   : > { %v5866_v26 = vrot.slane %v5850_v33, %v9407_v51 }
 0x8ae   : > { %v5853_v46 = vpop.permute.xlu0 %5852 }
 0x8af   : > { %v5870_v21 = vrot.slane %v5853_v46, %v9404_v0 }
 0x8b1   : > { %v5871_v42 = vsel %vm5797_vm6, %v5870_v21, %v5866_v26 }
 0x8b2   : > { %v5872_v2 = vsel %vm5808_vm7, %v5871_v42, %v5862_v50 }
 0x8b3   : > { %v5874_v9 = vsel %vm5811_vm8, %v5872_v2, 0.0 }
 0x8b4   : > { %5875 = vadd.xlane.f32.xlu0 %v5874_v9 }
 0x941   : > { %v5876_v8 = vpop.xlane.xlu0 %5875 }
 0x942   : > { %v5881_v17 = vrot.slane %v5876_v8, %v9566_v18  ;;  %v5885_v10 = vrot.slane %v5876_v8, %v5822_v63 }
 0x944   : > { %7608 = vrcp.f32 %v5881_v17 }
 0x945   : > { %7610 = vrcp.f32 %v5885_v10 }
 0x94e   : > { %v7609_v28 = vpop.eup %7608 }
 0x94f   : > { %v5890_v43 = vmul.f32 %v7609_v28, %v7599_v60  ;;  %v5889_v23 = vmul.f32 %v7609_v28, %v7597_v38  ;;  %v7611_v36 = vpop.eup %7610 }
 0x950   : > { %v5892_v22 = vmul.f32 %v7611_v36, %v7601_v14  ;;  %v5893_v7 = vmul.f32 %v7611_v36, %v7603_v53 }
 0x951   : > { %5902 = vperm.xlu1 %7594, %v5890_v43   ;;  %5899 = vperm.xlu0 %7595, %v5889_v23  }
 0x955   : > { %5905 = vperm.xlu1 %7594, %v5892_v22  }
 0x959   : > { %5908 = vperm.xlu1 %7594, %v5893_v7  }
 0x9d0   : > { %v5903_v35 = vpop.permute.xlu1 %5902  ;;  %v5900_v24 = vpop.permute.xlu0 %5899 }
 0x9d1   : > { %v5913_v48 = vrot.slane %v5900_v24, %v9407_v51  ;;  %v5917_v58 = vrot.slane %v5903_v35, %v9404_v0 }
 0x9d3   : > { %v5918_v55 = vsel %vm5797_vm6, %v5917_v58, %v5913_v48 }
 0x9d4   : > { %v5906_v54 = vpop.permute.xlu1 %5905 }
 0x9d5   : > { %v5922_v41 = vrot.slane %v5906_v54, %v9407_v51 }
 0x9d8   : > { %v5909_v61 = vpop.permute.xlu1 %5908 }
 0x9d9   : > { %v5926_v34 = vrot.slane %v5909_v61, %v9404_v0 }
 0x9db   : > { %v5927_v56 = vsel %vm5797_vm6, %v5926_v34, %v5922_v41 }
 0x9dc   : > { %v5928_v63 = vsel %vm5808_vm7, %v5927_v56, %v5918_v55 }
 0x9dd   : > { %5930 = vst.msk [vmem:[#allocation4] sm:$0x3] %vm5811_vm8, %v5928_v63 }
 0x9de PF: > { %p7539_p6 = scmp.eq.s32.totalorder %s7714_s14, 1  ;;  %s7652_s27 = smov [#allocation4]  }
 0x9df   : > { %s5947_s28 = sshll.u32 %s7652_s27, 4  ;;  %s5948_s28 = int_to_ptr.vmem [resolvable:$true] %s5947_s28 }
 0x9e0   : > { %s7612_s29 = scalar_lea.vmem %s5948_s28, 32  ;;  %p7619_p10 = scmp.lt.s32.totalorder %s5948_s28, %s5948_s28 }
 0x9e1   : > { %p7613_p7 = scmp.ne.s32.totalorder %s5948_s28, %s7612_s29  ;;  %p7620_p11 = scmp.lt.s32.totalorder %s7612_s29, %s7612_s29 }
 0x9e3   : > { %p7614_p8 = pnand %p7613_p7, %p7539_p6  ;;  %p7621_p12 = por %p7620_p11, %p7619_p10 }
 0x9e5   : > { %p7615_p9 = pneg %p7614_p8 }
 0x9e7   : > { %p7622_p13 = pnand %p7621_p12, %p7615_p9 }
 0x9e9   : > { %7625 = shalt.err (!%p7622_p13)
}
 0x9ea   : > { %s7626_s12 = scalar_lea.hbm %s9481_s9, 32 }
 0x9eb   : > { %p7627_p0 = scmp.ne.s32.totalorder %s9481_s9, %s7626_s12  ;;  %p7632_p3 = scmp.lt.u32.totalorder %s7626_s12, %s9481_s9 }
 0x9ed   : > { %p7628_p1 = pnand %p7627_p0, %p7539_p6 }
 0x9ef   : > { %p7629_p2 = pneg %p7628_p1 }
 0x9f1   : > { %p7634_p4 = pnand %p7632_p3, %p7629_p2 }
 0x9f3   : > { %7637 = shalt.err (!%p7634_p4)
}
 0x9f4   : > { %7536 = dma.vmem_to_hbm [thread:$0]  (%p7539_p6), %s5948_s28, 32, %s9481_s9, [#allocation5]  }
 0x9f5   : > { %7643 = dma.done.wait (%p7539_p6), [#allocation5], 32  }
 0x9f6   : > { %7645 = vsyncadd (%p7539_p6), [#allocation5], 4294967264 }
 0x9f7 PF: > { %s22_s13 = sadd.s32 1, %s7648_s13  }
 0x9f8   : > { %p19_p5 = scmp.ge.s32.totalorder %s22_s13, 4  }
 0x9fa   :  { %21 = sbr.rel (!%p19_p5) target bundleno = 1 (0x1), region = 137 }
 0xa01   :  { %5966 = vsyncpa [#allocation5], 1 }
 0xa02   :  { %5968 = vsyncpa [#allocation5 + $0x1], 1 }

</bundles_post_ra>
